<compile_context>
chip_gen: v7x
topology: tpu7x:2x2x1
jax: 0.10.0
libtpu: 0.0.40
codegen_flags: <defaults>
</compile_context>

<pallas_src>
import functools
import math

import jax
import jax.numpy as jnp
from jax.experimental import pallas as pl
from jax.experimental.pallas import tpu as pltpu


# ---------------------------------------------------------------------------
# Argument layout for the fused kernel
# ---------------------------------------------------------------------------

_INVARIANT_NAMES = (
    "tgt0", "qtime", "boxes0", "ef", "ep",             # activations (layer-invariant / initial)
    "head_sel", "sine_row", "sine_mask",               # constants
    "rph_w1", "rph_b1", "rph_w2", "rph_b2",            # ref_point_head MLP (shared)
    "qs_w1", "qs_b1", "qs_w2", "qs_b2",                # query_scale MLP (shared)
    "bb_w1", "bb_b1", "bb_w2", "bb_b2", "bb_w3", "bb_b3",  # bbox_embed MLP (shared)
)
_LAYER_NAMES = (
    "sa_wt", "sa_wti", "sa_wp", "sa_b",                # self-attn projections (+MHA in-proj folded)
    "sa_wo", "sa_bo",                                  # self-attn out-proj
    "ln1_g", "ln1_b",
    "caq_wt", "caq_ws", "caq_wti", "caq_wp", "caq_b",  # cross-attn q projections (+in-proj folded)
    "ca_wef", "ca_wep", "ca_bkv",                      # cross-attn k|v projections (+in-proj folded)
    "ca_wo", "ca_bo",
    "ln3_g", "ln3_b",
    "ff_w1", "ff_b1", "ff_w2", "ff_b2",                # FFN
    "ln4_g", "ln4_b",
)


# ---------------------------------------------------------------------------
# Fused whole-decoder kernel (one grid step per layer)
# ---------------------------------------------------------------------------

def _fused_decoder_kernel(*refs, d, nhead, n_tokens, bs, eps):
    names = _INVARIANT_NAMES + _LAYER_NAMES
    r = dict(zip(names, refs[: len(names)]))
    out_box_ref, tgt_s, box_s = refs[len(names):]

    f32 = jnp.float32
    dh = d // nhead
    scale = 1.0 / math.sqrt(dh)
    layer = pl.program_id(0)

    def mm(x, w):
        return jnp.dot(x, w, preferred_element_type=f32)

    def mm_t(x, y):  # x @ y.T without materializing a transpose
        return jax.lax.dot_general(x, y, (((1,), (1,)), ((), ())),
                                   preferred_element_type=f32)

    def layer_norm(x, g_ref, b_ref):
        mu = jnp.mean(x, axis=-1, keepdims=True)
        xc = x - mu
        var = jnp.mean(xc * xc, axis=-1, keepdims=True)
        return xc * jax.lax.rsqrt(var + eps) * g_ref[...] + b_ref[...]

    def softmax_last(s):
        s = s - jnp.max(s, axis=-1, keepdims=True)
        e = jnp.exp(s)
        return e * pl.reciprocal(jnp.sum(e, axis=-1, keepdims=True), approx=True)

    # ---- carried state (VMEM scratch persists across grid iterations) ----
    @pl.when(layer == 0)
    def _():
        tgt_s[...] = r["tgt0"][...].astype(f32)
        box_s[...] = r["boxes0"][...].astype(f32)

    tgt_in = tgt_s[...]                       # (m, d)   m = t*b (b == 1)
    boxes = box_s[...]                        # (m, 4)
    qtime = r["qtime"][...].astype(f32)       # (m, d)
    ef = r["ef"][...].astype(f32)             # (bs*S, d) encoded_feature, batch-major rows
    ep = r["ep"][...].astype(f32)             # (bs*S, d) encoded_pos, batch-major rows
    gsel = r["head_sel"][...]                 # (d, nhead) head indicator

    # ---- gen_sineembed_for_position, in-kernel (VPU broadcast + EUP sin/cos + lane select) ----
    srow = r["sine_row"][...]                 # (1, half) = 2*pi / dim_t
    mh = r["sine_mask"][...]                  # (1, half) 1.0 on even lanes (sin), 0.0 on odd (cos)

    def sine_embed(col):                      # col: (m, 1)
        pv = col * srow                       # (m, half)
        return mh * jnp.sin(pv) + (1.0 - mh) * jnp.cos(pv)

    qse = jnp.concatenate(
        [sine_embed(boxes[:, 1:2]),           # pos_y
         sine_embed(boxes[:, 0:1]),           # pos_x
         sine_embed(boxes[:, 2:3]),           # pos_w
         sine_embed(boxes[:, 3:4])], axis=1)  # (m, 2d)

    # ---- ref_point_head MLP -> query_pos ----
    h = jnp.maximum(mm(qse, r["rph_w1"][...]) + r["rph_b1"][...], 0.0)
    query_pos = mm(h, r["rph_w2"][...]) + r["rph_b2"][...]            # (m, d)

    # ---- query_scale MLP -> pos_transformation (identity on layer 0) ----
    h = jnp.maximum(mm(tgt_in, r["qs_w1"][...]) + r["qs_b1"][...], 0.0)
    pt = mm(h, r["qs_w2"][...]) + r["qs_b2"][...]
    is_first = (layer == 0).astype(f32)
    pt = pt * (1.0 - is_first) + is_first                             # == 1 when layer == 0
    qsine = qse[:, :d] * pt                                           # (m, d)

    # ---------------- self attention ----------------
    # [q_in | k_in | v_in] = tgt@Wt + qtime@Wti + query_pos@Wp + b  (layer proj + MHA in-proj folded)
    qkv = (mm(tgt_in, r["sa_wt"][...]) + mm(qtime, r["sa_wti"][...])
           + mm(query_pos, r["sa_wp"][...]) + r["sa_b"][...])         # (m, 3d)
    q_in = qkv[:, 0:d]
    k_in = qkv[:, d:2 * d]
    v_in = qkv[:, 2 * d:3 * d]
    wo = r["sa_wo"][...]                                              # (d, d) = out_w.T
    acc = jnp.zeros(tgt_in.shape, f32)
    for hh in range(nhead):                                           # static unroll (small nhead)
        lo, hi = hh * dh, (hh + 1) * dh
        sc = mm_t(q_in[:, lo:hi] * scale, k_in[:, lo:hi])             # (m, m)
        pr = softmax_last(sc)
        oh = mm(pr, v_in[:, lo:hi])                                   # (m, dh)
        acc = acc + mm(oh, wo[lo:hi, :])                              # out-proj folded per head
    tgt = layer_norm(tgt_in + acc + r["sa_bo"][...], r["ln1_g"], r["ln1_b"])

    # ---------------- cross attention (one query per batch element, b == 1) ----------------
    q_ca = (mm(tgt, r["caq_wt"][...]) + mm(qsine, r["caq_ws"][...])
            + mm(qtime, r["caq_wti"][...]) + mm(query_pos, r["caq_wp"][...])
            + r["caq_b"][...])                                        # (bs, d)
    kv = mm(ef, r["ca_wef"][...]) + mm(ep, r["ca_wep"][...]) + r["ca_bkv"][...]  # (bs*S, 2d)
    k3 = kv[:, 0:d].reshape(bs, n_tokens, d)
    v3 = kv[:, d:2 * d].reshape(bs, n_tokens, d)
    prod = (q_ca * scale)[:, None, :] * k3                            # (bs, S, d)
    sc = mm(prod.reshape(bs * n_tokens, d), gsel).reshape(bs, n_tokens, nhead)  # per-head scores
    sc = sc - jnp.max(sc, axis=1, keepdims=True)
    pe = jnp.exp(sc)
    pr = pe * pl.reciprocal(jnp.sum(pe, axis=1, keepdims=True), approx=True)    # softmax over S
    p_lane = mm_t(pr.reshape(bs * n_tokens, nhead), gsel).reshape(bs, n_tokens, d)
    attn = jnp.sum(p_lane * v3, axis=1)                               # (bs, d) concat-head layout
    tgt2 = mm(attn, r["ca_wo"][...]) + r["ca_bo"][...]
    tgt = layer_norm(tgt + tgt2, r["ln3_g"], r["ln3_b"])

    # ---------------- FFN ----------------
    h = jnp.maximum(mm(tgt, r["ff_w1"][...]) + r["ff_b1"][...], 0.0)
    tgt2 = mm(h, r["ff_w2"][...]) + r["ff_b2"][...]
    tgt = layer_norm(tgt + tgt2, r["ln4_g"], r["ln4_b"])
    tgt_s[...] = tgt                                                  # carry to next layer

    # ---------------- bbox_embed MLP + sigmoid ----------------
    h = jnp.maximum(mm(tgt, r["bb_w1"][...]) + r["bb_b1"][...], 0.0)
    h = jnp.maximum(mm(h, r["bb_w2"][...]) + r["bb_b2"][...], 0.0)
    logits = mm(h, r["bb_w3"][...]) + r["bb_b3"][...]
    new_boxes = jax.nn.sigmoid(logits)
    box_s[...] = new_boxes                                            # .detach() -> forward no-op
    out_box_ref[0, :, :] = new_boxes.astype(out_box_ref.dtype)


# ---------------------------------------------------------------------------
# Sine embedding (plain-jnp, used only by the numerical reference)
# ---------------------------------------------------------------------------

def _sine_embed_coord(coord, half):
    dim_t = jnp.arange(half, dtype=jnp.float32)
    dim_t = 10000.0 ** (2.0 * jnp.floor(dim_t / 2.0) / half)
    pvals = (coord[:, None] * (2.0 * math.pi)) / dim_t                # (m, half)
    s = jnp.sin(pvals[:, 0::2])
    c = jnp.cos(pvals[:, 1::2])
    return jnp.stack([s, c], axis=2).reshape(coord.shape[0], half)


def gen_sineembed_for_position(pos, d_model):
    """pos: (m, 4) -> (m, 2*d_model)."""
    half = d_model // 2
    pos_x = _sine_embed_coord(pos[:, 0], half)
    pos_y = _sine_embed_coord(pos[:, 1], half)
    pos_w = _sine_embed_coord(pos[:, 2], half)
    pos_h = _sine_embed_coord(pos[:, 3], half)
    return jnp.concatenate([pos_y, pos_x, pos_w, pos_h], axis=1)


# ---------------------------------------------------------------------------
# Decoder forward (single fused pallas_call over all layers)
# ---------------------------------------------------------------------------

def pos_decoder_forward(prepped, query_tgt, pred_boxes, query_time,
                        encoded_feature, encoded_pos, *, d_model, nhead, num_layers):
    t, b, d = query_tgt.shape
    n_tokens, bs, f = encoded_feature.shape
    assert b == 1 and bs == t * b and f == d, \
        "torch PosDecoder forward requires b == 1 and bs == t*b (q_cross / tgt2_pad copies)"
    m = t * b

    shared = prepped["shared"]
    stacked = prepped["stacked"]

    inv = dict(shared)
    inv["tgt0"] = query_tgt.reshape(m, d).astype(jnp.float32)
    inv["qtime"] = query_time.reshape(m, d).astype(jnp.float32)
    inv["boxes0"] = pred_boxes.reshape(m, 4).astype(jnp.float32)
    # encoded tensors are layer-invariant: make them batch-major once
    inv["ef"] = jnp.swapaxes(encoded_feature, 0, 1).reshape(bs * n_tokens, d).astype(jnp.float32)
    inv["ep"] = jnp.swapaxes(encoded_pos, 0, 1).reshape(bs * n_tokens, d).astype(jnp.float32)

    args, in_specs = [], []
    for name in _INVARIANT_NAMES:                       # resident in VMEM for all layers
        arr = inv[name]
        args.append(arr)
        in_specs.append(pl.BlockSpec(arr.shape, lambda l, nd=arr.ndim: (0,) * nd))
    for name in _LAYER_NAMES:                           # streamed per layer (pipelined prefetch)
        arr = stacked[name]                             # (num_layers, r, c)
        args.append(arr)
        in_specs.append(pl.BlockSpec((None,) + arr.shape[1:], lambda l: (l, 0, 0)))

    kernel = functools.partial(_fused_decoder_kernel, d=d, nhead=nhead,
                               n_tokens=n_tokens, bs=bs, eps=1e-5)

    out = pl.pallas_call(
        kernel,
        out_shape=jax.ShapeDtypeStruct((num_layers, m, 4), jnp.float32),
        grid_spec=pltpu.PrefetchScalarGridSpec(
            num_scalar_prefetch=0,
            grid=(num_layers,),
            in_specs=in_specs,
            out_specs=pl.BlockSpec((1, m, 4), lambda l: (l, 0, 0)),
            scratch_shapes=[pltpu.VMEM((m, d), jnp.float32),   # carried query_tgt
                            pltpu.VMEM((m, 4), jnp.float32)],  # carried pred_boxes
        ),
        compiler_params=pltpu.CompilerParams(
            dimension_semantics=("arbitrary",)),
    )(*args)

    # NOTE: the reference also computes self.norm(query_tgt) at the end, but that result is not
    # part of the returned value (return_intermediate=False) -> dead code, skipped.
    out = out.reshape(num_layers, t, b, 4)
    return jnp.swapaxes(out, 1, 2)                                    # (num_layers, b, t, 4)


# ---------------------------------------------------------------------------
# Raw (PyTorch-style) parameters + one-time prep/folding into kernel weights
# ---------------------------------------------------------------------------

def _init_linear(key, dout, din, scale=0.05):
    k1, k2 = jax.random.split(key)
    return {"w": scale * jax.random.normal(k1, (dout, din), jnp.float32),
            "b": scale * jax.random.normal(k2, (dout,), jnp.float32)}


def _init_ln(d):
    return {"g": jnp.ones((d,), jnp.float32), "b": jnp.zeros((d,), jnp.float32)}


def _init_mha(key, d, scale=0.05):
    ks = jax.random.split(key, 4)
    p = {}
    for name, kk in zip(("q", "k", "v"), ks[:3]):
        lp = _init_linear(kk, d, d, scale)
        p["w" + name] = lp["w"]
        p["b" + name] = lp["b"]
    p["out"] = _init_linear(ks[3], d, d, scale)
    return p


def _init_layer(key, d, ffn, scale=0.05):
    names = ["sa_qcontent", "sa_qpos", "sa_qtime", "sa_kcontent", "sa_kpos", "sa_ktime",
             "sa_v", "ca_qcontent", "ca_qpos", "ca_kcontent", "ca_kpos", "ca_qtime",
             "ca_v", "ca_qpos_sine"]
    keys = jax.random.split(key, len(names) + 4)
    p = {n: _init_linear(keys[i], d, d, scale) for i, n in enumerate(names)}
    p["self_attn"] = _init_mha(keys[len(names)], d, scale)
    p["cross_attn_image"] = _init_mha(keys[len(names) + 1], d, scale)
    p["linear1"] = _init_linear(keys[len(names) + 2], ffn, d, scale)
    p["linear2"] = _init_linear(keys[len(names) + 3], d, ffn, scale)
    p["norm1"] = _init_ln(d)
    p["norm3"] = _init_ln(d)
    p["norm4"] = _init_ln(d)
    return p


def _init_decoder(key, d, ffn, num_layers, query_dim=4, scale=0.05):
    keys = jax.random.split(key, num_layers + 7)
    p = {"layers": [_init_layer(keys[i], d, ffn, scale) for i in range(num_layers)]}
    p["norm"] = _init_ln(d)
    p["query_scale"] = [_init_linear(keys[num_layers + 0], d, d, scale),
                        _init_linear(keys[num_layers + 1], d, d, scale)]
    p["ref_point_head"] = [_init_linear(keys[num_layers + 2], d, query_dim // 2 * d, scale),
                           _init_linear(keys[num_layers + 3], d, d, scale)]
    # TODO(synk): bbox_embed is None in the reference __init__ (assigned externally in the full
    # model); a synthetic 3-layer MLP(d, d, 4) is used so that torch.stack(ref_anchors) is valid.
    p["bbox_embed"] = [_init_linear(keys[num_layers + 4], d, d, scale),
                       _init_linear(keys[num_layers + 5], d, d, scale),
                       _init_linear(keys[num_layers + 6], 4, d, scale)]
    return p


def _prep_decoder_params(raw, d, nhead, num_layers):
    """Pre-transpose and fold all weights ONCE: stacked lane-dense projection weights, MHA
    in-projections folded into the preceding Linears, per-layer weights stacked along a leading
    layer axis so the fused kernel can stream them with a BlockSpec index_map."""
    dh = d // nhead
    half = d // 2

    def wT(lp):
        return lp["w"].T.astype(jnp.float32)

    def b2(lp):
        return lp["b"].reshape(1, -1).astype(jnp.float32)

    shared = {
        "rph_w1": wT(raw["ref_point_head"][0]), "rph_b1": b2(raw["ref_point_head"][0]),
        "rph_w2": wT(raw["ref_point_head"][1]), "rph_b2": b2(raw["ref_point_head"][1]),
        "qs_w1": wT(raw["query_scale"][0]), "qs_b1": b2(raw["query_scale"][0]),
        "qs_w2": wT(raw["query_scale"][1]), "qs_b2": b2(raw["query_scale"][1]),
        "bb_w1": wT(raw["bbox_embed"][0]), "bb_b1": b2(raw["bbox_embed"][0]),
        "bb_w2": wT(raw["bbox_embed"][1]), "bb_b2": b2(raw["bbox_embed"][1]),
        "bb_w3": wT(raw["bbox_embed"][2]), "bb_b3": b2(raw["bbox_embed"][2]),
    }
    shared["head_sel"] = jnp.repeat(jnp.eye(nhead, dtype=jnp.float32), dh, axis=0)  # (d, nhead)

    # sine-embedding constants: 2*pi/dim_t row + even/odd (sin/cos) lane mask
    i = jnp.arange(half, dtype=jnp.float32)
    dim_t = 10000.0 ** (2.0 * jnp.floor(i / 2.0) / half)
    shared["sine_row"] = ((2.0 * math.pi) / dim_t).reshape(1, half).astype(jnp.float32)
    shared["sine_mask"] = ((jnp.arange(half) % 2) == 0).astype(jnp.float32).reshape(1, half)

    zeros_dd = jnp.zeros((d, d), jnp.float32)
    per_layer = {name: [] for name in _LAYER_NAMES}
    for layer_id in range(num_layers):
        rl = raw["layers"][layer_id]
        is_first = layer_id == 0
        sa = rl["self_attn"]
        WqT, WkT, WvT = sa["wq"].T, sa["wk"].T, sa["wv"].T
        ca = rl["cross_attn_image"]
        XqT, XkT, XvT = ca["wq"].T, ca["wk"].T, ca["wv"].T

        # self-attention: layer projections folded with MHA in-projection -> (d, 3d)
        sa_wt = jnp.concatenate([rl["sa_qcontent"]["w"].T @ WqT,
                                 rl["sa_kcontent"]["w"].T @ WkT,
                                 rl["sa_v"]["w"].T @ WvT], axis=1)
        sa_wti = jnp.concatenate([rl["sa_qtime"]["w"].T @ WqT,
                                  rl["sa_ktime"]["w"].T @ WkT, zeros_dd], axis=1)
        sa_wp = jnp.concatenate([rl["sa_qpos"]["w"].T @ WqT,
                                 rl["sa_kpos"]["w"].T @ WkT, zeros_dd], axis=1)
        bq_sum = rl["sa_qcontent"]["b"] + rl["sa_qtime"]["b"] + rl["sa_qpos"]["b"]
        bk_sum = rl["sa_kcontent"]["b"] + rl["sa_ktime"]["b"] + rl["sa_kpos"]["b"]
        sa_b = jnp.concatenate([bq_sum @ WqT + sa["bq"],
                                bk_sum @ WkT + sa["bk"],
                                rl["sa_v"]["b"] @ WvT + sa["bv"]]).reshape(1, 3 * d)

        # cross-attention q side (qpos term only exists on layer 0, like the torch module)
        caq_wt = rl["ca_qcontent"]["w"].T @ XqT
        caq_ws = rl["ca_qpos_sine"]["w"].T @ XqT
        caq_wti = rl["ca_qtime"]["w"].T @ XqT
        if is_first:
            caq_wp = rl["ca_qpos"]["w"].T @ XqT
            bq_ca = (rl["ca_qcontent"]["b"] + rl["ca_qpos_sine"]["b"]
                     + rl["ca_qtime"]["b"] + rl["ca_qpos"]["b"])
        else:
            caq_wp = zeros_dd
            bq_ca = rl["ca_qcontent"]["b"] + rl["ca_qpos_sine"]["b"] + rl["ca_qtime"]["b"]
        caq_b = (bq_ca @ XqT + ca["bq"]).reshape(1, d)

        # cross-attention k|v side; torch adds k_pos twice on the first layer -> alpha = 2
        alpha = 2.0 if is_first else 1.0
        ca_wef = jnp.concatenate([rl["ca_kcontent"]["w"].T @ XkT,
                                  rl["ca_v"]["w"].T @ XvT], axis=1)
        ca_wep = jnp.concatenate([alpha * (rl["ca_kpos"]["w"].T @ XkT), zeros_dd], axis=1)
        ca_bkv = jnp.concatenate([
            (rl["ca_kcontent"]["b"] + alpha * rl["ca_kpos"]["b"]) @ XkT + ca["bk"],
            rl["ca_v"]["b"] @ XvT + ca["bv"]]).reshape(1, 2 * d)

        vals = {
            "sa_wt": sa_wt, "sa_wti": sa_wti, "sa_wp": sa_wp, "sa_b": sa_b,
            "sa_wo": sa["out"]["w"].T, "sa_bo": sa["out"]["b"].reshape(1, -1),
            "ln1_g": rl["norm1"]["g"].reshape(1, -1), "ln1_b": rl["norm1"]["b"].reshape(1, -1),
            "caq_wt": caq_wt, "caq_ws": caq_ws, "caq_wti": caq_wti, "caq_wp": caq_wp,
            "caq_b": caq_b,
            "ca_wef": ca_wef, "ca_wep": ca_wep, "ca_bkv": ca_bkv,
            "ca_wo": ca["out"]["w"].T, "ca_bo": ca["out"]["b"].reshape(1, -1),
            "ln3_g": rl["norm3"]["g"].reshape(1, -1), "ln3_b": rl["norm3"]["b"].reshape(1, -1),
            "ff_w1": rl["linear1"]["w"].T, "ff_b1": rl["linear1"]["b"].reshape(1, -1),
            "ff_w2": rl["linear2"]["w"].T, "ff_b2": rl["linear2"]["b"].reshape(1, -1),
            "ln4_g": rl["norm4"]["g"].reshape(1, -1), "ln4_b": rl["norm4"]["b"].reshape(1, -1),
        }
        for k, v in vals.items():
            per_layer[k].append(v.astype(jnp.float32))

    stacked = {k: jnp.stack(v, axis=0) for k, v in per_layer.items()}   # (num_layers, r, c)
    return {"shared": shared, "stacked": stacked}


# ---------------------------------------------------------------------------
# Pure-jnp reference (mirrors the torch code op-by-op) for numerical validation
# ---------------------------------------------------------------------------

def _ref_linear(x, p):
    return x @ p["w"].T + p["b"]


def _ref_ln(x, p, eps=1e-5):
    mu = jnp.mean(x, axis=-1, keepdims=True)
    var = jnp.mean(jnp.square(x - mu), axis=-1, keepdims=True)
    return (x - mu) * jax.lax.rsqrt(var + eps) * p["g"] + p["b"]


def _ref_mha(q, k, v, p, nhead):
    L, N, E = q.shape
    S = k.shape[0]
    dh = E // nhead
    qp = _ref_linear(q, {"w": p["wq"], "b": p["bq"]}).reshape(L, N, nhead, dh)
    kp = _ref_linear(k, {"w": p["wk"], "b": p["bk"]}).reshape(S, N, nhead, dh)
    vp = _ref_linear(v, {"w": p["wv"], "b": p["bv"]}).reshape(S, N, nhead, dh)
    sc = jnp.einsum("lnhd,snhd->nhls", qp, kp) / math.sqrt(dh)
    pr = jax.nn.softmax(sc, axis=-1)
    o = jnp.einsum("nhls,snhd->lnhd", pr, vp).reshape(L, N, E)
    return _ref_linear(o, p["out"])


def _ref_mlp(layers, x):
    n = len(layers)
    for i, lp in enumerate(layers):
        x = _ref_linear(x, lp)
        if i < n - 1:
            x = jnp.maximum(x, 0.0)
    return x


def _ref_layer_forward(p, query_tgt, query_pos, query_time, query_sine_embed,
                       encoded_feature, encoded_pos, nhead, is_first):
    t, b, c = query_tgt.shape
    n_tokens, bs, f = encoded_feature.shape
    q = (_ref_linear(query_tgt, p["sa_qcontent"]) + _ref_linear(query_time, p["sa_qtime"])
         + _ref_linear(query_pos, p["sa_qpos"]))
    k = (_ref_linear(query_tgt, p["sa_kcontent"]) + _ref_linear(query_time, p["sa_ktime"])
         + _ref_linear(query_pos, p["sa_kpos"]))
    v = _ref_linear(query_tgt, p["sa_v"])
    tgt = _ref_ln(query_tgt + _ref_mha(q, k, v, p["self_attn"], nhead), p["norm1"])

    q_content = _ref_linear(tgt, p["ca_qcontent"])
    k_content = _ref_linear(encoded_feature, p["ca_kcontent"])
    v = _ref_linear(encoded_feature, p["ca_v"])
    k_pos = _ref_linear(encoded_pos, p["ca_kpos"])
    if is_first:
        q = q_content + _ref_linear(query_pos, p["ca_qpos"])
        k = k_content + k_pos
    else:
        q = q_content
        k = k_content
    q = q + _ref_linear(query_sine_embed, p["ca_qpos_sine"])
    q = q + _ref_linear(query_time, p["ca_qtime"])
    k = k + k_pos  # k_pos added a second time when is_first, as in the torch code
    q_cross = q[:, 0, :][None, :, :]                               # (1, bs, c), requires bs == t
    tgt2 = _ref_mha(q_cross, k, v, p["cross_attn_image"], nhead)   # (1, bs, c)
    tgt2 = jnp.swapaxes(tgt2[0].reshape(b, t, f), 0, 1)            # (t, b, f)
    tgt = _ref_ln(tgt + tgt2, p["norm3"])

    tgt2 = _ref_linear(jnp.maximum(_ref_linear(tgt, p["linear1"]), 0.0), p["linear2"])
    return _ref_ln(tgt + tgt2, p["norm4"])


def _ref_decoder_forward(params, query_tgt, pred_boxes, query_time,
                         encoded_feature, encoded_pos, *, d_model, nhead, num_layers):
    t, b, _ = query_tgt.shape
    ref_anchors = []
    for layer_id in range(num_layers):
        qse_full = gen_sineembed_for_position(pred_boxes.reshape(t * b, 4), d_model)
        qse_full = qse_full.reshape(t, b, 2 * d_model)
        query_pos = _ref_mlp(params["ref_point_head"], qse_full)
        if layer_id == 0:
            pos_transformation = 1.0
        else:
            pos_transformation = _ref_mlp(params["query_scale"], query_tgt)
        qse = qse_full[..., :d_model] * pos_transformation
        query_tgt = _ref_layer_forward(params["layers"][layer_id], query_tgt, query_pos,
                                       query_time, qse, encoded_feature, encoded_pos,
                                       nhead, is_first=(layer_id == 0))
        boxes = jax.nn.sigmoid(_ref_mlp(params["bbox_embed"], query_tgt))
        ref_anchors.append(boxes)
        pred_boxes = jax.lax.stop_gradient(boxes)
    out = jnp.stack(ref_anchors, axis=0)
    return jnp.swapaxes(out, 1, 2)


# ---------------------------------------------------------------------------
# Example run
# ---------------------------------------------------------------------------

if __name__ == "__main__":
    d_model, nhead, ffn_dim, num_layers = 32, 4, 64, 2
    t, b = 8, 1               # query length / query batch (torch forward requires b == 1)
    bs = t * b                # encoded-feature batch must equal t*b
    n_tokens = 16

    key = jax.random.PRNGKey(0)
    kp, k1, k2, k3, k4, k5 = jax.random.split(key, 6)
    raw_params = _init_decoder(kp, d_model, ffn_dim, num_layers)
    prepped = _prep_decoder_params(raw_params, d_model, nhead, num_layers)

    query_tgt = jax.random.normal(k1, (t, b, d_model), jnp.float32)
    pred_boxes = jax.nn.sigmoid(jax.random.normal(k2, (t, b, 4), jnp.float32))
    query_time = jax.random.normal(k3, (t, b, d_model), jnp.float32)
    encoded_feature = jax.random.normal(k4, (n_tokens, bs, d_model), jnp.float32)
    encoded_pos = jax.random.normal(k5, (n_tokens, bs, d_model), jnp.float32)

    fwd = jax.jit(functools.partial(pos_decoder_forward, d_model=d_model,
                                    nhead=nhead, num_layers=num_layers))
    out = jax.block_until_ready(fwd(prepped, query_tgt, pred_boxes, query_time,
                                    encoded_feature, encoded_pos))
    assert out.shape == (num_layers, b, t, 4), out.shape
    assert bool(jnp.all(jnp.isfinite(out)))

    # numerical check against the pure-jnp reference of the torch forward
    ref = _ref_decoder_forward(raw_params, query_tgt, pred_boxes, query_time,
                               encoded_feature, encoded_pos, d_model=d_model,
                               nhead=nhead, num_layers=num_layers)
    max_err = float(jnp.max(jnp.abs(out - ref)))
    assert max_err < 2e-2, f"mismatch vs reference: {max_err}"
    print("KERNEL_OK")
</pallas_src>

<mosaic_0001>
module attributes {stable_mosaic.version = 11 : i64} {
  func.func @_fused_decoder_kernel(%arg0: i32, %arg1: memref<8x32xf32, #tpu.memory_space<vmem>>, %arg2: memref<8x32xf32, #tpu.memory_space<vmem>>, %arg3: memref<8x4xf32, #tpu.memory_space<vmem>>, %arg4: memref<128x32xf32, #tpu.memory_space<vmem>>, %arg5: memref<128x32xf32, #tpu.memory_space<vmem>>, %arg6: memref<32x4xf32, #tpu.memory_space<vmem>>, %arg7: memref<1x16xf32, #tpu.memory_space<vmem>>, %arg8: memref<1x16xf32, #tpu.memory_space<vmem>>, %arg9: memref<64x32xf32, #tpu.memory_space<vmem>>, %arg10: memref<1x32xf32, #tpu.memory_space<vmem>>, %arg11: memref<32x32xf32, #tpu.memory_space<vmem>>, %arg12: memref<1x32xf32, #tpu.memory_space<vmem>>, %arg13: memref<32x32xf32, #tpu.memory_space<vmem>>, %arg14: memref<1x32xf32, #tpu.memory_space<vmem>>, %arg15: memref<32x32xf32, #tpu.memory_space<vmem>>, %arg16: memref<1x32xf32, #tpu.memory_space<vmem>>, %arg17: memref<32x32xf32, #tpu.memory_space<vmem>>, %arg18: memref<1x32xf32, #tpu.memory_space<vmem>>, %arg19: memref<32x32xf32, #tpu.memory_space<vmem>>, %arg20: memref<1x32xf32, #tpu.memory_space<vmem>>, %arg21: memref<32x4xf32, #tpu.memory_space<vmem>>, %arg22: memref<1x4xf32, #tpu.memory_space<vmem>>, %arg23: memref<1x32x96xf32, #tpu.memory_space<vmem>>, %arg24: memref<1x32x96xf32, #tpu.memory_space<vmem>>, %arg25: memref<1x32x96xf32, #tpu.memory_space<vmem>>, %arg26: memref<1x1x96xf32, #tpu.memory_space<vmem>>, %arg27: memref<1x32x32xf32, #tpu.memory_space<vmem>>, %arg28: memref<1x1x32xf32, #tpu.memory_space<vmem>>, %arg29: memref<1x1x32xf32, #tpu.memory_space<vmem>>, %arg30: memref<1x1x32xf32, #tpu.memory_space<vmem>>, %arg31: memref<1x32x32xf32, #tpu.memory_space<vmem>>, %arg32: memref<1x32x32xf32, #tpu.memory_space<vmem>>, %arg33: memref<1x32x32xf32, #tpu.memory_space<vmem>>, %arg34: memref<1x32x32xf32, #tpu.memory_space<vmem>>, %arg35: memref<1x1x32xf32, #tpu.memory_space<vmem>>, %arg36: memref<1x32x64xf32, #tpu.memory_space<vmem>>, %arg37: memref<1x32x64xf32, #tpu.memory_space<vmem>>, %arg38: memref<1x1x64xf32, #tpu.memory_space<vmem>>, %arg39: memref<1x32x32xf32, #tpu.memory_space<vmem>>, %arg40: memref<1x1x32xf32, #tpu.memory_space<vmem>>, %arg41: memref<1x1x32xf32, #tpu.memory_space<vmem>>, %arg42: memref<1x1x32xf32, #tpu.memory_space<vmem>>, %arg43: memref<1x32x64xf32, #tpu.memory_space<vmem>>, %arg44: memref<1x1x64xf32, #tpu.memory_space<vmem>>, %arg45: memref<1x64x32xf32, #tpu.memory_space<vmem>>, %arg46: memref<1x1x32xf32, #tpu.memory_space<vmem>>, %arg47: memref<1x1x32xf32, #tpu.memory_space<vmem>>, %arg48: memref<1x1x32xf32, #tpu.memory_space<vmem>>, %arg49: memref<1x8x4xf32, #tpu.memory_space<vmem>>, %arg50: memref<8x32xf32, #tpu.memory_space<vmem>>, %arg51: memref<8x4xf32, #tpu.memory_space<vmem>>) attributes {dimension_semantics = [#tpu.dimension_semantics<arbitrary>], iteration_bounds = array<i64: 2>, scalar_prefetch = 0 : i64, scratch_operands = 2 : i64, tpu.core_type = #tpu.core_type<tc>, window_params = [{pipeline_mode = #tpu.pipeline_mode<synchronous>, transform_indices = @transform_0, window_bounds = array<i64: 8, 32>}, {pipeline_mode = #tpu.pipeline_mode<synchronous>, transform_indices = @transform_1, window_bounds = array<i64: 8, 32>}, {pipeline_mode = #tpu.pipeline_mode<synchronous>, transform_indices = @transform_2, window_bounds = array<i64: 8, 4>}, {pipeline_mode = #tpu.pipeline_mode<synchronous>, transform_indices = @transform_3, window_bounds = array<i64: 128, 32>}, {pipeline_mode = #tpu.pipeline_mode<synchronous>, transform_indices = @transform_4, window_bounds = array<i64: 128, 32>}, {pipeline_mode = #tpu.pipeline_mode<synchronous>, transform_indices = @transform_5, window_bounds = array<i64: 32, 4>}, {pipeline_mode = #tpu.pipeline_mode<synchronous>, transform_indices = @transform_6, window_bounds = array<i64: 1, 16>}, {pipeline_mode = #tpu.pipeline_mode<synchronous>, transform_indices = @transform_7, window_bounds = array<i64: 1, 16>}, {pipeline_mode = #tpu.pipeline_mode<synchronous>, transform_indices = @transform_8, window_bounds = array<i64: 64, 32>}, {pipeline_mode = #tpu.pipeline_mode<synchronous>, transform_indices = @transform_9, window_bounds = array<i64: 1, 32>}, {pipeline_mode = #tpu.pipeline_mode<synchronous>, transform_indices = @transform_10, window_bounds = array<i64: 32, 32>}, {pipeline_mode = #tpu.pipeline_mode<synchronous>, transform_indices = @transform_11, window_bounds = array<i64: 1, 32>}, {pipeline_mode = #tpu.pipeline_mode<synchronous>, transform_indices = @transform_12, window_bounds = array<i64: 32, 32>}, {pipeline_mode = #tpu.pipeline_mode<synchronous>, transform_indices = @transform_13, window_bounds = array<i64: 1, 32>}, {pipeline_mode = #tpu.pipeline_mode<synchronous>, transform_indices = @transform_14, window_bounds = array<i64: 32, 32>}, {pipeline_mode = #tpu.pipeline_mode<synchronous>, transform_indices = @transform_15, window_bounds = array<i64: 1, 32>}, {pipeline_mode = #tpu.pipeline_mode<synchronous>, transform_indices = @transform_16, window_bounds = array<i64: 32, 32>}, {pipeline_mode = #tpu.pipeline_mode<synchronous>, transform_indices = @transform_17, window_bounds = array<i64: 1, 32>}, {pipeline_mode = #tpu.pipeline_mode<synchronous>, transform_indices = @transform_18, window_bounds = array<i64: 32, 32>}, {pipeline_mode = #tpu.pipeline_mode<synchronous>, transform_indices = @transform_19, window_bounds = array<i64: 1, 32>}, {pipeline_mode = #tpu.pipeline_mode<synchronous>, transform_indices = @transform_20, window_bounds = array<i64: 32, 4>}, {pipeline_mode = #tpu.pipeline_mode<synchronous>, transform_indices = @transform_21, window_bounds = array<i64: 1, 4>}, {transform_indices = @transform_22, window_bounds = array<i64: 1, 32, 96>}, {transform_indices = @transform_23, window_bounds = array<i64: 1, 32, 96>}, {transform_indices = @transform_24, window_bounds = array<i64: 1, 32, 96>}, {transform_indices = @transform_25, window_bounds = array<i64: 1, 1, 96>}, {transform_indices = @transform_26, window_bounds = array<i64: 1, 32, 32>}, {transform_indices = @transform_27, window_bounds = array<i64: 1, 1, 32>}, {transform_indices = @transform_28, window_bounds = array<i64: 1, 1, 32>}, {transform_indices = @transform_29, window_bounds = array<i64: 1, 1, 32>}, {transform_indices = @transform_30, window_bounds = array<i64: 1, 32, 32>}, {transform_indices = @transform_31, window_bounds = array<i64: 1, 32, 32>}, {transform_indices = @transform_32, window_bounds = array<i64: 1, 32, 32>}, {transform_indices = @transform_33, window_bounds = array<i64: 1, 32, 32>}, {transform_indices = @transform_34, window_bounds = array<i64: 1, 1, 32>}, {transform_indices = @transform_35, window_bounds = array<i64: 1, 32, 64>}, {transform_indices = @transform_36, window_bounds = array<i64: 1, 32, 64>}, {transform_indices = @transform_37, window_bounds = array<i64: 1, 1, 64>}, {transform_indices = @transform_38, window_bounds = array<i64: 1, 32, 32>}, {transform_indices = @transform_39, window_bounds = array<i64: 1, 1, 32>}, {transform_indices = @transform_40, window_bounds = array<i64: 1, 1, 32>}, {transform_indices = @transform_41, window_bounds = array<i64: 1, 1, 32>}, {transform_indices = @transform_42, window_bounds = array<i64: 1, 32, 64>}, {transform_indices = @transform_43, window_bounds = array<i64: 1, 1, 64>}, {transform_indices = @transform_44, window_bounds = array<i64: 1, 64, 32>}, {transform_indices = @transform_45, window_bounds = array<i64: 1, 1, 32>}, {transform_indices = @transform_46, window_bounds = array<i64: 1, 1, 32>}, {transform_indices = @transform_47, window_bounds = array<i64: 1, 1, 32>}, {transform_indices = @transform_48, window_bounds = array<i64: 1, 8, 4>}]} {
    %c0_i32 = arith.constant 0 : i32
    %0 = arith.cmpi eq, %arg0, %c0_i32 : i32
    %1 = arith.extui %0 : i1 to i32
    %c0_i32_0 = arith.constant 0 : i32
    %2 = arith.cmpi ne, %1, %c0_i32_0 : i32
    scf.if %2 {
      %c0_205 = arith.constant 0 : index
      %c0_206 = arith.constant 0 : index
      %387 = vector.load %arg1[%c0_205, %c0_206] : memref<8x32xf32, #tpu.memory_space<vmem>>, vector<8x32xf32>
      %c0_207 = arith.constant 0 : index
      %c0_208 = arith.constant 0 : index
      %388 = vector.load %arg50[%c0_207, %c0_208] : memref<8x32xf32, #tpu.memory_space<vmem>>, vector<8x32xf32>
      tpu.vector_store %arg50[%c0_207, %c0_208], %387 {strides = array<i32>} : memref<8x32xf32, #tpu.memory_space<vmem>>, vector<8x32xf32>,
      %c0_209 = arith.constant 0 : index
      %c0_210 = arith.constant 0 : index
      %389 = vector.load %arg3[%c0_209, %c0_210] : memref<8x4xf32, #tpu.memory_space<vmem>>, vector<8x4xf32>
      %c0_211 = arith.constant 0 : index
      %c0_212 = arith.constant 0 : index
      %390 = vector.load %arg51[%c0_211, %c0_212] : memref<8x4xf32, #tpu.memory_space<vmem>>, vector<8x4xf32>
      tpu.vector_store %arg51[%c0_211, %c0_212], %389 {strides = array<i32>} : memref<8x4xf32, #tpu.memory_space<vmem>>, vector<8x4xf32>,
    } else {
    }
    %c0 = arith.constant 0 : index
    %c0_1 = arith.constant 0 : index
    %3 = vector.load %arg50[%c0, %c0_1] : memref<8x32xf32, #tpu.memory_space<vmem>>, vector<8x32xf32>
    %c0_2 = arith.constant 0 : index
    %c0_3 = arith.constant 0 : index
    %4 = vector.load %arg51[%c0_2, %c0_3] : memref<8x4xf32, #tpu.memory_space<vmem>>, vector<8x4xf32>
    %c0_4 = arith.constant 0 : index
    %c0_5 = arith.constant 0 : index
    %5 = vector.load %arg2[%c0_4, %c0_5] : memref<8x32xf32, #tpu.memory_space<vmem>>, vector<8x32xf32>
    %c0_6 = arith.constant 0 : index
    %c0_7 = arith.constant 0 : index
    %6 = vector.load %arg4[%c0_6, %c0_7] : memref<128x32xf32, #tpu.memory_space<vmem>>, vector<128x32xf32>
    %c0_8 = arith.constant 0 : index
    %c0_9 = arith.constant 0 : index
    %7 = vector.load %arg5[%c0_8, %c0_9] : memref<128x32xf32, #tpu.memory_space<vmem>>, vector<128x32xf32>
    %c0_10 = arith.constant 0 : index
    %c0_11 = arith.constant 0 : index
    %8 = vector.load %arg6[%c0_10, %c0_11] : memref<32x4xf32, #tpu.memory_space<vmem>>, vector<32x4xf32>
    %c0_12 = arith.constant 0 : index
    %c0_13 = arith.constant 0 : index
    %9 = vector.load %arg7[%c0_12, %c0_13] : memref<1x16xf32, #tpu.memory_space<vmem>>, vector<1x16xf32>
    %c0_14 = arith.constant 0 : index
    %c0_15 = arith.constant 0 : index
    %10 = vector.load %arg8[%c0_14, %c0_15] : memref<1x16xf32, #tpu.memory_space<vmem>>, vector<1x16xf32>
    %11 = vector.extract_strided_slice %4 {offsets = [0, 1], sizes = [8, 1], strides = [1, 1]} : vector<8x4xf32> to vector<8x1xf32>
    %12 = vector.broadcast %11 : vector<8x1xf32> to vector<8x16xf32>
    %13 = vector.broadcast %9 : vector<1x16xf32> to vector<8x16xf32>
    %14 = arith.mulf %12, %13 : vector<8x16xf32>
    %15 = math.sin %14 : vector<8x16xf32>
    %16 = vector.broadcast %10 : vector<1x16xf32> to vector<8x16xf32>
    %17 = arith.mulf %16, %15 : vector<8x16xf32>
    %cst = arith.constant 1.000000e+00 : f32
    %18 = vector.broadcast %cst : f32 to vector<1x16xf32>
    %19 = arith.subf %18, %10 : vector<1x16xf32>
    %20 = math.cos %14 : vector<8x16xf32>
    %21 = vector.broadcast %19 : vector<1x16xf32> to vector<8x16xf32>
    %22 = arith.mulf %21, %20 : vector<8x16xf32>
    %23 = arith.addf %17, %22 : vector<8x16xf32>
    %24 = vector.extract_strided_slice %4 {offsets = [0, 0], sizes = [8, 1], strides = [1, 1]} : vector<8x4xf32> to vector<8x1xf32>
    %25 = vector.broadcast %24 : vector<8x1xf32> to vector<8x16xf32>
    %26 = vector.broadcast %9 : vector<1x16xf32> to vector<8x16xf32>
    %27 = arith.mulf %25, %26 : vector<8x16xf32>
    %28 = math.sin %27 : vector<8x16xf32>
    %29 = vector.broadcast %10 : vector<1x16xf32> to vector<8x16xf32>
    %30 = arith.mulf %29, %28 : vector<8x16xf32>
    %cst_16 = arith.constant 1.000000e+00 : f32
    %31 = vector.broadcast %cst_16 : f32 to vector<1x16xf32>
    %32 = arith.subf %31, %10 : vector<1x16xf32>
    %33 = math.cos %27 : vector<8x16xf32>
    %34 = vector.broadcast %32 : vector<1x16xf32> to vector<8x16xf32>
    %35 = arith.mulf %34, %33 : vector<8x16xf32>
    %36 = arith.addf %30, %35 : vector<8x16xf32>
    %37 = vector.extract_strided_slice %4 {offsets = [0, 2], sizes = [8, 1], strides = [1, 1]} : vector<8x4xf32> to vector<8x1xf32>
    %38 = vector.broadcast %37 : vector<8x1xf32> to vector<8x16xf32>
    %39 = vector.broadcast %9 : vector<1x16xf32> to vector<8x16xf32>
    %40 = arith.mulf %38, %39 : vector<8x16xf32>
    %41 = math.sin %40 : vector<8x16xf32>
    %42 = vector.broadcast %10 : vector<1x16xf32> to vector<8x16xf32>
    %43 = arith.mulf %42, %41 : vector<8x16xf32>
    %cst_17 = arith.constant 1.000000e+00 : f32
    %44 = vector.broadcast %cst_17 : f32 to vector<1x16xf32>
    %45 = arith.subf %44, %10 : vector<1x16xf32>
    %46 = math.cos %40 : vector<8x16xf32>
    %47 = vector.broadcast %45 : vector<1x16xf32> to vector<8x16xf32>
    %48 = arith.mulf %47, %46 : vector<8x16xf32>
    %49 = arith.addf %43, %48 : vector<8x16xf32>
    %50 = vector.extract_strided_slice %4 {offsets = [0, 3], sizes = [8, 1], strides = [1, 1]} : vector<8x4xf32> to vector<8x1xf32>
    %51 = vector.broadcast %50 : vector<8x1xf32> to vector<8x16xf32>
    %52 = vector.broadcast %9 : vector<1x16xf32> to vector<8x16xf32>
    %53 = arith.mulf %51, %52 : vector<8x16xf32>
    %54 = math.sin %53 : vector<8x16xf32>
    %55 = vector.broadcast %10 : vector<1x16xf32> to vector<8x16xf32>
    %56 = arith.mulf %55, %54 : vector<8x16xf32>
    %cst_18 = arith.constant 1.000000e+00 : f32
    %57 = vector.broadcast %cst_18 : f32 to vector<1x16xf32>
    %58 = arith.subf %57, %10 : vector<1x16xf32>
    %59 = math.cos %53 : vector<8x16xf32>
    %60 = vector.broadcast %58 : vector<1x16xf32> to vector<8x16xf32>
    %61 = arith.mulf %60, %59 : vector<8x16xf32>
    %62 = arith.addf %56, %61 : vector<8x16xf32>
    %63 = tpu.concatenate %23, %36, %49, %62 in 1 : vector<8x16xf32>, vector<8x16xf32>, vector<8x16xf32>, vector<8x16xf32> -> vector<8x64xf32>
    %c0_19 = arith.constant 0 : index
    %c0_20 = arith.constant 0 : index
    %64 = vector.load %arg9[%c0_19, %c0_20] : memref<64x32xf32, #tpu.memory_space<vmem>>, vector<64x32xf32>
    %cst_21 = arith.constant dense<0.000000e+00> : vector<8x32xf32>
    %65 = tpu.matmul %63, %64, %cst_21 {dimension_numbers = #tpu.dot_dimension_numbers<[1], [0], [0], [1], [0, 0, 1, 1], [], []>} : vector<8x64xf32>, vector<64x32xf32>, vector<8x32xf32> -> vector<8x32xf32>
    %c0_22 = arith.constant 0 : index
    %c0_23 = arith.constant 0 : index
    %66 = vector.load %arg10[%c0_22, %c0_23] : memref<1x32xf32, #tpu.memory_space<vmem>>, vector<1x32xf32>
    %67 = vector.broadcast %66 : vector<1x32xf32> to vector<8x32xf32>
    %68 = arith.addf %65, %67 : vector<8x32xf32>
    %cst_24 = arith.constant 0.000000e+00 : f32
    %69 = vector.broadcast %cst_24 : f32 to vector<8x32xf32>
    %70 = arith.maximumf %68, %69 : vector<8x32xf32>
    %c0_25 = arith.constant 0 : index
    %c0_26 = arith.constant 0 : index
    %71 = vector.load %arg11[%c0_25, %c0_26] : memref<32x32xf32, #tpu.memory_space<vmem>>, vector<32x32xf32>
    %cst_27 = arith.constant dense<0.000000e+00> : vector<8x32xf32>
    %72 = tpu.matmul %70, %71, %cst_27 {dimension_numbers = #tpu.dot_dimension_numbers<[1], [0], [0], [1], [0, 0, 1, 1], [], []>} : vector<8x32xf32>, vector<32x32xf32>, vector<8x32xf32> -> vector<8x32xf32>
    %c0_28 = arith.constant 0 : index
    %c0_29 = arith.constant 0 : index
    %73 = vector.load %arg12[%c0_28, %c0_29] : memref<1x32xf32, #tpu.memory_space<vmem>>, vector<1x32xf32>
    %74 = vector.broadcast %73 : vector<1x32xf32> to vector<8x32xf32>
    %75 = arith.addf %72, %74 : vector<8x32xf32>
    %c0_30 = arith.constant 0 : index
    %c0_31 = arith.constant 0 : index
    %76 = vector.load %arg13[%c0_30, %c0_31] : memref<32x32xf32, #tpu.memory_space<vmem>>, vector<32x32xf32>
    %cst_32 = arith.constant dense<0.000000e+00> : vector<8x32xf32>
    %77 = tpu.matmul %3, %76, %cst_32 {dimension_numbers = #tpu.dot_dimension_numbers<[1], [0], [0], [1], [0, 0, 1, 1], [], []>} : vector<8x32xf32>, vector<32x32xf32>, vector<8x32xf32> -> vector<8x32xf32>
    %c0_33 = arith.constant 0 : index
    %c0_34 = arith.constant 0 : index
    %78 = vector.load %arg14[%c0_33, %c0_34] : memref<1x32xf32, #tpu.memory_space<vmem>>, vector<1x32xf32>
    %79 = vector.broadcast %78 : vector<1x32xf32> to vector<8x32xf32>
    %80 = arith.addf %77, %79 : vector<8x32xf32>
    %cst_35 = arith.constant 0.000000e+00 : f32
    %81 = vector.broadcast %cst_35 : f32 to vector<8x32xf32>
    %82 = arith.maximumf %80, %81 : vector<8x32xf32>
    %c0_36 = arith.constant 0 : index
    %c0_37 = arith.constant 0 : index
    %83 = vector.load %arg15[%c0_36, %c0_37] : memref<32x32xf32, #tpu.memory_space<vmem>>, vector<32x32xf32>
    %cst_38 = arith.constant dense<0.000000e+00> : vector<8x32xf32>
    %84 = tpu.matmul %82, %83, %cst_38 {dimension_numbers = #tpu.dot_dimension_numbers<[1], [0], [0], [1], [0, 0, 1, 1], [], []>} : vector<8x32xf32>, vector<32x32xf32>, vector<8x32xf32> -> vector<8x32xf32>
    %c0_39 = arith.constant 0 : index
    %c0_40 = arith.constant 0 : index
    %85 = vector.load %arg16[%c0_39, %c0_40] : memref<1x32xf32, #tpu.memory_space<vmem>>, vector<1x32xf32>
    %86 = vector.broadcast %85 : vector<1x32xf32> to vector<8x32xf32>
    %87 = arith.addf %84, %86 : vector<8x32xf32>
    %c0_i32_41 = arith.constant 0 : i32
    %88 = arith.cmpi eq, %arg0, %c0_i32_41 : i32
    %89 = arith.extui %88 : i1 to i32
    %90 = arith.sitofp %89 : i32 to f32
    %cst_42 = arith.constant 1.000000e+00 : f32
    %91 = arith.subf %cst_42, %90 : f32
    %92 = vector.broadcast %91 : f32 to vector<8x32xf32>
    %93 = arith.mulf %87, %92 : vector<8x32xf32>
    %94 = vector.broadcast %90 : f32 to vector<8x32xf32>
    %95 = arith.addf %93, %94 : vector<8x32xf32>
    %96 = vector.extract_strided_slice %63 {offsets = [0, 0], sizes = [8, 32], strides = [1, 1]} : vector<8x64xf32> to vector<8x32xf32>
    %97 = arith.mulf %96, %95 : vector<8x32xf32>
    %c0_43 = arith.constant 0 : index
    %c0_44 = arith.constant 0 : index
    %c0_45 = arith.constant 0 : index
    %98 = vector.load %arg23[%c0_43, %c0_44, %c0_45] : memref<1x32x96xf32, #tpu.memory_space<vmem>>, vector<1x32x96xf32>
    %99 = vector.shape_cast %98 : vector<1x32x96xf32> to vector<32x96xf32>
    %cst_46 = arith.constant dense<0.000000e+00> : vector<8x96xf32>
    %100 = tpu.matmul %3, %99, %cst_46 {dimension_numbers = #tpu.dot_dimension_numbers<[1], [0], [0], [1], [0, 0, 1, 1], [], []>} : vector<8x32xf32>, vector<32x96xf32>, vector<8x96xf32> -> vector<8x96xf32>
    %c0_47 = arith.constant 0 : index
    %c0_48 = arith.constant 0 : index
    %c0_49 = arith.constant 0 : index
    %101 = vector.load %arg24[%c0_47, %c0_48, %c0_49] : memref<1x32x96xf32, #tpu.memory_space<vmem>>, vector<1x32x96xf32>
    %102 = vector.shape_cast %101 : vector<1x32x96xf32> to vector<32x96xf32>
    %cst_50 = arith.constant dense<0.000000e+00> : vector<8x96xf32>
    %103 = tpu.matmul %5, %102, %cst_50 {dimension_numbers = #tpu.dot_dimension_numbers<[1], [0], [0], [1], [0, 0, 1, 1], [], []>} : vector<8x32xf32>, vector<32x96xf32>, vector<8x96xf32> -> vector<8x96xf32>
    %104 = arith.addf %100, %103 : vector<8x96xf32>
    %c0_51 = arith.constant 0 : index
    %c0_52 = arith.constant 0 : index
    %c0_53 = arith.constant 0 : index
    %105 = vector.load %arg25[%c0_51, %c0_52, %c0_53] : memref<1x32x96xf32, #tpu.memory_space<vmem>>, vector<1x32x96xf32>
    %106 = vector.shape_cast %105 : vector<1x32x96xf32> to vector<32x96xf32>
    %cst_54 = arith.constant dense<0.000000e+00> : vector<8x96xf32>
    %107 = tpu.matmul %75, %106, %cst_54 {dimension_numbers = #tpu.dot_dimension_numbers<[1], [0], [0], [1], [0, 0, 1, 1], [], []>} : vector<8x32xf32>, vector<32x96xf32>, vector<8x96xf32> -> vector<8x96xf32>
    %108 = arith.addf %104, %107 : vector<8x96xf32>
    %c0_55 = arith.constant 0 : index
    %c0_56 = arith.constant 0 : index
    %c0_57 = arith.constant 0 : index
    %109 = vector.load %arg26[%c0_55, %c0_56, %c0_57] : memref<1x1x96xf32, #tpu.memory_space<vmem>>, vector<1x1x96xf32>
    %110 = vector.shape_cast %109 : vector<1x1x96xf32> to vector<1x96xf32>
    %111 = vector.broadcast %110 : vector<1x96xf32> to vector<8x96xf32>
    %112 = arith.addf %108, %111 : vector<8x96xf32>
    %113 = vector.extract_strided_slice %112 {offsets = [0, 0], sizes = [8, 32], strides = [1, 1]} : vector<8x96xf32> to vector<8x32xf32>
    %114 = vector.extract_strided_slice %112 {offsets = [0, 32], sizes = [8, 32], strides = [1, 1]} : vector<8x96xf32> to vector<8x32xf32>
    %115 = vector.extract_strided_slice %112 {offsets = [0, 64], sizes = [8, 32], strides = [1, 1]} : vector<8x96xf32> to vector<8x32xf32>
    %c0_58 = arith.constant 0 : index
    %c0_59 = arith.constant 0 : index
    %c0_60 = arith.constant 0 : index
    %116 = vector.load %arg27[%c0_58, %c0_59, %c0_60] : memref<1x32x32xf32, #tpu.memory_space<vmem>>, vector<1x32x32xf32>
    %117 = vector.shape_cast %116 : vector<1x32x32xf32> to vector<32x32xf32>
    %cst_61 = arith.constant 0.000000e+00 : f32
    %118 = vector.broadcast %cst_61 : f32 to vector<8x32xf32>
    %119 = vector.extract_strided_slice %113 {offsets = [0, 0], sizes = [8, 8], strides = [1, 1]} : vector<8x32xf32> to vector<8x8xf32>
    %cst_62 = arith.constant 0.353553385 : f32
    %120 = vector.broadcast %cst_62 : f32 to vector<8x8xf32>
    %121 = arith.mulf %119, %120 : vector<8x8xf32>
    %122 = vector.extract_strided_slice %114 {offsets = [0, 0], sizes = [8, 8], strides = [1, 1]} : vector<8x32xf32> to vector<8x8xf32>
    %cst_63 = arith.constant dense<0.000000e+00> : vector<8x8xf32>
    %123 = tpu.matmul %121, %122, %cst_63 {dimension_numbers = #tpu.dot_dimension_numbers<[1], [1], [0], [0], [0, 0, 1, 0], [], []>} : vector<8x8xf32>, vector<8x8xf32>, vector<8x8xf32> -> vector<8x8xf32>
    %cst_64 = arith.constant dense<0xFF800000> : vector<8xf32>
    %124 = vector.multi_reduction <maximumf>, %123, %cst_64 [1] : vector<8x8xf32> to vector<8xf32>
    %125 = vector.shape_cast %124 : vector<8xf32> to vector<8x1xf32>
    %126 = vector.broadcast %125 : vector<8x1xf32> to vector<8x8xf32>
    %127 = arith.subf %123, %126 : vector<8x8xf32>
    %128 = math.exp %127 : vector<8x8xf32>
    %cst_65 = arith.constant dense<0.000000e+00> : vector<8xf32>
    %129 = vector.multi_reduction <add>, %128, %cst_65 [1] : vector<8x8xf32> to vector<8xf32>
    %130 = vector.shape_cast %129 : vector<8xf32> to vector<8x1xf32>
    %131 = tpu.reciprocal %130 {approx = true} : vector<8x1xf32> -> vector<8x1xf32>
    %132 = vector.broadcast %131 : vector<8x1xf32> to vector<8x8xf32>
    %133 = arith.mulf %128, %132 : vector<8x8xf32>
    %134 = vector.extract_strided_slice %115 {offsets = [0, 0], sizes = [8, 8], strides = [1, 1]} : vector<8x32xf32> to vector<8x8xf32>
    %cst_66 = arith.constant dense<0.000000e+00> : vector<8x8xf32>
    %135 = tpu.matmul %133, %134, %cst_66 {dimension_numbers = #tpu.dot_dimension_numbers<[1], [0], [0], [1], [0, 0, 1, 1], [], []>} : vector<8x8xf32>, vector<8x8xf32>, vector<8x8xf32> -> vector<8x8xf32>
    %136 = vector.extract_strided_slice %117 {offsets = [0, 0], sizes = [8, 32], strides = [1, 1]} : vector<32x32xf32> to vector<8x32xf32>
    %cst_67 = arith.constant dense<0.000000e+00> : vector<8x32xf32>
    %137 = tpu.matmul %135, %136, %cst_67 {dimension_numbers = #tpu.dot_dimension_numbers<[1], [0], [0], [1], [0, 0, 1, 1], [], []>} : vector<8x8xf32>, vector<8x32xf32>, vector<8x32xf32> -> vector<8x32xf32>
    %138 = arith.addf %118, %137 : vector<8x32xf32>
    %139 = vector.extract_strided_slice %113 {offsets = [0, 8], sizes = [8, 8], strides = [1, 1]} : vector<8x32xf32> to vector<8x8xf32>
    %cst_68 = arith.constant 0.353553385 : f32
    %140 = vector.broadcast %cst_68 : f32 to vector<8x8xf32>
    %141 = arith.mulf %139, %140 : vector<8x8xf32>
    %142 = vector.extract_strided_slice %114 {offsets = [0, 8], sizes = [8, 8], strides = [1, 1]} : vector<8x32xf32> to vector<8x8xf32>
    %cst_69 = arith.constant dense<0.000000e+00> : vector<8x8xf32>
    %143 = tpu.matmul %141, %142, %cst_69 {dimension_numbers = #tpu.dot_dimension_numbers<[1], [1], [0], [0], [0, 0, 1, 0], [], []>} : vector<8x8xf32>, vector<8x8xf32>, vector<8x8xf32> -> vector<8x8xf32>
    %cst_70 = arith.constant dense<0xFF800000> : vector<8xf32>
    %144 = vector.multi_reduction <maximumf>, %143, %cst_70 [1] : vector<8x8xf32> to vector<8xf32>
    %145 = vector.shape_cast %144 : vector<8xf32> to vector<8x1xf32>
    %146 = vector.broadcast %145 : vector<8x1xf32> to vector<8x8xf32>
    %147 = arith.subf %143, %146 : vector<8x8xf32>
    %148 = math.exp %147 : vector<8x8xf32>
    %cst_71 = arith.constant dense<0.000000e+00> : vector<8xf32>
    %149 = vector.multi_reduction <add>, %148, %cst_71 [1] : vector<8x8xf32> to vector<8xf32>
    %150 = vector.shape_cast %149 : vector<8xf32> to vector<8x1xf32>
    %151 = tpu.reciprocal %150 {approx = true} : vector<8x1xf32> -> vector<8x1xf32>
    %152 = vector.broadcast %151 : vector<8x1xf32> to vector<8x8xf32>
    %153 = arith.mulf %148, %152 : vector<8x8xf32>
    %154 = vector.extract_strided_slice %115 {offsets = [0, 8], sizes = [8, 8], strides = [1, 1]} : vector<8x32xf32> to vector<8x8xf32>
    %cst_72 = arith.constant dense<0.000000e+00> : vector<8x8xf32>
    %155 = tpu.matmul %153, %154, %cst_72 {dimension_numbers = #tpu.dot_dimension_numbers<[1], [0], [0], [1], [0, 0, 1, 1], [], []>} : vector<8x8xf32>, vector<8x8xf32>, vector<8x8xf32> -> vector<8x8xf32>
    %156 = vector.extract_strided_slice %117 {offsets = [8, 0], sizes = [8, 32], strides = [1, 1]} : vector<32x32xf32> to vector<8x32xf32>
    %cst_73 = arith.constant dense<0.000000e+00> : vector<8x32xf32>
    %157 = tpu.matmul %155, %156, %cst_73 {dimension_numbers = #tpu.dot_dimension_numbers<[1], [0], [0], [1], [0, 0, 1, 1], [], []>} : vector<8x8xf32>, vector<8x32xf32>, vector<8x32xf32> -> vector<8x32xf32>
    %158 = arith.addf %138, %157 : vector<8x32xf32>
    %159 = vector.extract_strided_slice %113 {offsets = [0, 16], sizes = [8, 8], strides = [1, 1]} : vector<8x32xf32> to vector<8x8xf32>
    %cst_74 = arith.constant 0.353553385 : f32
    %160 = vector.broadcast %cst_74 : f32 to vector<8x8xf32>
    %161 = arith.mulf %159, %160 : vector<8x8xf32>
    %162 = vector.extract_strided_slice %114 {offsets = [0, 16], sizes = [8, 8], strides = [1, 1]} : vector<8x32xf32> to vector<8x8xf32>
    %cst_75 = arith.constant dense<0.000000e+00> : vector<8x8xf32>
    %163 = tpu.matmul %161, %162, %cst_75 {dimension_numbers = #tpu.dot_dimension_numbers<[1], [1], [0], [0], [0, 0, 1, 0], [], []>} : vector<8x8xf32>, vector<8x8xf32>, vector<8x8xf32> -> vector<8x8xf32>
    %cst_76 = arith.constant dense<0xFF800000> : vector<8xf32>
    %164 = vector.multi_reduction <maximumf>, %163, %cst_76 [1] : vector<8x8xf32> to vector<8xf32>
    %165 = vector.shape_cast %164 : vector<8xf32> to vector<8x1xf32>
    %166 = vector.broadcast %165 : vector<8x1xf32> to vector<8x8xf32>
    %167 = arith.subf %163, %166 : vector<8x8xf32>
    %168 = math.exp %167 : vector<8x8xf32>
    %cst_77 = arith.constant dense<0.000000e+00> : vector<8xf32>
    %169 = vector.multi_reduction <add>, %168, %cst_77 [1] : vector<8x8xf32> to vector<8xf32>
    %170 = vector.shape_cast %169 : vector<8xf32> to vector<8x1xf32>
    %171 = tpu.reciprocal %170 {approx = true} : vector<8x1xf32> -> vector<8x1xf32>
    %172 = vector.broadcast %171 : vector<8x1xf32> to vector<8x8xf32>
    %173 = arith.mulf %168, %172 : vector<8x8xf32>
    %174 = vector.extract_strided_slice %115 {offsets = [0, 16], sizes = [8, 8], strides = [1, 1]} : vector<8x32xf32> to vector<8x8xf32>
    %cst_78 = arith.constant dense<0.000000e+00> : vector<8x8xf32>
    %175 = tpu.matmul %173, %174, %cst_78 {dimension_numbers = #tpu.dot_dimension_numbers<[1], [0], [0], [1], [0, 0, 1, 1], [], []>} : vector<8x8xf32>, vector<8x8xf32>, vector<8x8xf32> -> vector<8x8xf32>
    %176 = vector.extract_strided_slice %117 {offsets = [16, 0], sizes = [8, 32], strides = [1, 1]} : vector<32x32xf32> to vector<8x32xf32>
    %cst_79 = arith.constant dense<0.000000e+00> : vector<8x32xf32>
    %177 = tpu.matmul %175, %176, %cst_79 {dimension_numbers = #tpu.dot_dimension_numbers<[1], [0], [0], [1], [0, 0, 1, 1], [], []>} : vector<8x8xf32>, vector<8x32xf32>, vector<8x32xf32> -> vector<8x32xf32>
    %178 = arith.addf %158, %177 : vector<8x32xf32>
    %179 = vector.extract_strided_slice %113 {offsets = [0, 24], sizes = [8, 8], strides = [1, 1]} : vector<8x32xf32> to vector<8x8xf32>
    %cst_80 = arith.constant 0.353553385 : f32
    %180 = vector.broadcast %cst_80 : f32 to vector<8x8xf32>
    %181 = arith.mulf %179, %180 : vector<8x8xf32>
    %182 = vector.extract_strided_slice %114 {offsets = [0, 24], sizes = [8, 8], strides = [1, 1]} : vector<8x32xf32> to vector<8x8xf32>
    %cst_81 = arith.constant dense<0.000000e+00> : vector<8x8xf32>
    %183 = tpu.matmul %181, %182, %cst_81 {dimension_numbers = #tpu.dot_dimension_numbers<[1], [1], [0], [0], [0, 0, 1, 0], [], []>} : vector<8x8xf32>, vector<8x8xf32>, vector<8x8xf32> -> vector<8x8xf32>
    %cst_82 = arith.constant dense<0xFF800000> : vector<8xf32>
    %184 = vector.multi_reduction <maximumf>, %183, %cst_82 [1] : vector<8x8xf32> to vector<8xf32>
    %185 = vector.shape_cast %184 : vector<8xf32> to vector<8x1xf32>
    %186 = vector.broadcast %185 : vector<8x1xf32> to vector<8x8xf32>
    %187 = arith.subf %183, %186 : vector<8x8xf32>
    %188 = math.exp %187 : vector<8x8xf32>
    %cst_83 = arith.constant dense<0.000000e+00> : vector<8xf32>
    %189 = vector.multi_reduction <add>, %188, %cst_83 [1] : vector<8x8xf32> to vector<8xf32>
    %190 = vector.shape_cast %189 : vector<8xf32> to vector<8x1xf32>
    %191 = tpu.reciprocal %190 {approx = true} : vector<8x1xf32> -> vector<8x1xf32>
    %192 = vector.broadcast %191 : vector<8x1xf32> to vector<8x8xf32>
    %193 = arith.mulf %188, %192 : vector<8x8xf32>
    %194 = vector.extract_strided_slice %115 {offsets = [0, 24], sizes = [8, 8], strides = [1, 1]} : vector<8x32xf32> to vector<8x8xf32>
    %cst_84 = arith.constant dense<0.000000e+00> : vector<8x8xf32>
    %195 = tpu.matmul %193, %194, %cst_84 {dimension_numbers = #tpu.dot_dimension_numbers<[1], [0], [0], [1], [0, 0, 1, 1], [], []>} : vector<8x8xf32>, vector<8x8xf32>, vector<8x8xf32> -> vector<8x8xf32>
    %196 = vector.extract_strided_slice %117 {offsets = [24, 0], sizes = [8, 32], strides = [1, 1]} : vector<32x32xf32> to vector<8x32xf32>
    %cst_85 = arith.constant dense<0.000000e+00> : vector<8x32xf32>
    %197 = tpu.matmul %195, %196, %cst_85 {dimension_numbers = #tpu.dot_dimension_numbers<[1], [0], [0], [1], [0, 0, 1, 1], [], []>} : vector<8x8xf32>, vector<8x32xf32>, vector<8x32xf32> -> vector<8x32xf32>
    %198 = arith.addf %178, %197 : vector<8x32xf32>
    %199 = arith.addf %3, %198 : vector<8x32xf32>
    %c0_86 = arith.constant 0 : index
    %c0_87 = arith.constant 0 : index
    %c0_88 = arith.constant 0 : index
    %200 = vector.load %arg28[%c0_86, %c0_87, %c0_88] : memref<1x1x32xf32, #tpu.memory_space<vmem>>, vector<1x1x32xf32>
    %201 = vector.shape_cast %200 : vector<1x1x32xf32> to vector<1x32xf32>
    %202 = vector.broadcast %201 : vector<1x32xf32> to vector<8x32xf32>
    %203 = arith.addf %199, %202 : vector<8x32xf32>
    %cst_89 = arith.constant dense<0.000000e+00> : vector<8xf32>
    %204 = vector.multi_reduction <add>, %203, %cst_89 [1] : vector<8x32xf32> to vector<8xf32>
    %205 = vector.shape_cast %204 : vector<8xf32> to vector<8x1xf32>
    %cst_90 = arith.constant 3.200000e+01 : f32
    %206 = vector.broadcast %cst_90 : f32 to vector<8x1xf32>
    %207 = arith.divf %205, %206 : vector<8x1xf32>
    %208 = vector.broadcast %207 : vector<8x1xf32> to vector<8x32xf32>
    %209 = arith.subf %203, %208 : vector<8x32xf32>
    %210 = arith.mulf %209, %209 : vector<8x32xf32>
    %cst_91 = arith.constant dense<0.000000e+00> : vector<8xf32>
    %211 = vector.multi_reduction <add>, %210, %cst_91 [1] : vector<8x32xf32> to vector<8xf32>
    %212 = vector.shape_cast %211 : vector<8xf32> to vector<8x1xf32>
    %cst_92 = arith.constant 3.200000e+01 : f32
    %213 = vector.broadcast %cst_92 : f32 to vector<8x1xf32>
    %214 = arith.divf %212, %213 : vector<8x1xf32>
    %cst_93 = arith.constant 9.99999974E-6 : f32
    %215 = vector.broadcast %cst_93 : f32 to vector<8x1xf32>
    %216 = arith.addf %214, %215 : vector<8x1xf32>
    %217 = math.rsqrt %216 : vector<8x1xf32>
    %218 = vector.broadcast %217 : vector<8x1xf32> to vector<8x32xf32>
    %219 = arith.mulf %209, %218 : vector<8x32xf32>
    %c0_94 = arith.constant 0 : index
    %c0_95 = arith.constant 0 : index
    %c0_96 = arith.constant 0 : index
    %220 = vector.load %arg29[%c0_94, %c0_95, %c0_96] : memref<1x1x32xf32, #tpu.memory_space<vmem>>, vector<1x1x32xf32>
    %221 = vector.shape_cast %220 : vector<1x1x32xf32> to vector<1x32xf32>
    %222 = vector.broadcast %221 : vector<1x32xf32> to vector<8x32xf32>
    %223 = arith.mulf %219, %222 : vector<8x32xf32>
    %c0_97 = arith.constant 0 : index
    %c0_98 = arith.constant 0 : index
    %c0_99 = arith.constant 0 : index
    %224 = vector.load %arg30[%c0_97, %c0_98, %c0_99] : memref<1x1x32xf32, #tpu.memory_space<vmem>>, vector<1x1x32xf32>
    %225 = vector.shape_cast %224 : vector<1x1x32xf32> to vector<1x32xf32>
    %226 = vector.broadcast %225 : vector<1x32xf32> to vector<8x32xf32>
    %227 = arith.addf %223, %226 : vector<8x32xf32>
    %c0_100 = arith.constant 0 : index
    %c0_101 = arith.constant 0 : index
    %c0_102 = arith.constant 0 : index
    %228 = vector.load %arg31[%c0_100, %c0_101, %c0_102] : memref<1x32x32xf32, #tpu.memory_space<vmem>>, vector<1x32x32xf32>
    %229 = vector.shape_cast %228 : vector<1x32x32xf32> to vector<32x32xf32>
    %cst_103 = arith.constant dense<0.000000e+00> : vector<8x32xf32>
    %230 = tpu.matmul %227, %229, %cst_103 {dimension_numbers = #tpu.dot_dimension_numbers<[1], [0], [0], [1], [0, 0, 1, 1], [], []>} : vector<8x32xf32>, vector<32x32xf32>, vector<8x32xf32> -> vector<8x32xf32>
    %c0_104 = arith.constant 0 : index
    %c0_105 = arith.constant 0 : index
    %c0_106 = arith.constant 0 : index
    %231 = vector.load %arg32[%c0_104, %c0_105, %c0_106] : memref<1x32x32xf32, #tpu.memory_space<vmem>>, vector<1x32x32xf32>
    %232 = vector.shape_cast %231 : vector<1x32x32xf32> to vector<32x32xf32>
    %cst_107 = arith.constant dense<0.000000e+00> : vector<8x32xf32>
    %233 = tpu.matmul %97, %232, %cst_107 {dimension_numbers = #tpu.dot_dimension_numbers<[1], [0], [0], [1], [0, 0, 1, 1], [], []>} : vector<8x32xf32>, vector<32x32xf32>, vector<8x32xf32> -> vector<8x32xf32>
    %234 = arith.addf %230, %233 : vector<8x32xf32>
    %c0_108 = arith.constant 0 : index
    %c0_109 = arith.constant 0 : index
    %c0_110 = arith.constant 0 : index
    %235 = vector.load %arg33[%c0_108, %c0_109, %c0_110] : memref<1x32x32xf32, #tpu.memory_space<vmem>>, vector<1x32x32xf32>
    %236 = vector.shape_cast %235 : vector<1x32x32xf32> to vector<32x32xf32>
    %cst_111 = arith.constant dense<0.000000e+00> : vector<8x32xf32>
    %237 = tpu.matmul %5, %236, %cst_111 {dimension_numbers = #tpu.dot_dimension_numbers<[1], [0], [0], [1], [0, 0, 1, 1], [], []>} : vector<8x32xf32>, vector<32x32xf32>, vector<8x32xf32> -> vector<8x32xf32>
    %238 = arith.addf %234, %237 : vector<8x32xf32>
    %c0_112 = arith.constant 0 : index
    %c0_113 = arith.constant 0 : index
    %c0_114 = arith.constant 0 : index
    %239 = vector.load %arg34[%c0_112, %c0_113, %c0_114] : memref<1x32x32xf32, #tpu.memory_space<vmem>>, vector<1x32x32xf32>
    %240 = vector.shape_cast %239 : vector<1x32x32xf32> to vector<32x32xf32>
    %cst_115 = arith.constant dense<0.000000e+00> : vector<8x32xf32>
    %241 = tpu.matmul %75, %240, %cst_115 {dimension_numbers = #tpu.dot_dimension_numbers<[1], [0], [0], [1], [0, 0, 1, 1], [], []>} : vector<8x32xf32>, vector<32x32xf32>, vector<8x32xf32> -> vector<8x32xf32>
    %242 = arith.addf %238, %241 : vector<8x32xf32>
    %c0_116 = arith.constant 0 : index
    %c0_117 = arith.constant 0 : index
    %c0_118 = arith.constant 0 : index
    %243 = vector.load %arg35[%c0_116, %c0_117, %c0_118] : memref<1x1x32xf32, #tpu.memory_space<vmem>>, vector<1x1x32xf32>
    %244 = vector.shape_cast %243 : vector<1x1x32xf32> to vector<1x32xf32>
    %245 = vector.broadcast %244 : vector<1x32xf32> to vector<8x32xf32>
    %246 = arith.addf %242, %245 : vector<8x32xf32>
    %c0_119 = arith.constant 0 : index
    %c0_120 = arith.constant 0 : index
    %c0_121 = arith.constant 0 : index
    %247 = vector.load %arg36[%c0_119, %c0_120, %c0_121] : memref<1x32x64xf32, #tpu.memory_space<vmem>>, vector<1x32x64xf32>
    %248 = vector.shape_cast %247 : vector<1x32x64xf32> to vector<32x64xf32>
    %cst_122 = arith.constant dense<0.000000e+00> : vector<128x64xf32>
    %249 = tpu.matmul %6, %248, %cst_122 {dimension_numbers = #tpu.dot_dimension_numbers<[1], [0], [0], [1], [0, 0, 1, 1], [], []>} : vector<128x32xf32>, vector<32x64xf32>, vector<128x64xf32> -> vector<128x64xf32>
    %c0_123 = arith.constant 0 : index
    %c0_124 = arith.constant 0 : index
    %c0_125 = arith.constant 0 : index
    %250 = vector.load %arg37[%c0_123, %c0_124, %c0_125] : memref<1x32x64xf32, #tpu.memory_space<vmem>>, vector<1x32x64xf32>
    %251 = vector.shape_cast %250 : vector<1x32x64xf32> to vector<32x64xf32>
    %cst_126 = arith.constant dense<0.000000e+00> : vector<128x64xf32>
    %252 = tpu.matmul %7, %251, %cst_126 {dimension_numbers = #tpu.dot_dimension_numbers<[1], [0], [0], [1], [0, 0, 1, 1], [], []>} : vector<128x32xf32>, vector<32x64xf32>, vector<128x64xf32> -> vector<128x64xf32>
    %253 = arith.addf %249, %252 : vector<128x64xf32>
    %c0_127 = arith.constant 0 : index
    %c0_128 = arith.constant 0 : index
    %c0_129 = arith.constant 0 : index
    %254 = vector.load %arg38[%c0_127, %c0_128, %c0_129] : memref<1x1x64xf32, #tpu.memory_space<vmem>>, vector<1x1x64xf32>
    %255 = vector.shape_cast %254 : vector<1x1x64xf32> to vector<1x64xf32>
    %256 = vector.broadcast %255 : vector<1x64xf32> to vector<128x64xf32>
    %257 = arith.addf %253, %256 : vector<128x64xf32>
    %258 = vector.extract_strided_slice %257 {offsets = [0, 0], sizes = [128, 32], strides = [1, 1]} : vector<128x64xf32> to vector<128x32xf32>
    %259 = vector.shape_cast %258 : vector<128x32xf32> to vector<8x16x32xf32>
    %260 = vector.extract_strided_slice %257 {offsets = [0, 32], sizes = [128, 32], strides = [1, 1]} : vector<128x64xf32> to vector<128x32xf32>
    %261 = vector.shape_cast %260 : vector<128x32xf32> to vector<8x16x32xf32>
    %cst_130 = arith.constant 0.353553385 : f32
    %262 = vector.broadcast %cst_130 : f32 to vector<8x32xf32>
    %263 = arith.mulf %246, %262 : vector<8x32xf32>
    %264 = vector.shape_cast %263 : vector<8x32xf32> to vector<8x1x32xf32>
    %265 = vector.broadcast %264 : vector<8x1x32xf32> to vector<8x16x32xf32>
    %266 = arith.mulf %265, %259 : vector<8x16x32xf32>
    %267 = vector.shape_cast %266 : vector<8x16x32xf32> to vector<128x32xf32>
    %cst_131 = arith.constant dense<0.000000e+00> : vector<128x4xf32>
    %268 = tpu.matmul %267, %8, %cst_131 {dimension_numbers = #tpu.dot_dimension_numbers<[1], [0], [0], [1], [0, 0, 1, 1], [], []>} : vector<128x32xf32>, vector<32x4xf32>, vector<128x4xf32> -> vector<128x4xf32>
    %269 = vector.shape_cast %268 : vector<128x4xf32> to vector<8x16x4xf32>
    %cst_132 = arith.constant dense<0xFF800000> : vector<8x4xf32>
    %270 = vector.multi_reduction <maximumf>, %269, %cst_132 [1] : vector<8x16x4xf32> to vector<8x4xf32>
    %271 = vector.shape_cast %270 : vector<8x4xf32> to vector<8x1x4xf32>
    %272 = vector.broadcast %271 : vector<8x1x4xf32> to vector<8x16x4xf32>
    %273 = arith.subf %269, %272 : vector<8x16x4xf32>
    %274 = math.exp %273 : vector<8x16x4xf32>
    %cst_133 = arith.constant dense<0.000000e+00> : vector<8x4xf32>
    %275 = vector.multi_reduction <add>, %274, %cst_133 [1] : vector<8x16x4xf32> to vector<8x4xf32>
    %276 = vector.shape_cast %275 : vector<8x4xf32> to vector<8x1x4xf32>
    %277 = tpu.reciprocal %276 {approx = true} : vector<8x1x4xf32> -> vector<8x1x4xf32>
    %278 = vector.broadcast %277 : vector<8x1x4xf32> to vector<8x16x4xf32>
    %279 = arith.mulf %274, %278 : vector<8x16x4xf32>
    %280 = vector.shape_cast %279 : vector<8x16x4xf32> to vector<128x4xf32>
    %cst_134 = arith.constant dense<0.000000e+00> : vector<128x32xf32>
    %281 = tpu.matmul %280, %8, %cst_134 {dimension_numbers = #tpu.dot_dimension_numbers<[1], [1], [0], [0], [0, 0, 1, 0], [], []>} : vector<128x4xf32>, vector<32x4xf32>, vector<128x32xf32> -> vector<128x32xf32>
    %282 = vector.shape_cast %281 : vector<128x32xf32> to vector<8x16x32xf32>
    %283 = arith.mulf %282, %261 : vector<8x16x32xf32>
    %cst_135 = arith.constant dense<0.000000e+00> : vector<8x32xf32>
    %284 = vector.multi_reduction <add>, %283, %cst_135 [1] : vector<8x16x32xf32> to vector<8x32xf32>
    %c0_136 = arith.constant 0 : index
    %c0_137 = arith.constant 0 : index
    %c0_138 = arith.constant 0 : index
    %285 = vector.load %arg39[%c0_136, %c0_137, %c0_138] : memref<1x32x32xf32, #tpu.memory_space<vmem>>, vector<1x32x32xf32>
    %286 = vector.shape_cast %285 : vector<1x32x32xf32> to vector<32x32xf32>
    %cst_139 = arith.constant dense<0.000000e+00> : vector<8x32xf32>
    %287 = tpu.matmul %284, %286, %cst_139 {dimension_numbers = #tpu.dot_dimension_numbers<[1], [0], [0], [1], [0, 0, 1, 1], [], []>} : vector<8x32xf32>, vector<32x32xf32>, vector<8x32xf32> -> vector<8x32xf32>
    %c0_140 = arith.constant 0 : index
    %c0_141 = arith.constant 0 : index
    %c0_142 = arith.constant 0 : index
    %288 = vector.load %arg40[%c0_140, %c0_141, %c0_142] : memref<1x1x32xf32, #tpu.memory_space<vmem>>, vector<1x1x32xf32>
    %289 = vector.shape_cast %288 : vector<1x1x32xf32> to vector<1x32xf32>
    %290 = vector.broadcast %289 : vector<1x32xf32> to vector<8x32xf32>
    %291 = arith.addf %287, %290 : vector<8x32xf32>
    %292 = arith.addf %227, %291 : vector<8x32xf32>
    %cst_143 = arith.constant dense<0.000000e+00> : vector<8xf32>
    %293 = vector.multi_reduction <add>, %292, %cst_143 [1] : vector<8x32xf32> to vector<8xf32>
    %294 = vector.shape_cast %293 : vector<8xf32> to vector<8x1xf32>
    %cst_144 = arith.constant 3.200000e+01 : f32
    %295 = vector.broadcast %cst_144 : f32 to vector<8x1xf32>
    %296 = arith.divf %294, %295 : vector<8x1xf32>
    %297 = vector.broadcast %296 : vector<8x1xf32> to vector<8x32xf32>
    %298 = arith.subf %292, %297 : vector<8x32xf32>
    %299 = arith.mulf %298, %298 : vector<8x32xf32>
    %cst_145 = arith.constant dense<0.000000e+00> : vector<8xf32>
    %300 = vector.multi_reduction <add>, %299, %cst_145 [1] : vector<8x32xf32> to vector<8xf32>
    %301 = vector.shape_cast %300 : vector<8xf32> to vector<8x1xf32>
    %cst_146 = arith.constant 3.200000e+01 : f32
    %302 = vector.broadcast %cst_146 : f32 to vector<8x1xf32>
    %303 = arith.divf %301, %302 : vector<8x1xf32>
    %cst_147 = arith.constant 9.99999974E-6 : f32
    %304 = vector.broadcast %cst_147 : f32 to vector<8x1xf32>
    %305 = arith.addf %303, %304 : vector<8x1xf32>
    %306 = math.rsqrt %305 : vector<8x1xf32>
    %307 = vector.broadcast %306 : vector<8x1xf32> to vector<8x32xf32>
    %308 = arith.mulf %298, %307 : vector<8x32xf32>
    %c0_148 = arith.constant 0 : index
    %c0_149 = arith.constant 0 : index
    %c0_150 = arith.constant 0 : index
    %309 = vector.load %arg41[%c0_148, %c0_149, %c0_150] : memref<1x1x32xf32, #tpu.memory_space<vmem>>, vector<1x1x32xf32>
    %310 = vector.shape_cast %309 : vector<1x1x32xf32> to vector<1x32xf32>
    %311 = vector.broadcast %310 : vector<1x32xf32> to vector<8x32xf32>
    %312 = arith.mulf %308, %311 : vector<8x32xf32>
    %c0_151 = arith.constant 0 : index
    %c0_152 = arith.constant 0 : index
    %c0_153 = arith.constant 0 : index
    %313 = vector.load %arg42[%c0_151, %c0_152, %c0_153] : memref<1x1x32xf32, #tpu.memory_space<vmem>>, vector<1x1x32xf32>
    %314 = vector.shape_cast %313 : vector<1x1x32xf32> to vector<1x32xf32>
    %315 = vector.broadcast %314 : vector<1x32xf32> to vector<8x32xf32>
    %316 = arith.addf %312, %315 : vector<8x32xf32>
    %c0_154 = arith.constant 0 : index
    %c0_155 = arith.constant 0 : index
    %c0_156 = arith.constant 0 : index
    %317 = vector.load %arg43[%c0_154, %c0_155, %c0_156] : memref<1x32x64xf32, #tpu.memory_space<vmem>>, vector<1x32x64xf32>
    %318 = vector.shape_cast %317 : vector<1x32x64xf32> to vector<32x64xf32>
    %cst_157 = arith.constant dense<0.000000e+00> : vector<8x64xf32>
    %319 = tpu.matmul %316, %318, %cst_157 {dimension_numbers = #tpu.dot_dimension_numbers<[1], [0], [0], [1], [0, 0, 1, 1], [], []>} : vector<8x32xf32>, vector<32x64xf32>, vector<8x64xf32> -> vector<8x64xf32>
    %c0_158 = arith.constant 0 : index
    %c0_159 = arith.constant 0 : index
    %c0_160 = arith.constant 0 : index
    %320 = vector.load %arg44[%c0_158, %c0_159, %c0_160] : memref<1x1x64xf32, #tpu.memory_space<vmem>>, vector<1x1x64xf32>
    %321 = vector.shape_cast %320 : vector<1x1x64xf32> to vector<1x64xf32>
    %322 = vector.broadcast %321 : vector<1x64xf32> to vector<8x64xf32>
    %323 = arith.addf %319, %322 : vector<8x64xf32>
    %cst_161 = arith.constant 0.000000e+00 : f32
    %324 = vector.broadcast %cst_161 : f32 to vector<8x64xf32>
    %325 = arith.maximumf %323, %324 : vector<8x64xf32>
    %c0_162 = arith.constant 0 : index
    %c0_163 = arith.constant 0 : index
    %c0_164 = arith.constant 0 : index
    %326 = vector.load %arg45[%c0_162, %c0_163, %c0_164] : memref<1x64x32xf32, #tpu.memory_space<vmem>>, vector<1x64x32xf32>
    %327 = vector.shape_cast %326 : vector<1x64x32xf32> to vector<64x32xf32>
    %cst_165 = arith.constant dense<0.000000e+00> : vector<8x32xf32>
    %328 = tpu.matmul %325, %327, %cst_165 {dimension_numbers = #tpu.dot_dimension_numbers<[1], [0], [0], [1], [0, 0, 1, 1], [], []>} : vector<8x64xf32>, vector<64x32xf32>, vector<8x32xf32> -> vector<8x32xf32>
    %c0_166 = arith.constant 0 : index
    %c0_167 = arith.constant 0 : index
    %c0_168 = arith.constant 0 : index
    %329 = vector.load %arg46[%c0_166, %c0_167, %c0_168] : memref<1x1x32xf32, #tpu.memory_space<vmem>>, vector<1x1x32xf32>
    %330 = vector.shape_cast %329 : vector<1x1x32xf32> to vector<1x32xf32>
    %331 = vector.broadcast %330 : vector<1x32xf32> to vector<8x32xf32>
    %332 = arith.addf %328, %331 : vector<8x32xf32>
    %333 = arith.addf %316, %332 : vector<8x32xf32>
    %cst_169 = arith.constant dense<0.000000e+00> : vector<8xf32>
    %334 = vector.multi_reduction <add>, %333, %cst_169 [1] : vector<8x32xf32> to vector<8xf32>
    %335 = vector.shape_cast %334 : vector<8xf32> to vector<8x1xf32>
    %cst_170 = arith.constant 3.200000e+01 : f32
    %336 = vector.broadcast %cst_170 : f32 to vector<8x1xf32>
    %337 = arith.divf %335, %336 : vector<8x1xf32>
    %338 = vector.broadcast %337 : vector<8x1xf32> to vector<8x32xf32>
    %339 = arith.subf %333, %338 : vector<8x32xf32>
    %340 = arith.mulf %339, %339 : vector<8x32xf32>
    %cst_171 = arith.constant dense<0.000000e+00> : vector<8xf32>
    %341 = vector.multi_reduction <add>, %340, %cst_171 [1] : vector<8x32xf32> to vector<8xf32>
    %342 = vector.shape_cast %341 : vector<8xf32> to vector<8x1xf32>
    %cst_172 = arith.constant 3.200000e+01 : f32
    %343 = vector.broadcast %cst_172 : f32 to vector<8x1xf32>
    %344 = arith.divf %342, %343 : vector<8x1xf32>
    %cst_173 = arith.constant 9.99999974E-6 : f32
    %345 = vector.broadcast %cst_173 : f32 to vector<8x1xf32>
    %346 = arith.addf %344, %345 : vector<8x1xf32>
    %347 = math.rsqrt %346 : vector<8x1xf32>
    %348 = vector.broadcast %347 : vector<8x1xf32> to vector<8x32xf32>
    %349 = arith.mulf %339, %348 : vector<8x32xf32>
    %c0_174 = arith.constant 0 : index
    %c0_175 = arith.constant 0 : index
    %c0_176 = arith.constant 0 : index
    %350 = vector.load %arg47[%c0_174, %c0_175, %c0_176] : memref<1x1x32xf32, #tpu.memory_space<vmem>>, vector<1x1x32xf32>
    %351 = vector.shape_cast %350 : vector<1x1x32xf32> to vector<1x32xf32>
    %352 = vector.broadcast %351 : vector<1x32xf32> to vector<8x32xf32>
    %353 = arith.mulf %349, %352 : vector<8x32xf32>
    %c0_177 = arith.constant 0 : index
    %c0_178 = arith.constant 0 : index
    %c0_179 = arith.constant 0 : index
    %354 = vector.load %arg48[%c0_177, %c0_178, %c0_179] : memref<1x1x32xf32, #tpu.memory_space<vmem>>, vector<1x1x32xf32>
    %355 = vector.shape_cast %354 : vector<1x1x32xf32> to vector<1x32xf32>
    %356 = vector.broadcast %355 : vector<1x32xf32> to vector<8x32xf32>
    %357 = arith.addf %353, %356 : vector<8x32xf32>
    %c0_180 = arith.constant 0 : index
    %c0_181 = arith.constant 0 : index
    %358 = vector.load %arg50[%c0_180, %c0_181] : memref<8x32xf32, #tpu.memory_space<vmem>>, vector<8x32xf32>
    tpu.vector_store %arg50[%c0_180, %c0_181], %357 {strides = array<i32>} : memref<8x32xf32, #tpu.memory_space<vmem>>, vector<8x32xf32>,
    %c0_182 = arith.constant 0 : index
    %c0_183 = arith.constant 0 : index
    %359 = vector.load %arg17[%c0_182, %c0_183] : memref<32x32xf32, #tpu.memory_space<vmem>>, vector<32x32xf32>
    %cst_184 = arith.constant dense<0.000000e+00> : vector<8x32xf32>
    %360 = tpu.matmul %357, %359, %cst_184 {dimension_numbers = #tpu.dot_dimension_numbers<[1], [0], [0], [1], [0, 0, 1, 1], [], []>} : vector<8x32xf32>, vector<32x32xf32>, vector<8x32xf32> -> vector<8x32xf32>
    %c0_185 = arith.constant 0 : index
    %c0_186 = arith.constant 0 : index
    %361 = vector.load %arg18[%c0_185, %c0_186] : memref<1x32xf32, #tpu.memory_space<vmem>>, vector<1x32xf32>
    %362 = vector.broadcast %361 : vector<1x32xf32> to vector<8x32xf32>
    %363 = arith.addf %360, %362 : vector<8x32xf32>
    %cst_187 = arith.constant 0.000000e+00 : f32
    %364 = vector.broadcast %cst_187 : f32 to vector<8x32xf32>
    %365 = arith.maximumf %363, %364 : vector<8x32xf32>
    %c0_188 = arith.constant 0 : index
    %c0_189 = arith.constant 0 : index
    %366 = vector.load %arg19[%c0_188, %c0_189] : memref<32x32xf32, #tpu.memory_space<vmem>>, vector<32x32xf32>
    %cst_190 = arith.constant dense<0.000000e+00> : vector<8x32xf32>
    %367 = tpu.matmul %365, %366, %cst_190 {dimension_numbers = #tpu.dot_dimension_numbers<[1], [0], [0], [1], [0, 0, 1, 1], [], []>} : vector<8x32xf32>, vector<32x32xf32>, vector<8x32xf32> -> vector<8x32xf32>
    %c0_191 = arith.constant 0 : index
    %c0_192 = arith.constant 0 : index
    %368 = vector.load %arg20[%c0_191, %c0_192] : memref<1x32xf32, #tpu.memory_space<vmem>>, vector<1x32xf32>
    %369 = vector.broadcast %368 : vector<1x32xf32> to vector<8x32xf32>
    %370 = arith.addf %367, %369 : vector<8x32xf32>
    %cst_193 = arith.constant 0.000000e+00 : f32
    %371 = vector.broadcast %cst_193 : f32 to vector<8x32xf32>
    %372 = arith.maximumf %370, %371 : vector<8x32xf32>
    %c0_194 = arith.constant 0 : index
    %c0_195 = arith.constant 0 : index
    %373 = vector.load %arg21[%c0_194, %c0_195] : memref<32x4xf32, #tpu.memory_space<vmem>>, vector<32x4xf32>
    %cst_196 = arith.constant dense<0.000000e+00> : vector<8x4xf32>
    %374 = tpu.matmul %372, %373, %cst_196 {dimension_numbers = #tpu.dot_dimension_numbers<[1], [0], [0], [1], [0, 0, 1, 1], [], []>} : vector<8x32xf32>, vector<32x4xf32>, vector<8x4xf32> -> vector<8x4xf32>
    %c0_197 = arith.constant 0 : index
    %c0_198 = arith.constant 0 : index
    %375 = vector.load %arg22[%c0_197, %c0_198] : memref<1x4xf32, #tpu.memory_space<vmem>>, vector<1x4xf32>
    %376 = vector.broadcast %375 : vector<1x4xf32> to vector<8x4xf32>
    %377 = arith.addf %374, %376 : vector<8x4xf32>
    %378 = arith.negf %377 : vector<8x4xf32>
    %379 = math.exp %378 : vector<8x4xf32>
    %cst_199 = arith.constant 1.000000e+00 : f32
    %380 = vector.broadcast %cst_199 : f32 to vector<8x4xf32>
    %381 = arith.addf %380, %379 : vector<8x4xf32>
    %382 = arith.divf %380, %381 : vector<8x4xf32>
    %c0_200 = arith.constant 0 : index
    %c0_201 = arith.constant 0 : index
    %383 = vector.load %arg51[%c0_200, %c0_201] : memref<8x4xf32, #tpu.memory_space<vmem>>, vector<8x4xf32>
    tpu.vector_store %arg51[%c0_200, %c0_201], %382 {strides = array<i32>} : memref<8x4xf32, #tpu.memory_space<vmem>>, vector<8x4xf32>,
    %c0_202 = arith.constant 0 : index
    %c0_203 = arith.constant 0 : index
    %c0_204 = arith.constant 0 : index
    %384 = vector.load %arg49[%c0_202, %c0_203, %c0_204] : memref<1x8x4xf32, #tpu.memory_space<vmem>>, vector<1x8x4xf32>
    %385 = vector.shape_cast %384 : vector<1x8x4xf32> to vector<8x4xf32>
    %386 = vector.shape_cast %382 : vector<8x4xf32> to vector<1x8x4xf32>
    tpu.vector_store %arg49[%c0_202, %c0_203, %c0_204], %386 {strides = array<i32>} : memref<1x8x4xf32, #tpu.memory_space<vmem>>, vector<1x8x4xf32>,
    return
  }
  func.func @transform_0(%arg0: i32) -> (i32, i32) {
    %c0_i32 = arith.constant 0 : i32
    %c0_i32_0 = arith.constant 0 : i32
    %c0_i32_1 = arith.constant 0 : i32
    return %c0_i32, %c0_i32_0 : i32, i32
  }
  func.func @transform_1(%arg0: i32) -> (i32, i32) {
    %c0_i32 = arith.constant 0 : i32
    %c0_i32_0 = arith.constant 0 : i32
    %c0_i32_1 = arith.constant 0 : i32
    return %c0_i32, %c0_i32_0 : i32, i32
  }
  func.func @transform_2(%arg0: i32) -> (i32, i32) {
    %c0_i32 = arith.constant 0 : i32
    %c0_i32_0 = arith.constant 0 : i32
    %c0_i32_1 = arith.constant 0 : i32
    return %c0_i32, %c0_i32_0 : i32, i32
  }
  func.func @transform_3(%arg0: i32) -> (i32, i32) {
    %c0_i32 = arith.constant 0 : i32
    %c0_i32_0 = arith.constant 0 : i32
    %c0_i32_1 = arith.constant 0 : i32
    return %c0_i32, %c0_i32_0 : i32, i32
  }
  func.func @transform_4(%arg0: i32) -> (i32, i32) {
    %c0_i32 = arith.constant 0 : i32
    %c0_i32_0 = arith.constant 0 : i32
    %c0_i32_1 = arith.constant 0 : i32
    return %c0_i32, %c0_i32_0 : i32, i32
  }
  func.func @transform_5(%arg0: i32) -> (i32, i32) {
    %c0_i32 = arith.constant 0 : i32
    %c0_i32_0 = arith.constant 0 : i32
    %c0_i32_1 = arith.constant 0 : i32
    return %c0_i32, %c0_i32_0 : i32, i32
  }
  func.func @transform_6(%arg0: i32) -> (i32, i32) {
    %c0_i32 = arith.constant 0 : i32
    %c0_i32_0 = arith.constant 0 : i32
    %c0_i32_1 = arith.constant 0 : i32
    return %c0_i32, %c0_i32_0 : i32, i32
  }
  func.func @transform_7(%arg0: i32) -> (i32, i32) {
    %c0_i32 = arith.constant 0 : i32
    %c0_i32_0 = arith.constant 0 : i32
    %c0_i32_1 = arith.constant 0 : i32
    return %c0_i32, %c0_i32_0 : i32, i32
  }
  func.func @transform_8(%arg0: i32) -> (i32, i32) {
    %c0_i32 = arith.constant 0 : i32
    %c0_i32_0 = arith.constant 0 : i32
    %c0_i32_1 = arith.constant 0 : i32
    return %c0_i32, %c0_i32_0 : i32, i32
  }
  func.func @transform_9(%arg0: i32) -> (i32, i32) {
    %c0_i32 = arith.constant 0 : i32
    %c0_i32_0 = arith.constant 0 : i32
    %c0_i32_1 = arith.constant 0 : i32
    return %c0_i32, %c0_i32_0 : i32, i32
  }
  func.func @transform_10(%arg0: i32) -> (i32, i32) {
    %c0_i32 = arith.constant 0 : i32
    %c0_i32_0 = arith.constant 0 : i32
    %c0_i32_1 = arith.constant 0 : i32
    return %c0_i32, %c0_i32_0 : i32, i32
  }
  func.func @transform_11(%arg0: i32) -> (i32, i32) {
    %c0_i32 = arith.constant 0 : i32
    %c0_i32_0 = arith.constant 0 : i32
    %c0_i32_1 = arith.constant 0 : i32
    return %c0_i32, %c0_i32_0 : i32, i32
  }
  func.func @transform_12(%arg0: i32) -> (i32, i32) {
    %c0_i32 = arith.constant 0 : i32
    %c0_i32_0 = arith.constant 0 : i32
    %c0_i32_1 = arith.constant 0 : i32
    return %c0_i32, %c0_i32_0 : i32, i32
  }
  func.func @transform_13(%arg0: i32) -> (i32, i32) {
    %c0_i32 = arith.constant 0 : i32
    %c0_i32_0 = arith.constant 0 : i32
    %c0_i32_1 = arith.constant 0 : i32
    return %c0_i32, %c0_i32_0 : i32, i32
  }
  func.func @transform_14(%arg0: i32) -> (i32, i32) {
    %c0_i32 = arith.constant 0 : i32
    %c0_i32_0 = arith.constant 0 : i32
    %c0_i32_1 = arith.constant 0 : i32
    return %c0_i32, %c0_i32_0 : i32, i32
  }
  func.func @transform_15(%arg0: i32) -> (i32, i32) {
    %c0_i32 = arith.constant 0 : i32
    %c0_i32_0 = arith.constant 0 : i32
    %c0_i32_1 = arith.constant 0 : i32
    return %c0_i32, %c0_i32_0 : i32, i32
  }
  func.func @transform_16(%arg0: i32) -> (i32, i32) {
    %c0_i32 = arith.constant 0 : i32
    %c0_i32_0 = arith.constant 0 : i32
    %c0_i32_1 = arith.constant 0 : i32
    return %c0_i32, %c0_i32_0 : i32, i32
  }
  func.func @transform_17(%arg0: i32) -> (i32, i32) {
    %c0_i32 = arith.constant 0 : i32
    %c0_i32_0 = arith.constant 0 : i32
    %c0_i32_1 = arith.constant 0 : i32
    return %c0_i32, %c0_i32_0 : i32, i32
  }
  func.func @transform_18(%arg0: i32) -> (i32, i32) {
    %c0_i32 = arith.constant 0 : i32
    %c0_i32_0 = arith.constant 0 : i32
    %c0_i32_1 = arith.constant 0 : i32
    return %c0_i32, %c0_i32_0 : i32, i32
  }
  func.func @transform_19(%arg0: i32) -> (i32, i32) {
    %c0_i32 = arith.constant 0 : i32
    %c0_i32_0 = arith.constant 0 : i32
    %c0_i32_1 = arith.constant 0 : i32
    return %c0_i32, %c0_i32_0 : i32, i32
  }
  func.func @transform_20(%arg0: i32) -> (i32, i32) {
    %c0_i32 = arith.constant 0 : i32
    %c0_i32_0 = arith.constant 0 : i32
    %c0_i32_1 = arith.constant 0 : i32
    return %c0_i32, %c0_i32_0 : i32, i32
  }
  func.func @transform_21(%arg0: i32) -> (i32, i32) {
    %c0_i32 = arith.constant 0 : i32
    %c0_i32_0 = arith.constant 0 : i32
    %c0_i32_1 = arith.constant 0 : i32
    return %c0_i32, %c0_i32_0 : i32, i32
  }
  func.func @transform_22(%arg0: i32) -> (i32, i32, i32) {
    %c0_i32 = arith.constant 0 : i32
    %c0_i32_0 = arith.constant 0 : i32
    %c0_i32_1 = arith.constant 0 : i32
    return %arg0, %c0_i32, %c0_i32_0 : i32, i32, i32
  }
  func.func @transform_23(%arg0: i32) -> (i32, i32, i32) {
    %c0_i32 = arith.constant 0 : i32
    %c0_i32_0 = arith.constant 0 : i32
    %c0_i32_1 = arith.constant 0 : i32
    return %arg0, %c0_i32, %c0_i32_0 : i32, i32, i32
  }
  func.func @transform_24(%arg0: i32) -> (i32, i32, i32) {
    %c0_i32 = arith.constant 0 : i32
    %c0_i32_0 = arith.constant 0 : i32
    %c0_i32_1 = arith.constant 0 : i32
    return %arg0, %c0_i32, %c0_i32_0 : i32, i32, i32
  }
  func.func @transform_25(%arg0: i32) -> (i32, i32, i32) {
    %c0_i32 = arith.constant 0 : i32
    %c0_i32_0 = arith.constant 0 : i32
    %c0_i32_1 = arith.constant 0 : i32
    return %arg0, %c0_i32, %c0_i32_0 : i32, i32, i32
  }
  func.func @transform_26(%arg0: i32) -> (i32, i32, i32) {
    %c0_i32 = arith.constant 0 : i32
    %c0_i32_0 = arith.constant 0 : i32
    %c0_i32_1 = arith.constant 0 : i32
    return %arg0, %c0_i32, %c0_i32_0 : i32, i32, i32
  }
  func.func @transform_27(%arg0: i32) -> (i32, i32, i32) {
    %c0_i32 = arith.constant 0 : i32
    %c0_i32_0 = arith.constant 0 : i32
    %c0_i32_1 = arith.constant 0 : i32
    return %arg0, %c0_i32, %c0_i32_0 : i32, i32, i32
  }
  func.func @transform_28(%arg0: i32) -> (i32, i32, i32) {
    %c0_i32 = arith.constant 0 : i32
    %c0_i32_0 = arith.constant 0 : i32
    %c0_i32_1 = arith.constant 0 : i32
    return %arg0, %c0_i32, %c0_i32_0 : i32, i32, i32
  }
  func.func @transform_29(%arg0: i32) -> (i32, i32, i32) {
    %c0_i32 = arith.constant 0 : i32
    %c0_i32_0 = arith.constant 0 : i32
    %c0_i32_1 = arith.constant 0 : i32
    return %arg0, %c0_i32, %c0_i32_0 : i32, i32, i32
  }
  func.func @transform_30(%arg0: i32) -> (i32, i32, i32) {
    %c0_i32 = arith.constant 0 : i32
    %c0_i32_0 = arith.constant 0 : i32
    %c0_i32_1 = arith.constant 0 : i32
    return %arg0, %c0_i32, %c0_i32_0 : i32, i32, i32
  }
  func.func @transform_31(%arg0: i32) -> (i32, i32, i32) {
    %c0_i32 = arith.constant 0 : i32
    %c0_i32_0 = arith.constant 0 : i32
    %c0_i32_1 = arith.constant 0 : i32
    return %arg0, %c0_i32, %c0_i32_0 : i32, i32, i32
  }
  func.func @transform_32(%arg0: i32) -> (i32, i32, i32) {
    %c0_i32 = arith.constant 0 : i32
    %c0_i32_0 = arith.constant 0 : i32
    %c0_i32_1 = arith.constant 0 : i32
    return %arg0, %c0_i32, %c0_i32_0 : i32, i32, i32
  }
  func.func @transform_33(%arg0: i32) -> (i32, i32, i32) {
    %c0_i32 = arith.constant 0 : i32
    %c0_i32_0 = arith.constant 0 : i32
    %c0_i32_1 = arith.constant 0 : i32
    return %arg0, %c0_i32, %c0_i32_0 : i32, i32, i32
  }
  func.func @transform_34(%arg0: i32) -> (i32, i32, i32) {
    %c0_i32 = arith.constant 0 : i32
    %c0_i32_0 = arith.constant 0 : i32
    %c0_i32_1 = arith.constant 0 : i32
    return %arg0, %c0_i32, %c0_i32_0 : i32, i32, i32
  }
  func.func @transform_35(%arg0: i32) -> (i32, i32, i32) {
    %c0_i32 = arith.constant 0 : i32
    %c0_i32_0 = arith.constant 0 : i32
    %c0_i32_1 = arith.constant 0 : i32
    return %arg0, %c0_i32, %c0_i32_0 : i32, i32, i32
  }
  func.func @transform_36(%arg0: i32) -> (i32, i32, i32) {
    %c0_i32 = arith.constant 0 : i32
    %c0_i32_0 = arith.constant 0 : i32
    %c0_i32_1 = arith.constant 0 : i32
    return %arg0, %c0_i32, %c0_i32_0 : i32, i32, i32
  }
  func.func @transform_37(%arg0: i32) -> (i32, i32, i32) {
    %c0_i32 = arith.constant 0 : i32
    %c0_i32_0 = arith.constant 0 : i32
    %c0_i32_1 = arith.constant 0 : i32
    return %arg0, %c0_i32, %c0_i32_0 : i32, i32, i32
  }
  func.func @transform_38(%arg0: i32) -> (i32, i32, i32) {
    %c0_i32 = arith.constant 0 : i32
    %c0_i32_0 = arith.constant 0 : i32
    %c0_i32_1 = arith.constant 0 : i32
    return %arg0, %c0_i32, %c0_i32_0 : i32, i32, i32
  }
  func.func @transform_39(%arg0: i32) -> (i32, i32, i32) {
    %c0_i32 = arith.constant 0 : i32
    %c0_i32_0 = arith.constant 0 : i32
    %c0_i32_1 = arith.constant 0 : i32
    return %arg0, %c0_i32, %c0_i32_0 : i32, i32, i32
  }
  func.func @transform_40(%arg0: i32) -> (i32, i32, i32) {
    %c0_i32 = arith.constant 0 : i32
    %c0_i32_0 = arith.constant 0 : i32
    %c0_i32_1 = arith.constant 0 : i32
    return %arg0, %c0_i32, %c0_i32_0 : i32, i32, i32
  }
  func.func @transform_41(%arg0: i32) -> (i32, i32, i32) {
    %c0_i32 = arith.constant 0 : i32
    %c0_i32_0 = arith.constant 0 : i32
    %c0_i32_1 = arith.constant 0 : i32
    return %arg0, %c0_i32, %c0_i32_0 : i32, i32, i32
  }
  func.func @transform_42(%arg0: i32) -> (i32, i32, i32) {
    %c0_i32 = arith.constant 0 : i32
    %c0_i32_0 = arith.constant 0 : i32
    %c0_i32_1 = arith.constant 0 : i32
    return %arg0, %c0_i32, %c0_i32_0 : i32, i32, i32
  }
  func.func @transform_43(%arg0: i32) -> (i32, i32, i32) {
    %c0_i32 = arith.constant 0 : i32
    %c0_i32_0 = arith.constant 0 : i32
    %c0_i32_1 = arith.constant 0 : i32
    return %arg0, %c0_i32, %c0_i32_0 : i32, i32, i32
  }
  func.func @transform_44(%arg0: i32) -> (i32, i32, i32) {
    %c0_i32 = arith.constant 0 : i32
    %c0_i32_0 = arith.constant 0 : i32
    %c0_i32_1 = arith.constant 0 : i32
    return %arg0, %c0_i32, %c0_i32_0 : i32, i32, i32
  }
  func.func @transform_45(%arg0: i32) -> (i32, i32, i32) {
    %c0_i32 = arith.constant 0 : i32
    %c0_i32_0 = arith.constant 0 : i32
    %c0_i32_1 = arith.constant 0 : i32
    return %arg0, %c0_i32, %c0_i32_0 : i32, i32, i32
  }
  func.func @transform_46(%arg0: i32) -> (i32, i32, i32) {
    %c0_i32 = arith.constant 0 : i32
    %c0_i32_0 = arith.constant 0 : i32
    %c0_i32_1 = arith.constant 0 : i32
    return %arg0, %c0_i32, %c0_i32_0 : i32, i32, i32
  }
  func.func @transform_47(%arg0: i32) -> (i32, i32, i32) {
    %c0_i32 = arith.constant 0 : i32
    %c0_i32_0 = arith.constant 0 : i32
    %c0_i32_1 = arith.constant 0 : i32
    return %arg0, %c0_i32, %c0_i32_0 : i32, i32, i32
  }
  func.func @transform_48(%arg0: i32) -> (i32, i32, i32) {
    %c0_i32 = arith.constant 0 : i32
    %c0_i32_0 = arith.constant 0 : i32
    %c0_i32_1 = arith.constant 0 : i32
    return %arg0, %c0_i32, %c0_i32_0 : i32, i32, i32
  }
}

</mosaic_0001>

<bundles_post_ra>
// kernel: pos_decoder_forward.1
= control target key start
LH: loop header
LB: loop body
LE: loop exit
PB: predicated region body
PF: predicated region fallthrough
CT: control target
= control target key end

     0   :  { %s9333_s6 = smov 1   ;;  %s9334_s10 = smov 2   ;;  %s11219_s0 = inlined_call_operand.smem [shape: u32[49], index: -1, kind: input, shape index: {}] }
   0x1   :  { %s9436_s5 = sld [smem:[%s11219_s0]]   ;;  %s9335_s14 = smov 3  }
   0x2   :  { %s9441_s9 = sld [smem:[%s11219_s0 + %s9333_s6]]   ;;  %s9336_s18 = smov 4  }
   0x3   :  { %s9446_s13 = sld [smem:[%s11219_s0 + %s9334_s10]]   ;;  %s9337_s22 = smov 5  }
   0x4   :  { %s9451_s17 = sld [smem:[%s11219_s0 + %s9335_s14]]   ;;  %s9338_s26 = smov 6  }
   0x5   :  { %s9456_s21 = sld [smem:[%s11219_s0 + %s9336_s18]]   ;;  %s9339_s30 = smov 7  }
   0x6   :  { %s9461_s25 = sld [smem:[%s11219_s0 + %s9337_s22]]   ;;  %s9340_s4 = smov 8  }
   0x7   :  { %11277 = sst [smem:[#allocation39_spill]] %s9436_s5  ;;  %s9341_s10 = smov 9  }
   0x8   :  { %11278 = sst [smem:[#allocation40_spill]] %s9441_s9  ;;  %s9342_s15 = smov 10  }
   0x9   :  { %11279 = sst [smem:[#allocation41_spill]] %s9446_s13  ;;  %s9343_s20 = smov 11  }
   0xa   :  { %11280 = sst [smem:[#allocation42_spill]] %s9451_s17  ;;  %s9345_s1 = smov 13  }
   0xb   :  { %11281 = sst [smem:[#allocation43_spill]] %s9456_s21  ;;  %s9346_s7 = smov 14  }
   0xc   :  { %11282 = sst [smem:[#allocation44_spill]] %s9461_s25  ;;  %s9348_s22 = smov 16  }
   0xd   :  { %s9466_s29 = sld [smem:[%s11219_s0 + %s9338_s26]]   ;;  %s9344_s26 = smov 12  }
   0xe   :  { %s9471_s3 = sld [smem:[%s11219_s0 + %s9339_s30]]   ;;  %s9349_s28 = smov 17  }
   0xf   :  { %s9476_s8 = sld [smem:[%s11219_s0 + %s9340_s4]]  }
  0x10   :  { %s9481_s14 = sld [smem:[%s11219_s0 + %s9341_s10]]  }
  0x11   :  { %s9486_s19 = sld [smem:[%s11219_s0 + %s9342_s15]]   ;;  %s9347_s15 = smov 15  }
  0x12   :  { %s9491_s24 = sld [smem:[%s11219_s0 + %s9343_s20]]  }
  0x13   :  { %11283 = sst [smem:[#allocation45_spill]] %s9466_s29 }
  0x14   :  { %11284 = sst [smem:[#allocation46_spill]] %s9471_s3 }
  0x15   :  { %11285 = sst [smem:[#allocation47_spill]] %s9476_s8 }
  0x16   :  { %11286 = sst [smem:[#allocation48_spill]] %s9481_s14 }
  0x17   :  { %11287 = sst [smem:[#allocation49_spill]] %s9486_s19 }
  0x18   :  { %11288 = sst [smem:[#allocation50_spill]] %s9491_s24 }
  0x19   :  { %s9496_s30 = sld [smem:[%s11219_s0 + %s9344_s26]]  }
  0x1a   :  { %s9501_s6 = sld [smem:[%s11219_s0 + %s9345_s1]]  }
  0x1b   :  { %s9506_s12 = sld [smem:[%s11219_s0 + %s9346_s7]]   ;;  %s9350_s7 = smov 18  }
  0x1c   :  { %s9511_s20 = sld [smem:[%s11219_s0 + %s9347_s15]]   ;;  %s9351_s15 = smov 19  }
  0x1d   :  { %s9516_s27 = sld [smem:[%s11219_s0 + %s9348_s22]]   ;;  %s9352_s22 = smov 20  }
  0x1e   :  { %s9521_s4 = sld [smem:[%s11219_s0 + %s9349_s28]]   ;;  %s9353_s28 = smov 21  }
  0x1f   :  { %11289 = sst [smem:[#allocation51_spill]] %s9496_s30 }
  0x20   :  { %11290 = sst [smem:[#allocation52_spill]] %s9501_s6 }
  0x21   :  { %11291 = sst [smem:[#allocation53_spill]] %s9506_s12 }
  0x22   :  { %11292 = sst [smem:[#allocation54_spill]] %s9511_s20 }
  0x23   :  { %11293 = sst [smem:[#allocation55_spill]] %s9516_s27 }
  0x24   :  { %11294 = sst [smem:[#allocation56_spill]] %s9521_s4 }
  0x25   :  { %s9526_s25 = sld [smem:[%s11219_s0 + %s9350_s7]]   ;;  %s9354_s7 = smov 22  }
  0x26   :  { %s9531_s17 = sld [smem:[%s11219_s0 + %s9351_s15]]   ;;  %s9355_s15 = smov 23  }
  0x27   :  { %s9536_s21 = sld [smem:[%s11219_s0 + %s9352_s22]]   ;;  %s9356_s22 = smov 24  }
  0x28   :  { %s9541_s9 = sld [smem:[%s11219_s0 + %s9353_s28]]   ;;  %s9357_s28 = smov 25  }
  0x29   :  { %s9546_s8 = sld [smem:[%s11219_s0 + %s9354_s7]]   ;;  %s9358_s7 = smov 26  }
  0x2a   :  { %s9551_s13 = sld [smem:[%s11219_s0 + %s9355_s15]]   ;;  %s9359_s15 = smov 27  }
  0x2b   :  { %11295 = sst [smem:[#allocation57_spill]] %s9526_s25 }
  0x2c   :  { %11296 = sst [smem:[#allocation58_spill]] %s9531_s17 }
  0x2d   :  { %11297 = sst [smem:[#allocation59_spill]] %s9536_s21 }
  0x2e   :  { %11298 = sst [smem:[#allocation60_spill]] %s9541_s9 }
  0x2f   :  { %11299 = sst [smem:[#allocation61_spill]] %s9546_s8 }
  0x30   :  { %11300 = sst [smem:[#allocation62_spill]] %s9551_s13 }
  0x31   :  { %s9556_s21 = sld [smem:[%s11219_s0 + %s9356_s22]]   ;;  %s9360_s22 = smov 28  }
  0x32   :  { %s9561_s5 = sld [smem:[%s11219_s0 + %s9357_s28]]   ;;  %s9361_s28 = smov 29  }
  0x33   :  { %s9566_s8 = sld [smem:[%s11219_s0 + %s9358_s7]]   ;;  %s9362_s7 = smov 30  }
  0x34   :  { %s9571_s13 = sld [smem:[%s11219_s0 + %s9359_s15]]   ;;  %s9363_s15 = smov 31  }
  0x37   :  { %11301 = sst [smem:[#allocation63_spill]] %s9556_s21 }
  0x38   :  { %11302 = sst [smem:[#allocation64_spill]] %s9561_s5 }
  0x39   :  { %11303 = sst [smem:[#allocation65_spill]] %s9566_s8 }
  0x3a   :  { %11304 = sst [smem:[#allocation66_spill]] %s9571_s13 }
  0x3b   :  { %s9576_s21 = sld [smem:[%s11219_s0 + %s9360_s22]]   ;;  %s9364_s22 = smov 32  }
  0x3c   :  { %s9581_s5 = sld [smem:[%s11219_s0 + %s9361_s28]]   ;;  %s9365_s28 = smov 33  }
  0x3d   :  { %s9586_s8 = sld [smem:[%s11219_s0 + %s9362_s7]]   ;;  %s9366_s7 = smov 34  }
  0x3e   :  { %s9591_s13 = sld [smem:[%s11219_s0 + %s9363_s15]]   ;;  %s9367_s15 = smov 35  }
  0x41   :  { %11305 = sst [smem:[#allocation67_spill]] %s9576_s21 }
  0x42   :  { %11306 = sst [smem:[#allocation68_spill]] %s9581_s5 }
  0x43   :  { %11307 = sst [smem:[#allocation69_spill]] %s9586_s8 }
  0x44   :  { %11308 = sst [smem:[#allocation70_spill]] %s9591_s13 }
  0x45   :  { %s9596_s21 = sld [smem:[%s11219_s0 + %s9364_s22]]   ;;  %s9368_s22 = smov 36  }
  0x46   :  { %s9601_s5 = sld [smem:[%s11219_s0 + %s9365_s28]]   ;;  %s9369_s28 = smov 37  }
  0x47   :  { %s9606_s8 = sld [smem:[%s11219_s0 + %s9366_s7]]   ;;  %s9370_s7 = smov 38  }
  0x48   :  { %s9611_s13 = sld [smem:[%s11219_s0 + %s9367_s15]]   ;;  %s9371_s15 = smov 39  }
  0x4b   :  { %11309 = sst [smem:[#allocation71_spill]] %s9596_s21 }
  0x4c   :  { %11310 = sst [smem:[#allocation72_spill]] %s9601_s5 }
  0x4d   :  { %11311 = sst [smem:[#allocation73_spill]] %s9606_s8 }
  0x4e   :  { %11312 = sst [smem:[#allocation74_spill]] %s9611_s13 }
  0x4f   :  { %s9616_s21 = sld [smem:[%s11219_s0 + %s9368_s22]]   ;;  %s9372_s22 = smov 40  }
  0x50   :  { %s9621_s5 = sld [smem:[%s11219_s0 + %s9369_s28]]   ;;  %s9373_s28 = smov 41  }
  0x51   :  { %s9626_s8 = sld [smem:[%s11219_s0 + %s9370_s7]]   ;;  %s9374_s7 = smov 42  }
  0x52   :  { %s9631_s13 = sld [smem:[%s11219_s0 + %s9371_s15]]   ;;  %s9375_s15 = smov 43  }
  0x53   :  { %s9641_s9 = sld [smem:[%s11219_s0 + %s9373_s28]]   ;;  %s9377_s28 = smov 45  }
  0x54   :  { %s9646_s17 = sld [smem:[%s11219_s0 + %s9374_s7]]   ;;  %s9378_s7 = smov 46  }
  0x55   :  { %11313 = sst [smem:[#allocation75_spill]] %s9616_s21 }
  0x56   :  { %11314 = sst [smem:[#allocation76_spill]] %s9621_s5 }
  0x57   :  { %11315 = sst [smem:[#allocation77_spill]] %s9626_s8 }
  0x58   :  { %11316 = sst [smem:[#allocation78_spill]] %s9631_s13 }
  0x59   :  { %s9636_s21 = sld [smem:[%s11219_s0 + %s9372_s22]]   ;;  %s9376_s22 = smov 44  }
  0x5a   :  { %11318 = sst [smem:[#allocation80_spill]] %s9641_s9 }
  0x5b   :  { %11319 = sst [smem:[#allocation81_spill]] %s9646_s17 }
  0x5c   :  { %s9651_s4 = sld [smem:[%s11219_s0 + %s9375_s15]]   ;;  %s9379_s15 = smov 47  }
  0x5d   :  { %s9661_s9 = sld [smem:[%s11219_s0 + %s9377_s28]]  }
  0x5e   :  { %s9666_s17 = sld [smem:[%s11219_s0 + %s9378_s7]]  }
  0x5f   :  { %11317 = sst [smem:[#allocation79_spill]] %s9636_s21 }
  0x60   :  { %s9656_s21 = sld [smem:[%s11219_s0 + %s9376_s22]]   ;;  %s9380_s22 = smov 48  }
  0x62   :  { %11320 = sst [smem:[#allocation82_spill]] %s9651_s4 }
  0x63   :  { %11322 = sst [smem:[#allocation84_spill]] %s9661_s9 }
  0x64   :  { %11323 = sst [smem:[#allocation85_spill]] %s9666_s17 }
  0x65   :  { %s9671_s4 = sld [smem:[%s11219_s0 + %s9379_s15]]  }
  0x66   :  { %11321 = sst [smem:[#allocation83_spill]] %s9656_s21 }
  0x67   :  { %s9676_s21 = sld [smem:[%s11219_s0 + %s9380_s22]]  }
  0x6b   :  { %11324 = sst [smem:[#allocation86_spill]] %s9671_s4 }
  0x6d   :  { %11325 = sst [smem:[#allocation87_spill]] %s9676_s21 }
  0x6e   :  { %102 = vsyncpa [#allocation5], 0 }
  0x6f   :  { %103 = vsyncpa [#allocation7], 0 }
  0x70   :  { %104 = vsyncpa [#allocation10], 0 }
  0x71   :  { %105 = vsyncpa [#allocation13], 0 }
  0x72   :  { %106 = vsyncpa [#allocation16], 0 }
  0x73   :  { %107 = vsyncpa [#allocation19], 0 }
  0x74   :  { %108 = vsyncpa [#allocation22], 0 }
  0x75   :  { %109 = vsyncpa [#allocation25], 0  ;;  %s9678_s28 = smov 0   ;;  %s9680_s1 = smov 0  }
  0x76   :  { %s9682_s2 = smov 0   ;;  %s9684_s7 = smov 0  }
  0x77 LB: > { %s11326_s30 = sld [smem:[#allocation51_spill]]  ;;  %s11327_s27 = sld [smem:[#allocation55_spill]]  ;;  %s9323_s1 = sphi %s9680_s1, %s11462_s1   ;;  %s9319_s28 = sphi %s9678_s28, %s11461_s28   ;;  %s9331_s7 = sphi %s9684_s7, %s11460_s7   ;;  %s9327_s2 = sphi %s9682_s2, %s11463_s2  }
  0x78   : > { %s11328_s25 = sld [smem:[#allocation57_spill]]  ;;  %s11329_s24 = sld [smem:[#allocation50_spill]] }
  0x79   : > { %s11330_s20 = sld [smem:[#allocation54_spill]]  ;;  %s11331_s19 = sld [smem:[#allocation49_spill]] }
  0x7a   : > { %s11332_s14 = sld [smem:[#allocation48_spill]]  ;;  %s11333_s13 = sld [smem:[#allocation78_spill]] }
  0x7b   : > { %s11334_s12 = sld [smem:[#allocation53_spill]]  ;;  %s11335_s6 = sld [smem:[#allocation52_spill]] }
  0x7c   : > { %s11336_s3 = sld [smem:[#allocation46_spill]]  ;;  %s11337_s8 = sld [smem:[#allocation77_spill]] }
  0x7d   : > { %s11338_s5 = sld [smem:[#allocation76_spill]]  ;;  %s11339_s29 = sld [smem:[#allocation45_spill]] }
  0x7e   : > { %11340 = sst [smem:[#allocation88_spill]] %s9323_s1  ;;  %s9381_s0 = smov [#allocation4]  }
  0x7f   : > { %11341 = sst [smem:[#allocation89_spill]] %s9327_s2  ;;  %s1315_s10 = sshll.u32 %s9381_s0, 4  ;;  %s1316_s10 = int_to_ptr.vmem [resolvable:$true] %s1315_s10 }
  0x80   : > { %s9699_s11 = sadd.s32 4294967295, %s9331_s7   ;;  %p7381_p0 = scmp.ge.s32.totalorder %s9331_s7, 1 }
  0x81   : > { %p11231_p1 = scmp.eq.s32.totalorder %s9699_s11, 0  ;;  %p1284_p2 = scmp.lt.s32.totalorder %s9331_s7, 3 }
  0x82   : > { %s9718_s18 = sadd.s32 1, %s9331_s7   ;;  %s974_s22 = sadd.s32 1, %s9327_s2 }
  0x83   : > { %p9705_p4 = pnand %p7381_p0, %p1284_p2  ;;  %11344 = sst [smem:[#allocation90_spill]] %s9718_s18 }
  0x84   : > { %s971_s23 = ssub.s32 %s9331_s7, %s9718_s18  ;;  %s8753_s26 = scalar_lea.hbm %s11339_s29, 16 }
  0x85   : > { %s11342_s15 = scalar_select %p9705_p4, 1, 0 }
  0x86   : > { %p8450_p5 = pneg %p9705_p4  ;;  %p8754_p7 = scmp.ne.s32.totalorder %s11339_s29, %s8753_s26 }
  0x87   : > { %p8760_p11 = scmp.lt.u32.totalorder %s8753_s26, %s11339_s29 }
  0x88   : > { %p9713_p6 = pnand %p8450_p5, %p11231_p1 }
  0x8a   : > { %s11343_s16 = scalar_select %p9713_p6, 1, 0 }
  0x8b   : > { %p9727_p8 = pneg %p9713_p6 }
  0x8d   : > { %s11345_s0 = scalar_select %p9727_p8, 1, 0 }
  0x8e   : > { %p8756_p9 = pnand %p9727_p8, %p8754_p7 }
  0x90   : > { %p8757_p10 = pneg %p8756_p9 }
  0x92   : > { %p8762_p12 = pnand %p8760_p11, %p8757_p10 }
  0x94   : > { %8765 = shalt.err (!%p8762_p12)
}
  0x95   : > { %s8766_s21 = scalar_lea.vmem %s1316_s10, 16  ;;  %s8773_s18 = scalar_lea.vmem %s1316_s10, 32 }
  0x96   : > { %p8767_p13 = scmp.ne.s32.totalorder %s1316_s10, %s8766_s21  ;;  %p8774_p5 = scmp.lt.s32.totalorder %s1316_s10, %s1316_s10 }
  0x97   : > { %p8775_p3 = scmp.lt.s32.totalorder %s8773_s18, %s8766_s21 }
  0x98   : > { %p8769_p0 = pnand %p8767_p13, %p9727_p8 }
  0x99   : > { %p8776_p1 = por %p8775_p3, %p8774_p5 }
  0x9a   : > { %p8770_p2 = pneg %p8769_p0 }
  0x9c   : > { %p8777_p4 = pnand %p8776_p1, %p8770_p2 }
  0x9e   : > { %8780 = shalt.err (!%p8777_p4)
}
  0x9f   : > { %8453 = dma.hbm_to_vmem [thread:$0]  (!%p9713_p6), %s11339_s29, 16, %s1316_s10, [#allocation5]  }
  0xa0   : > { %p972_p3 = scmp.eq.s32.totalorder %s971_s23, 0  ;;  %p981_p1 = scmp.ne.s32.totalorder %s9327_s2, %s9323_s1 }
  0xa1   : > { %p982_p4 = scmp.eq.s32.totalorder %s9331_s7, 0  ;;  %p987_p7 = scmp.ne.s32.totalorder %s9323_s1, %s9319_s28 }
  0xa2   : > { %s9745_s21 = scalar_select %p972_p3, %s9327_s2, %s974_s22  }
  0xa3   : > { %p983_p9 = por %p982_p4, %p981_p1  ;;  %p11347_p10 = scmp.eq.s32.totalorder %s9699_s11, 0 }
  0xa4   : > { %11346 = sst [smem:[#allocation91_spill]] %s9745_s21  ;;  %p8520_p12 = scmp.lt.s32.totalorder %s9331_s7, 2 }
  0xa5   : > { %p9749_p11 = por %p11347_p10, %p987_p7  ;;  %s1595_s26 = sand.u32 1, %s9331_s7  }
  0xa6   : > { %s9756_s4 = sand.u32 1, %s9327_s2   ;;  %s11235_s10 = sshll.u32 %s9331_s7, 4 }
  0xa7   : > { %s11348_s18 = scalar_select %p9749_p11, 1, 0 }
  0xa8   : > { %s9762_s23 = scalar_lea.hbm %s11338_s5, %s11235_s10  ;;  %s1598_s28 = scalar_lea.vmem [#allocation26], %s9756_s4 }
  0xa9   : > { %11349 = sst [smem:[#allocation92_spill]] %s11348_s18  ;;  %s1605_s22 = sshll.u32 %s1598_s28, 4  ;;  %s9765_s22 = int_to_ptr.vmem [resolvable:$true] %s1605_s22 }
  0xaa   : > { %p9767_p13 = pnand %p8520_p12, %p983_p9  ;;  %s9772_s2 = scalar_lea.sflag [#allocation5], %s1595_s26 }
  0xab   : > { %s8781_s17 = scalar_lea.hbm %s9762_s23, 16  ;;  %s8786_s28 = scalar_lea.hbm %s11338_s5, 32 }
  0xac   : > { %s11350_s29 = scalar_select %p9767_p13, 1, 0 }
  0xad   : > { %p8782_p0 = scmp.ne.s32.totalorder %s9762_s23, %s8781_s17  ;;  %p9778_p2 = pneg %p9767_p13 }
  0xae   : > { %p8787_p1 = scmp.lt.u32.totalorder %s9762_s23, %s11338_s5  ;;  %p8788_p4 = scmp.lt.u32.totalorder %s8786_s28, %s8781_s17 }
  0xaf   : > { %s11351_s10 = scalar_select %p9778_p2, 1, 0 }
  0xb0   : > { %p8784_p5 = pnand %p9778_p2, %p8782_p0  ;;  %p8789_p7 = por %p8788_p4, %p8787_p1 }
  0xb1   : > { %p8790_p9 = scmp.lt.u32.totalorder %s8781_s17, %s9762_s23 }
  0xb2   : > { %p8785_p3 = pneg %p8784_p5 }
  0xb3   : > { %p8791_p10 = por %p8790_p9, %p8789_p7 }
  0xb5   : > { %p8792_p12 = pnand %p8791_p10, %p8785_p3 }
  0xb7   : > { %8795 = shalt.err (!%p8792_p12)
}
  0xb8   : > { %s8796_s26 = scalar_lea.vmem %s9765_s22, 16  ;;  %s9382_s21 = smov [#allocation26]  }
  0xb9   : > { %p8797_p11 = scmp.ne.s32.totalorder %s9765_s22, %s8796_s26  ;;  %s8801_s9 = sshll.u32 %s9382_s21, 4  ;;  %s8802_s9 = int_to_ptr.vmem [resolvable:$false] %s8801_s9 }
  0xba   : > { %s8803_s18 = scalar_lea.vmem %s8802_s9, 32  ;;  %p8804_p0 = scmp.lt.s32.totalorder %s9765_s22, %s8802_s9 }
  0xbb   : > { %p8799_p6 = pnand %p8797_p11, %p9778_p2  ;;  %p8805_p5 = scmp.lt.s32.totalorder %s8803_s18, %s8796_s26 }
  0xbd   : > { %p8800_p8 = pneg %p8799_p6  ;;  %p8806_p1 = por %p8805_p5, %p8804_p0 }
  0xbf   : > { %p8807_p4 = pnand %p8806_p1, %p8800_p8 }
  0xc1   : > { %8810 = shalt.err (!%p8807_p4)
}
  0xc2   : > { %8496 = dma.hbm_to_vmem [thread:$0]  (!%p9767_p13), %s9762_s23, 16, %s9765_s22, %s9772_s2  }
  0xc3   : > { %s11244_s17 = sshll.u32 %s9331_s7, 9  ;;  %s11352_s21 = sshll.u32 %s9756_s4, 5 }
  0xc4   : > { %s1616_s9 = scalar_lea.vmem [#allocation27], %s11352_s21  ;;  %s9804_s28 = scalar_lea.hbm %s11337_s8, %s11244_s17 }
  0xc5   : > { %s1623_s18 = sshll.u32 %s1616_s9, 4  ;;  %s8811_s26 = scalar_lea.hbm %s9804_s28, 512  ;;  %s9806_s18 = int_to_ptr.vmem [resolvable:$true] %s1623_s18 }
  0xc6   : > { %p8812_p6 = scmp.ne.s32.totalorder %s9804_s28, %s8811_s26  ;;  %s8816_s5 = scalar_lea.hbm %s11337_s8, 1024 }
  0xc7   : > { %p8817_p3 = scmp.lt.u32.totalorder %s9804_s28, %s11337_s8  ;;  %p8818_p7 = scmp.lt.u32.totalorder %s8816_s5, %s8811_s26 }
  0xc8   : > { %p8814_p8 = pnand %p8812_p6, %p9778_p2  ;;  %p8820_p10 = scmp.lt.u32.totalorder %s8811_s26, %s9804_s28 }
  0xc9   : > { %p8819_p9 = por %p8818_p7, %p8817_p3 }
  0xca   : > { %p8815_p11 = pneg %p8814_p8 }
  0xcb   : > { %p8821_p12 = por %p8820_p10, %p8819_p9 }
  0xcd   : > { %p8822_p0 = pnand %p8821_p12, %p8815_p11 }
  0xcf   : > { %8825 = shalt.err (!%p8822_p0)
}
  0xd0   : > { %s8826_s23 = scalar_lea.vmem %s9806_s18, 512  ;;  %s9383_s22 = smov [#allocation27]  }
  0xd1   : > { %p8827_p5 = scmp.ne.s32.totalorder %s9806_s18, %s8826_s23  ;;  %s8831_s21 = sshll.u32 %s9383_s22, 4  ;;  %s8832_s21 = int_to_ptr.vmem [resolvable:$false] %s8831_s21 }
  0xd2   : > { %s8833_s9 = scalar_lea.vmem %s8832_s21, 1024  ;;  %p8834_p6 = scmp.lt.s32.totalorder %s9806_s18, %s8832_s21 }
  0xd3   : > { %p8829_p1 = pnand %p8827_p5, %p9778_p2  ;;  %p8835_p8 = scmp.lt.s32.totalorder %s8833_s9, %s8826_s23 }
  0xd5   : > { %p8830_p4 = pneg %p8829_p1  ;;  %p8836_p3 = por %p8835_p8, %p8834_p6 }
  0xd7   : > { %p8837_p7 = pnand %p8836_p3, %p8830_p4 }
  0xd9   : > { %8840 = shalt.err (!%p8837_p7)
}
  0xda   : > { %s11253_s5 = smov 128   ;;  %s11254_s26 = smov 8  }
  0xdb   : > { %8499 = dma.hbm_to_vmem [thread:$0]  (!%p9767_p13), %s9804_s28, 512, %s9806_s18, %s9772_s2, %s11253_s5, %s11253_s5, %s11254_s26  }
  0xdc   : > { %s9386_s22 = smov [#allocation6]   ;;  %s9387_s21 = smov [#allocation9]  }
  0xdd   : > { %s1326_s23 = sshll.u32 %s9386_s22, 4  ;;  %s1350_s9 = sshll.u32 %s9387_s21, 4  ;;  %s1327_s23 = int_to_ptr.vmem [resolvable:$true] %s1326_s23  ;;  %s9829_s9 = int_to_ptr.vmem [resolvable:$true] %s1350_s9 }
  0xde   : > { %s8841_s17 = scalar_lea.hbm %s11336_s3, 16  ;;  %p11353_p9 = scmp.ne.s32.totalorder %s11345_s0, 0 }
  0xdf   : > { %p8842_p11 = scmp.ne.s32.totalorder %s11336_s3, %s8841_s17  ;;  %p8848_p0 = scmp.lt.u32.totalorder %s8841_s17, %s11336_s3 }
  0xe1   : > { %p8844_p10 = pnand %p8842_p11, %p11353_p9 }
  0xe3   : > { %p8845_p12 = pneg %p8844_p10 }
  0xe5   : > { %p8850_p5 = pnand %p8848_p0, %p8845_p12 }
  0xe7   : > { %8853 = shalt.err (!%p8850_p5)
}
  0xe8   : > { %s8854_s8 = scalar_lea.vmem %s1327_s23, 16  ;;  %s8861_s18 = scalar_lea.vmem %s1327_s23, 32 }
  0xe9   : > { %p8855_p1 = scmp.ne.s32.totalorder %s1327_s23, %s8854_s8  ;;  %p8862_p8 = scmp.lt.s32.totalorder %s1327_s23, %s1327_s23 }
  0xea   : > { %p8863_p3 = scmp.lt.s32.totalorder %s8861_s18, %s8854_s8 }
  0xeb   : > { %p8857_p4 = pnand %p8855_p1, %p11353_p9 }
  0xec   : > { %p8864_p7 = por %p8863_p3, %p8862_p8 }
  0xed   : > { %p8858_p6 = pneg %p8857_p4 }
  0xef   : > { %p8865_p13 = pnand %p8864_p7, %p8858_p6 }
  0xf1   : > { %8868 = shalt.err (!%p8865_p13)
}
  0xf2   : > { %p11354_p2 = scmp.ne.s32.totalorder %s11343_s16, 0  ;;  %s8869_s17 = scalar_lea.hbm %s11331_s19, 512 }
  0xf3   : > { %p8870_p11 = scmp.ne.s32.totalorder %s11331_s19, %s8869_s17  ;;  %p8876_p0 = scmp.lt.u32.totalorder %s8869_s17, %s11331_s19 }
  0xf4   : > { %8456 = dma.hbm_to_vmem [thread:$0]  (!%p11354_p2), %s11336_s3, 16, %s1327_s23, [#allocation7]  }
  0xf5   : > { %p8872_p10 = pnand %p8870_p11, %p11353_p9 }
  0xf7   : > { %p8873_p12 = pneg %p8872_p10 }
  0xf9   : > { %p8878_p5 = pnand %p8876_p0, %p8873_p12 }
  0xfb   : > { %8881 = shalt.err (!%p8878_p5)
}
  0xfc   : > { %s8882_s8 = scalar_lea.vmem %s9829_s9, 512  ;;  %p8890_p6 = scmp.lt.s32.totalorder %s9829_s9, %s9829_s9 }
  0xfd   : > { %p8883_p13 = scmp.ne.s32.totalorder %s9829_s9, %s8882_s8  ;;  %p8891_p8 = scmp.lt.s32.totalorder %s8882_s8, %s8882_s8 }
  0xff   : > { %p8885_p1 = pnand %p8883_p13, %p11353_p9  ;;  %p8892_p3 = por %p8891_p8, %p8890_p6 }
 0x101   : > { %p8886_p4 = pneg %p8885_p1 }
 0x103   : > { %p8893_p7 = pnand %p8892_p3, %p8886_p4 }
 0x105   : > { %8896 = shalt.err (!%p8893_p7)
}
 0x106   : > { %8462 = dma.hbm_to_vmem [thread:$0]  (!%p11354_p2), %s11331_s19, 512, %s9829_s9, [#allocation10], %s11253_s5, %s11253_s5, %s11254_s26  }
 0x107   : > { %s9388_s28 = smov [#allocation12]   ;;  %s9389_s23 = smov [#allocation15]  }
 0x108   : > { %s1374_s22 = sshll.u32 %s9388_s28, 4  ;;  %s1398_s21 = sshll.u32 %s9389_s23, 4  ;;  %s1375_s22 = int_to_ptr.vmem [resolvable:$true] %s1374_s22  ;;  %s9859_s21 = int_to_ptr.vmem [resolvable:$true] %s1398_s21 }
 0x109   : > { %s8897_s18 = scalar_lea.hbm %s11326_s30, 512 }
 0x10a   : > { %p8898_p11 = scmp.ne.s32.totalorder %s11326_s30, %s8897_s18  ;;  %p8904_p0 = scmp.lt.u32.totalorder %s8897_s18, %s11326_s30 }
 0x10c   : > { %p8900_p10 = pnand %p8898_p11, %p11353_p9 }
 0x10e   : > { %p8901_p12 = pneg %p8900_p10 }
 0x110   : > { %p8906_p5 = pnand %p8904_p0, %p8901_p12 }
 0x112   : > { %8909 = shalt.err (!%p8906_p5)
}
 0x113   : > { %s8910_s17 = scalar_lea.vmem %s1375_s22, 512  ;;  %p8918_p6 = scmp.lt.s32.totalorder %s1375_s22, %s1375_s22 }
 0x114   : > { %p8911_p13 = scmp.ne.s32.totalorder %s1375_s22, %s8910_s17  ;;  %p8919_p8 = scmp.lt.s32.totalorder %s8910_s17, %s8910_s17 }
 0x116   : > { %p8913_p1 = pnand %p8911_p13, %p11353_p9  ;;  %p8920_p3 = por %p8919_p8, %p8918_p6 }
 0x118   : > { %p8914_p4 = pneg %p8913_p1 }
 0x11a   : > { %p8921_p7 = pnand %p8920_p3, %p8914_p4 }
 0x11c   : > { %8924 = shalt.err (!%p8921_p7)
}
 0x11d   : > { %8468 = dma.hbm_to_vmem [thread:$0]  (!%p11354_p2), %s11326_s30, 512, %s1375_s22, [#allocation13], %s11253_s5, %s11253_s5, %s11254_s26  }
 0x11e   : > { %s8925_s9 = scalar_lea.hbm %s11334_s12, 512 }
 0x11f   : > { %p8926_p11 = scmp.ne.s32.totalorder %s11334_s12, %s8925_s9  ;;  %p8932_p0 = scmp.lt.u32.totalorder %s8925_s9, %s11334_s12 }
 0x121   : > { %p8928_p10 = pnand %p8926_p11, %p11353_p9 }
 0x123   : > { %p8929_p12 = pneg %p8928_p10 }
 0x125   : > { %p8934_p5 = pnand %p8932_p0, %p8929_p12 }
 0x127   : > { %8937 = shalt.err (!%p8934_p5)
}
 0x128   : > { %s8938_s8 = scalar_lea.vmem %s9859_s21, 512  ;;  %p8946_p6 = scmp.lt.s32.totalorder %s9859_s21, %s9859_s21 }
 0x129   : > { %p8939_p13 = scmp.ne.s32.totalorder %s9859_s21, %s8938_s8  ;;  %p8947_p8 = scmp.lt.s32.totalorder %s8938_s8, %s8938_s8 }
 0x12b   : > { %p8941_p1 = pnand %p8939_p13, %p11353_p9  ;;  %p8948_p3 = por %p8947_p8, %p8946_p6 }
 0x12d   : > { %p8942_p4 = pneg %p8941_p1 }
 0x12f   : > { %p8949_p7 = pnand %p8948_p3, %p8942_p4 }
 0x131   : > { %8952 = shalt.err (!%p8949_p7)
}
 0x132   : > { %8474 = dma.hbm_to_vmem [thread:$0]  (!%p11354_p2), %s11334_s12, 512, %s9859_s21, [#allocation16], %s11253_s5, %s11253_s5, %s11254_s26  }
 0x133   : > { %s9390_s28 = smov [#allocation18]   ;;  %s9391_s23 = smov [#allocation21]  }
 0x134   : > { %s1422_s22 = sshll.u32 %s9390_s28, 4  ;;  %s1446_s18 = sshll.u32 %s9391_s23, 4  ;;  %s1423_s22 = int_to_ptr.vmem [resolvable:$true] %s1422_s22  ;;  %s9892_s18 = int_to_ptr.vmem [resolvable:$true] %s1446_s18 }
 0x135   : > { %s8953_s17 = scalar_lea.hbm %s11327_s27, 512 }
 0x136   : > { %p8954_p11 = scmp.ne.s32.totalorder %s11327_s27, %s8953_s17  ;;  %p8960_p0 = scmp.lt.u32.totalorder %s8953_s17, %s11327_s27 }
 0x138   : > { %p8956_p10 = pnand %p8954_p11, %p11353_p9 }
 0x13a   : > { %p8957_p12 = pneg %p8956_p10 }
 0x13c   : > { %p8962_p5 = pnand %p8960_p0, %p8957_p12 }
 0x13e   : > { %8965 = shalt.err (!%p8962_p5)
}
 0x13f   : > { %s8966_s9 = scalar_lea.vmem %s1423_s22, 512  ;;  %p8974_p6 = scmp.lt.s32.totalorder %s1423_s22, %s1423_s22 }
 0x140   : > { %p8967_p13 = scmp.ne.s32.totalorder %s1423_s22, %s8966_s9  ;;  %p8975_p8 = scmp.lt.s32.totalorder %s8966_s9, %s8966_s9 }
 0x142   : > { %p8969_p1 = pnand %p8967_p13, %p11353_p9  ;;  %p8976_p3 = por %p8975_p8, %p8974_p6 }
 0x144   : > { %p8970_p4 = pneg %p8969_p1 }
 0x146   : > { %p8977_p7 = pnand %p8976_p3, %p8970_p4 }
 0x148   : > { %8980 = shalt.err (!%p8977_p7)
}
 0x149   : > { %8480 = dma.hbm_to_vmem [thread:$0]  (!%p11354_p2), %s11327_s27, 512, %s1423_s22, [#allocation19], %s11253_s5, %s11253_s5, %s11254_s26  }
 0x14a   : > { %s8981_s21 = scalar_lea.hbm %s11328_s25, 512 }
 0x14b   : > { %p8982_p11 = scmp.ne.s32.totalorder %s11328_s25, %s8981_s21  ;;  %p8988_p0 = scmp.lt.u32.totalorder %s8981_s21, %s11328_s25 }
 0x14d   : > { %p8984_p10 = pnand %p8982_p11, %p11353_p9 }
 0x14f   : > { %p8985_p12 = pneg %p8984_p10 }
 0x151   : > { %p8990_p5 = pnand %p8988_p0, %p8985_p12 }
 0x153   : > { %8993 = shalt.err (!%p8990_p5)
}
 0x154   : > { %s8994_s8 = scalar_lea.vmem %s9892_s18, 512  ;;  %p9002_p6 = scmp.lt.s32.totalorder %s9892_s18, %s9892_s18 }
 0x155   : > { %p8995_p13 = scmp.ne.s32.totalorder %s9892_s18, %s8994_s8  ;;  %p9003_p8 = scmp.lt.s32.totalorder %s8994_s8, %s8994_s8 }
 0x157   : > { %p8997_p1 = pnand %p8995_p13, %p11353_p9  ;;  %p9004_p3 = por %p9003_p8, %p9002_p6 }
 0x159   : > { %p8998_p4 = pneg %p8997_p1 }
 0x15b   : > { %p9005_p7 = pnand %p9004_p3, %p8998_p4 }
 0x15d   : > { %9008 = shalt.err (!%p9005_p7)
}
 0x15e   : > { %8486 = dma.hbm_to_vmem [thread:$0]  (!%p11354_p2), %s11328_s25, 512, %s9892_s18, [#allocation22], %s11253_s5, %s11253_s5, %s11254_s26  }
 0x15f   : > { %s11355_s28 = sshll.u32 %s9331_s7, 4  ;;  %s1636_s23 = scalar_lea.vmem [#allocation28], %s9756_s4 }
 0x160   : > { %s9928_s22 = scalar_lea.hbm %s11333_s13, %s11355_s28  ;;  %s1643_s17 = sshll.u32 %s1636_s23, 4  ;;  %s9931_s17 = int_to_ptr.vmem [resolvable:$true] %s1643_s17 }
 0x161   : > { %s9392_s9 = smov [#allocation8]   ;;  %s9009_s8 = scalar_lea.hbm %s9928_s22, 16 }
 0x162   : > { %s1340_s21 = sshll.u32 %s9392_s9, 4  ;;  %p9010_p11 = scmp.ne.s32.totalorder %s9928_s22, %s9009_s8  ;;  %s1341_s21 = int_to_ptr.vmem [resolvable:$true] %s1340_s21 }
 0x163   : > { %p11356_p10 = scmp.ne.s32.totalorder %s11351_s10, 0  ;;  %s9014_s3 = scalar_lea.hbm %s11333_s13, 32 }
 0x164   : > { %p9015_p5 = scmp.lt.u32.totalorder %s9928_s22, %s11333_s13  ;;  %p9016_p13 = scmp.lt.u32.totalorder %s9014_s3, %s9009_s8 }
 0x165   : > { %p9012_p12 = pnand %p9010_p11, %p11356_p10  ;;  %p9018_p4 = scmp.lt.u32.totalorder %s9009_s8, %s9928_s22 }
 0x166   : > { %p9017_p1 = por %p9016_p13, %p9015_p5 }
 0x167   : > { %p9013_p0 = pneg %p9012_p12 }
 0x168   : > { %p9019_p6 = por %p9018_p4, %p9017_p1 }
 0x16a   : > { %p9020_p8 = pnand %p9019_p6, %p9013_p0 }
 0x16c   : > { %9023 = shalt.err (!%p9020_p8)
}
 0x16d   : > { %s9024_s18 = scalar_lea.vmem %s9931_s17, 16  ;;  %s9393_s28 = smov [#allocation28]  }
 0x16e   : > { %p9025_p3 = scmp.ne.s32.totalorder %s9931_s17, %s9024_s18  ;;  %s9029_s23 = sshll.u32 %s9393_s28, 4  ;;  %s9030_s23 = int_to_ptr.vmem [resolvable:$false] %s9029_s23 }
 0x16f   : > { %s9031_s9 = scalar_lea.vmem %s9030_s23, 32  ;;  %p9032_p11 = scmp.lt.s32.totalorder %s9931_s17, %s9030_s23 }
 0x170   : > { %p9027_p7 = pnand %p9025_p3, %p11356_p10  ;;  %p9033_p12 = scmp.lt.s32.totalorder %s9031_s9, %s9024_s18 }
 0x172   : > { %p9028_p2 = pneg %p9027_p7  ;;  %p9034_p5 = por %p9033_p12, %p9032_p11 }
 0x174   : > { %p9035_p13 = pnand %p9034_p5, %p9028_p2 }
 0x176   : > { %9038 = shalt.err (!%p9035_p13)
}
 0x177   : > { %p11357_p0 = scmp.ne.s32.totalorder %s11350_s29, 0  ;;  %s9039_s3 = scalar_lea.hbm %s11332_s14, 16 }
 0x178   : > { %p9040_p1 = scmp.ne.s32.totalorder %s11332_s14, %s9039_s3  ;;  %p9046_p8 = scmp.lt.u32.totalorder %s9039_s3, %s11332_s14 }
 0x179   : > { %8502 = dma.hbm_to_vmem [thread:$0]  (!%p11357_p0), %s9928_s22, 16, %s9931_s17, %s9772_s2  }
 0x17a   : > { %p9042_p4 = pnand %p9040_p1, %p11353_p9 }
 0x17c   : > { %p9043_p6 = pneg %p9042_p4 }
 0x17e   : > { %p9048_p3 = pnand %p9046_p8, %p9043_p6 }
 0x180   : > { %9051 = shalt.err (!%p9048_p3)
}
 0x181   : > { %s9052_s8 = scalar_lea.vmem %s1341_s21, 16  ;;  %s9059_s18 = scalar_lea.vmem %s1341_s21, 32 }
 0x182   : > { %p9053_p2 = scmp.ne.s32.totalorder %s1341_s21, %s9052_s8  ;;  %p9060_p12 = scmp.lt.s32.totalorder %s1341_s21, %s1341_s21 }
 0x183   : > { %p9061_p5 = scmp.lt.s32.totalorder %s9059_s18, %s9052_s8 }
 0x184   : > { %p9055_p7 = pnand %p9053_p2, %p11353_p9 }
 0x185   : > { %p9062_p13 = por %p9061_p5, %p9060_p12 }
 0x186   : > { %p9056_p11 = pneg %p9055_p7 }
 0x188   : > { %p9063_p0 = pnand %p9062_p13, %p9056_p11 }
 0x18a   : > { %9066 = shalt.err (!%p9063_p0)
}
 0x18b   : > { %p11358_p10 = scmp.ne.s32.totalorder %s11343_s16, 0  ;;  %s9394_s22 = smov [#allocation11]  }
 0x18c   : > { %s1364_s17 = sshll.u32 %s9394_s22, 4  ;;  %s9395_s28 = smov [#allocation14]   ;;  %s1365_s17 = int_to_ptr.vmem [resolvable:$true] %s1364_s17 }
 0x18d   : > { %8459 = dma.hbm_to_vmem [thread:$0]  (!%p11358_p10), %s11332_s14, 16, %s1341_s21, [#allocation7]  }
 0x18e   : > { %s1388_s23 = sshll.u32 %s9395_s28, 4  ;;  %s9067_s9 = scalar_lea.hbm %s11329_s24, 16  ;;  %s1389_s23 = int_to_ptr.vmem [resolvable:$true] %s1388_s23 }
 0x18f   : > { %p9068_p1 = scmp.ne.s32.totalorder %s11329_s24, %s9067_s9  ;;  %p9074_p8 = scmp.lt.u32.totalorder %s9067_s9, %s11329_s24 }
 0x191   : > { %p9070_p4 = pnand %p9068_p1, %p11353_p9 }
 0x193   : > { %p9071_p6 = pneg %p9070_p4 }
 0x195   : > { %p9076_p0 = pnand %p9074_p8, %p9071_p6 }
 0x197   : > { %9079 = shalt.err (!%p9076_p0)
}
 0x198   : > { %s9080_s3 = scalar_lea.vmem %s1365_s17, 16  ;;  %s9087_s21 = scalar_lea.vmem %s1365_s17, 32 }
 0x199   : > { %p9081_p3 = scmp.ne.s32.totalorder %s1365_s17, %s9080_s3  ;;  %p9088_p11 = scmp.lt.s32.totalorder %s1365_s17, %s1365_s17 }
 0x19a   : > { %p9089_p12 = scmp.lt.s32.totalorder %s9087_s21, %s9080_s3 }
 0x19b   : > { %p9083_p2 = pnand %p9081_p3, %p11353_p9 }
 0x19c   : > { %p9090_p5 = por %p9089_p12, %p9088_p11 }
 0x19d   : > { %p9084_p7 = pneg %p9083_p2 }
 0x19f   : > { %p9091_p13 = pnand %p9090_p5, %p9084_p7 }
 0x1a1   : > { %9094 = shalt.err (!%p9091_p13)
}
 0x1a2   : > { %8465 = dma.hbm_to_vmem [thread:$0]  (!%p11358_p10), %s11329_s24, 16, %s1365_s17, [#allocation10]  }
 0x1a3   : > { %s9095_s8 = scalar_lea.hbm %s11335_s6, 16 }
 0x1a4   : > { %p9096_p1 = scmp.ne.s32.totalorder %s11335_s6, %s9095_s8  ;;  %p9102_p8 = scmp.lt.u32.totalorder %s9095_s8, %s11335_s6 }
 0x1a6   : > { %p9098_p4 = pnand %p9096_p1, %p11353_p9 }
 0x1a8   : > { %p9099_p6 = pneg %p9098_p4 }
 0x1aa   : > { %p9104_p0 = pnand %p9102_p8, %p9099_p6 }
 0x1ac   : > { %9107 = shalt.err (!%p9104_p0)
}
 0x1ad   : > { %s9108_s18 = scalar_lea.vmem %s1389_s23, 16  ;;  %s9115_s22 = scalar_lea.vmem %s1389_s23, 32 }
 0x1ae   : > { %p9109_p3 = scmp.ne.s32.totalorder %s1389_s23, %s9108_s18  ;;  %p9116_p11 = scmp.lt.s32.totalorder %s1389_s23, %s1389_s23 }
 0x1af   : > { %p9117_p12 = scmp.lt.s32.totalorder %s9115_s22, %s9108_s18 }
 0x1b0   : > { %p9111_p2 = pnand %p9109_p3, %p11353_p9 }
 0x1b1   : > { %p9118_p5 = por %p9117_p12, %p9116_p11 }
 0x1b2   : > { %p9112_p7 = pneg %p9111_p2 }
 0x1b4   : > { %p9119_p13 = pnand %p9118_p5, %p9112_p7 }
 0x1b6   : > { %9122 = shalt.err (!%p9119_p13)
}
 0x1b7   : > { %8471 = dma.hbm_to_vmem [thread:$0]  (!%p11358_p10), %s11335_s6, 16, %s1389_s23, [#allocation13]  }
 0x1b8   : > { %s9396_s17 = smov [#allocation17]   ;;  %s9397_s9 = smov [#allocation20]  }
 0x1b9   : > { %s1412_s28 = sshll.u32 %s9396_s17, 4  ;;  %s1436_s3 = sshll.u32 %s9397_s9, 4  ;;  %s1413_s28 = int_to_ptr.vmem [resolvable:$true] %s1412_s28  ;;  %s1437_s3 = int_to_ptr.vmem [resolvable:$true] %s1436_s3 }
 0x1ba   : > { %s9123_s21 = scalar_lea.hbm %s11330_s20, 16 }
 0x1bb   : > { %p9124_p1 = scmp.ne.s32.totalorder %s11330_s20, %s9123_s21  ;;  %p9130_p8 = scmp.lt.u32.totalorder %s9123_s21, %s11330_s20 }
 0x1bd   : > { %p9126_p4 = pnand %p9124_p1, %p11353_p9 }
 0x1bf   : > { %p9127_p6 = pneg %p9126_p4 }
 0x1c1   : > { %p9132_p0 = pnand %p9130_p8, %p9127_p6 }
 0x1c3   : > { %9135 = shalt.err (!%p9132_p0)
}
 0x1c4   : > { %s9136_s8 = scalar_lea.vmem %s1413_s28, 16  ;;  %s9143_s23 = scalar_lea.vmem %s1413_s28, 32 }
 0x1c5   : > { %p9137_p3 = scmp.ne.s32.totalorder %s1413_s28, %s9136_s8  ;;  %p9144_p11 = scmp.lt.s32.totalorder %s1413_s28, %s1413_s28 }
 0x1c6   : > { %p9145_p12 = scmp.lt.s32.totalorder %s9143_s23, %s9136_s8 }
 0x1c7   : > { %p9139_p2 = pnand %p9137_p3, %p11353_p9 }
 0x1c8   : > { %p9146_p5 = por %p9145_p12, %p9144_p11 }
 0x1c9   : > { %p9140_p7 = pneg %p9139_p2 }
 0x1cb   : > { %p9147_p13 = pnand %p9146_p5, %p9140_p7 }
 0x1cd   : > { %9150 = shalt.err (!%p9147_p13)
}
 0x1ce   : > { %s11359_s18 = sld [smem:[#allocation56_spill]] }
 0x1cf   : > { %8477 = dma.hbm_to_vmem [thread:$0]  (!%p11358_p10), %s11330_s20, 16, %s1413_s28, [#allocation16]  }
 0x1d4   : > { %s9151_s22 = scalar_lea.hbm %s11359_s18, 16 }
 0x1d5   : > { %p9152_p1 = scmp.ne.s32.totalorder %s11359_s18, %s9151_s22  ;;  %p9158_p8 = scmp.lt.u32.totalorder %s9151_s22, %s11359_s18 }
 0x1d7   : > { %p9154_p4 = pnand %p9152_p1, %p11353_p9 }
 0x1d9   : > { %p9155_p6 = pneg %p9154_p4 }
 0x1db   : > { %p9160_p0 = pnand %p9158_p8, %p9155_p6 }
 0x1dd   : > { %9163 = shalt.err (!%p9160_p0)
}
 0x1de   : > { %s9164_s17 = scalar_lea.vmem %s1437_s3, 16  ;;  %s9171_s9 = scalar_lea.vmem %s1437_s3, 32 }
 0x1df   : > { %p9165_p3 = scmp.ne.s32.totalorder %s1437_s3, %s9164_s17  ;;  %p9172_p11 = scmp.lt.s32.totalorder %s1437_s3, %s1437_s3 }
 0x1e0   : > { %p9173_p12 = scmp.lt.s32.totalorder %s9171_s9, %s9164_s17 }
 0x1e1   : > { %p9167_p2 = pnand %p9165_p3, %p11353_p9 }
 0x1e2   : > { %p9174_p5 = por %p9173_p12, %p9172_p11 }
 0x1e3   : > { %p9168_p7 = pneg %p9167_p2 }
 0x1e5   : > { %p9175_p13 = pnand %p9174_p5, %p9168_p7 }
 0x1e7   : > { %9178 = shalt.err (!%p9175_p13)
}
 0x1e8   : > { %s11360_s28 = sld [smem:[#allocation58_spill]]  ;;  %s9398_s8 = smov [#allocation23]  }
 0x1e9   : > { %8483 = dma.hbm_to_vmem [thread:$0]  (!%p11358_p10), %s11359_s18, 16, %s1437_s3, [#allocation19]  }
 0x1ea   : > { %s1460_s23 = sshll.u32 %s9398_s8, 4  ;;  %s9399_s22 = smov [#allocation24]   ;;  %s1461_s23 = int_to_ptr.vmem [resolvable:$true] %s1460_s23 }
 0x1eb   : > { %s1474_s5 = sshll.u32 %s9399_s22, 4  ;;  %s1475_s5 = int_to_ptr.vmem [resolvable:$true] %s1474_s5 }
 0x1ee   : > { %s11361_s21 = smov %s11360_s28  ;;  %s9179_s26 = scalar_lea.hbm %s11360_s28, 16 }
 0x1ef   : > { %p9180_p1 = scmp.ne.s32.totalorder %s11361_s21, %s9179_s26  ;;  %p9186_p8 = scmp.lt.u32.totalorder %s9179_s26, %s11361_s21 }
 0x1f1   : > { %p9182_p4 = pnand %p9180_p1, %p11353_p9 }
 0x1f3   : > { %p9183_p6 = pneg %p9182_p4 }
 0x1f5   : > { %p9188_p0 = pnand %p9186_p8, %p9183_p6 }
 0x1f7   : > { %9191 = shalt.err (!%p9188_p0)
}
 0x1f8   : > { %s9192_s17 = scalar_lea.vmem %s1461_s23, 16  ;;  %s9199_s3 = scalar_lea.vmem %s1461_s23, 32 }
 0x1f9   : > { %p9193_p3 = scmp.ne.s32.totalorder %s1461_s23, %s9192_s17  ;;  %p9200_p11 = scmp.lt.s32.totalorder %s1461_s23, %s1461_s23 }
 0x1fa   : > { %p9201_p12 = scmp.lt.s32.totalorder %s9199_s3, %s9192_s17 }
 0x1fb   : > { %p9195_p2 = pnand %p9193_p3, %p11353_p9 }
 0x1fc   : > { %p9202_p5 = por %p9201_p12, %p9200_p11 }
 0x1fd   : > { %p9196_p7 = pneg %p9195_p2 }
 0x1ff   : > { %p9203_p13 = pnand %p9202_p5, %p9196_p7 }
 0x201   : > { %9206 = shalt.err (!%p9203_p13)
}
 0x202   : > { %s11362_s9 = sld [smem:[#allocation81_spill]]  ;;  %s11363_s26 = sld [smem:[#allocation60_spill]] }
 0x203   : > { %8489 = dma.hbm_to_vmem [thread:$0]  (!%p11358_p10), %s11361_s21, 16, %s1461_s23, [#allocation22]  }
 0x204   : > { %s11364_s28 = sshll.u32 %s9331_s7, 9 }
 0x208   : > { %s10014_s8 = scalar_lea.hbm %s11362_s9, %s11364_s28  ;;  %s9207_s22 = scalar_lea.hbm %s11363_s26, 16 }
 0x209   : > { %p9208_p1 = scmp.ne.s32.totalorder %s11363_s26, %s9207_s22  ;;  %p9214_p8 = scmp.lt.u32.totalorder %s9207_s22, %s11363_s26 }
 0x20b   : > { %p9210_p4 = pnand %p9208_p1, %p11353_p9 }
 0x20d   : > { %p9211_p6 = pneg %p9210_p4 }
 0x20f   : > { %p9216_p0 = pnand %p9214_p8, %p9211_p6 }
 0x211   : > { %9219 = shalt.err (!%p9216_p0)
}
 0x212   : > { %s9220_s17 = scalar_lea.vmem %s1475_s5, 16  ;;  %s9227_s3 = scalar_lea.vmem %s1475_s5, 32 }
 0x213   : > { %p9221_p3 = scmp.ne.s32.totalorder %s1475_s5, %s9220_s17  ;;  %p9228_p11 = scmp.lt.s32.totalorder %s1475_s5, %s1475_s5 }
 0x214   : > { %p9229_p12 = scmp.lt.s32.totalorder %s9227_s3, %s9220_s17 }
 0x215   : > { %p9223_p2 = pnand %p9221_p3, %p11353_p9 }
 0x216   : > { %p9230_p5 = por %p9229_p12, %p9228_p11 }
 0x217   : > { %p9224_p7 = pneg %p9223_p2 }
 0x219   : > { %p9231_p13 = pnand %p9230_p5, %p9224_p7 }
 0x21b   : > { %9234 = shalt.err (!%p9231_p13)
}
 0x21c   : > { %8492 = dma.hbm_to_vmem [thread:$0]  (!%p11358_p10), %s11363_s26, 16, %s1475_s5, [#allocation25]  }
 0x21d   : > { %s11365_s7 = sshll.u32 %s9756_s4, 5  ;;  %s9235_s28 = scalar_lea.hbm %s10014_s8, 512 }
 0x21e   : > { %s1666_s0 = scalar_lea.vmem [#allocation29], %s11365_s7  ;;  %p9236_p9 = scmp.ne.s32.totalorder %s10014_s8, %s9235_s28 }
 0x21f   : > { %s1673_s23 = sshll.u32 %s1666_s0, 4  ;;  %p11366_p1 = scmp.ne.s32.totalorder %s11351_s10, 0  ;;  %s10028_s23 = int_to_ptr.vmem [resolvable:$true] %s1673_s23 }
 0x220   : > { %s9240_s16 = scalar_lea.hbm %s11362_s9, 1024  ;;  %p9241_p8 = scmp.lt.u32.totalorder %s10014_s8, %s11362_s9 }
 0x221   : > { %p9238_p4 = pnand %p9236_p9, %p11366_p1  ;;  %p9242_p0 = scmp.lt.u32.totalorder %s9240_s16, %s9235_s28 }
 0x222   : > { %p9244_p2 = scmp.lt.u32.totalorder %s9235_s28, %s10014_s8 }
 0x223   : > { %p9239_p6 = pneg %p9238_p4  ;;  %p9243_p3 = por %p9242_p0, %p9241_p8 }
 0x225   : > { %p9245_p7 = por %p9244_p2, %p9243_p3 }
 0x227   : > { %p9246_p11 = pnand %p9245_p7, %p9239_p6 }
 0x229   : > { %9249 = shalt.err (!%p9246_p11)
}
 0x22a   : > { %s9250_s4 = scalar_lea.vmem %s10028_s23, 512  ;;  %s9400_s5 = smov [#allocation29]  }
 0x22b   : > { %p9251_p10 = scmp.ne.s32.totalorder %s10028_s23, %s9250_s4  ;;  %s9255_s22 = sshll.u32 %s9400_s5, 4  ;;  %s9256_s22 = int_to_ptr.vmem [resolvable:$false] %s9255_s22 }
 0x22c   : > { %s9257_s17 = scalar_lea.vmem %s9256_s22, 1024  ;;  %p9258_p13 = scmp.lt.s32.totalorder %s10028_s23, %s9256_s22 }
 0x22d   : > { %p9253_p12 = pnand %p9251_p10, %p11366_p1  ;;  %p9259_p9 = scmp.lt.s32.totalorder %s9257_s17, %s9250_s4 }
 0x22f   : > { %p9254_p5 = pneg %p9253_p12  ;;  %p9260_p4 = por %p9259_p9, %p9258_p13 }
 0x231   : > { %p9261_p8 = pnand %p9260_p4, %p9254_p5 }
 0x233   : > { %9264 = shalt.err (!%p9261_p8)
}
 0x234   : > { %p11367_p6 = scmp.ne.s32.totalorder %s11350_s29, 0  ;;  %s11368_s3 = smov 8  }
 0x235   : > { %s11369_s7 = smov 128   ;;  %p11370_p1 = scmp.ne.s32.totalorder %s11342_s15, 0 }
 0x236   : > { %8505 = dma.hbm_to_vmem [thread:$0]  (!%p11367_p6), %s10014_s8, 512, %s10028_s23, %s9772_s2, %s11369_s7, %s11369_s7, %s11368_s3  }
 0x237   : > { %1717 = sbr.rel (%p11370_p1) target bundleno = 7059 (0x1b93), region = 212 }
 0x23e   : > { %p11371_p0 = scmp.eq.s32.totalorder %s9699_s11, 0 }
 0x240   : > { %9282 = dma.done.wait (%p11371_p0), [#allocation5], 16   ;;  %p11372_p3 = pmov %p11371_p0 }
 0x241   : > { %p11373_p2 = pmov %p11371_p0 }
 0x242   : > { %9284 = vsyncadd (%p11372_p3), [#allocation5], 4294967280 }
 0x243   : > { %9286 = dma.done.wait (%p11373_p2), [#allocation7], 32   ;;  %p11374_p7 = pmov %p11371_p0 }
 0x244   : > { %p11375_p11 = pmov %p11371_p0 }
 0x245   : > { %9288 = vsyncadd (%p11374_p7), [#allocation7], 4294967264 }
 0x246   : > { %9290 = dma.done.wait (%p11375_p11), [#allocation10], 528   ;;  %p11376_p10 = pmov %p11371_p0 }
 0x247   : > { %p11377_p12 = pmov %p11371_p0 }
 0x248   : > { %9292 = vsyncadd (%p11376_p10), [#allocation10], 4294966768 }
 0x249   : > { %9294 = dma.done.wait (%p11377_p12), [#allocation13], 528   ;;  %p11378_p5 = pmov %p11371_p0 }
 0x24a   : > { %p11379_p13 = pmov %p11371_p0 }
 0x24b   : > { %9296 = vsyncadd (%p11378_p5), [#allocation13], 4294966768 }
 0x24c   : > { %9298 = dma.done.wait (%p11379_p13), [#allocation16], 528   ;;  %p11380_p9 = pmov %p11371_p0 }
 0x24d   : > { %p11381_p4 = pmov %p11371_p0 }
 0x24e   : > { %9300 = vsyncadd (%p11380_p9), [#allocation16], 4294966768 }
 0x24f   : > { %9302 = dma.done.wait (%p11381_p4), [#allocation19], 528   ;;  %p11382_p8 = pmov %p11371_p0 }
 0x250   : > { %p11383_p6 = pmov %p11371_p0 }
 0x251   : > { %9304 = vsyncadd (%p11382_p8), [#allocation19], 4294966768 }
 0x252   : > { %9306 = dma.done.wait (%p11383_p6), [#allocation22], 528   ;;  %p11384_p1 = pmov %p11371_p0 }
 0x254   : > { %9308 = vsyncadd (%p11384_p1), [#allocation22], 4294966768 }
 0x255   : > { %9310 = dma.done.wait (%p11371_p0), [#allocation25], 16   ;;  %p11385_p3 = pmov %p11371_p0 }
 0x256   : > { %s11386_s29 = sld [smem:[#allocation92_spill]]  ;;  %s1775_s2 = sand.u32 1, %s9699_s11  }
 0x257   : > { %9312 = vsyncadd (%p11385_p3), [#allocation25], 4294967280  ;;  %s10087_s15 = sand.u32 1, %s9323_s1   ;;  %s1776_s10 = scalar_lea.sflag [#allocation5], %s1775_s2 }
 0x25c   : > { %p11387_p2 = scmp.ne.s32.totalorder %s11386_s29, 0 }
 0x25e   : > { %9314 = dma.done.wait (%p11387_p2), %s1776_s10, 1056  }
 0x25f   : > { %9316 = vsyncadd (%p11387_p2), %s1776_s10, 4294966240  ;;  %s11389_s23 = sld [smem:[#allocation61_spill]]  ;;  %s11390_s28 = sld [smem:[#allocation62_spill]] }
 0x260   : > { %s11391_s16 = sld [smem:[#allocation63_spill]]  ;;  %s11392_s4 = sld [smem:[#allocation65_spill]] }
 0x261   : > { %s11396_s3 = sld [smem:[#allocation69_spill]]  ;;  %s11397_s7 = sld [smem:[#allocation70_spill]] }
 0x262   : > { %s11398_s2 = sld [smem:[#allocation71_spill]]  ;;  %s11399_s8 = sld [smem:[#allocation72_spill]] }
 0x263   : > { %p2017_p7 = scmp.lt.s32.totalorder %s9699_s11, 1  ;;  %s11401_s29 = sld [smem:[#allocation74_spill]] }
 0x264   : > { %s11402_s12 = sld [smem:[#allocation75_spill]]  ;;  %s11403_s14 = sld [smem:[#allocation79_spill]] }
 0x265   : > { %s10097_s10 = scalar_select %p2017_p7, %s9699_s11, 1 }
 0x266   : > { %s11404_s19 = sld [smem:[#allocation80_spill]]  ;;  %s11406_s6 = sld [smem:[#allocation82_spill]] }
 0x267   : > { %s7605_s13 = sshll.u32 %s10097_s10, 5  ;;  %s11408_s25 = sld [smem:[#allocation83_spill]] }
 0x268   : > { %s10103_s20 = scalar_lea.vmem %s11389_s23, %s7605_s13  ;;  %s10106_s21 = scalar_lea.vmem %s11390_s28, %s7605_s13 }
 0x269   : > { %11405 = sst [smem:[#allocation93_spill]] %s10103_s20  ;;  %s10109_s24 = scalar_lea.vmem %s11391_s16, %s7605_s13 }
 0x26a   : > { %11407 = sst [smem:[#allocation94_spill]] %s10106_s21  ;;  %s10112_s26 = scalar_lea.vmem %s11392_s4, %s7605_s13 }
 0x26b   : > { %11409 = sst [smem:[#allocation95_spill]] %s10112_s26  ;;  %s11410_s27 = sld [smem:[#allocation84_spill]] }
 0x26c   : > { %s11411_s1 = sld [smem:[#allocation85_spill]]  ;;  %s11412_s18 = sld [smem:[#allocation86_spill]] }
 0x26d   : > { %s10121_s20 = scalar_lea.vmem %s11396_s3, %s7605_s13  ;;  %s11414_s28 = sld [smem:[#allocation87_spill]] }
 0x26e   : > { %11413 = sst [smem:[#allocation96_spill]] %s10121_s20  ;;  %s10124_s21 = scalar_lea.vmem %s11397_s7, %s7605_s13 }
 0x26f   : > { %11415 = sst [smem:[#allocation97_spill]] %s10124_s21  ;;  %s10127_s16 = scalar_lea.vmem %s11398_s2, %s7605_s13 }
 0x270   : > { %11416 = sst [smem:[#allocation98_spill]] %s10127_s16  ;;  %s10130_s4 = scalar_lea.vmem %s11399_s8, %s7605_s13 }
 0x271   : > { %11417 = sst [smem:[#allocation99_spill]] %s10130_s4  ;;  %s10135_s30 = scalar_lea.vmem %s11401_s29, %s7605_s13 }
 0x272   : > { %s10138_s22 = scalar_lea.vmem %s11402_s12, %s7605_s13  ;;  %s2084_s0 = scalar_lea.vmem %s11403_s14, %s10097_s10 }
 0x273   : > { %s2087_s17 = scalar_lea.vmem %s11404_s19, %s10097_s10  ;;  %s2090_s23 = scalar_lea.vmem %s11406_s6, %s10097_s10 }
 0x274   : > { %s7615_s3 = sshll.u32 %s10097_s10, 6  ;;  %s2098_s7 = scalar_lea.vmem %s11410_s27, %s10097_s10 }
 0x275   : > { %s10148_s20 = scalar_lea.vmem %s11408_s25, %s7615_s3  ;;  %s2101_s21 = scalar_lea.vmem %s11411_s1, %s10097_s10 }
 0x276   : > { %s2104_s26 = scalar_lea.vmem %s11412_s18, %s10097_s10  ;;  %s7444_s2 = sshll.u32 %s10097_s10, 3 }
 0x277   : > { %s10158_s16 = scalar_lea.vmem %s11414_s28, %s7444_s2  ;;  %s11418_s8 = sshll.u32 %s10087_s15, 5 }
 0x278   : > { %s10162_s4 = scalar_lea.vmem [#allocation27], %s11418_s8  ;;  %s1795_s9 = scalar_lea.vmem [#allocation28], %s10087_s15 }
 0x279   : > { %s11419_s29 = smov %s11418_s8  ;;  %p11420_p11 = scmp.ne.s32.totalorder %s9699_s11, 0 }
 0x27a   : > { %s10167_s5 = scalar_lea.vmem [#allocation29], %s11419_s29  ;;  %s11421_s13 = sld [smem:[#allocation39_spill]] (!%p11420_p11)  ;;  %vm2114_vm0 = vcmask (!%p11420_p11), 261120   ;;  %vm2117_vm1 = vcmask (!%p11420_p11), 31744  }
 0x27b   : > { %2112 = sbr.rel (%p11420_p11) target bundleno = 643 (0x283), region = 288  ;;  %s11422_s14 = sld [smem:[#allocation41_spill]] (!%p11420_p11) }
 0x280   : > { %v2113_v0 = vld [vmem:[%s11421_s13] sm:$0xff] (!%p11420_p11) }
 0x281   : > { %v2116_v1 = vld [vmem:[%s11422_s14] sm:$0xff] (!%p11420_p11)  ;;  %2115 = vst.msk [vmem:[#allocation2] sm:$0xff] (!%p11420_p11), %vm2114_vm0, %v2113_v0 }
 0x282   : > { %2118 = vst.msk [vmem:[#allocation3] sm:$0xff] %vm2117_vm1, %v2116_v1 }
 0x283 PF: > { %s11423_s25 = sld [smem:[#allocation47_spill]]  ;;  %v9401_v3 = vmov 3   ;;  %v9402_v4 = vmov 0   ;;  %v9403_v5 = vmov 2   ;;  %v9404_v6 = vmov 1   ;;  %s9412_s19 = smov 16  }
 0x284   : > { %8660 = vset.pattern.permute.xlu1 %v9401_v3  ;;  %8658 = vset.pattern.permute.xlu0 %v9402_v4  ;;  %v9405_v10 = vmov 0.0|0.0   ;;  %v7446_v14 = vld [vmem:[#allocation4] ss:$0 sm:$0xff]  ;;  %v2277_v31 = vlaneseq  ;;  %v9406_v55 = vmov 683565275   ;;  %s9413_s6 = smov 48  }
 0x285   : > { %8204 = vmatprep.subr.bf16.mxu0 %v9405_v10  ;;  %8216 = vmatprep.subr.bf16.mxu1 %v9405_v10  ;;  %v9407_v57 = vmov 2475754826   ;;  %v9408_v59 = vmov 2131351028   ;;  %v9409_v61 = vmov 2102212464  }
 0x286   : > { %v10203_v42 = vshrl.u32 %v2277_v31, 7  ;;  %v9410_v63 = vmov 920167782   ;;  %s9416_s12 = smov 32   ;;  %s11430_s27 = sld [smem:[#allocation94_spill]] }
 0x287   : > { %s11431_s1 = sld [smem:[#allocation40_spill]]  ;;  %s11432_s18 = sld [smem:[#allocation93_spill]] }
 0x288   : > { %s9417_s3 = smov 88   ;;  %s9418_s2 = smov 96  }
 0x289   : > { %v2120_v2 = vld [vmem:[#allocation3] sm:$0xff]  ;;  %v3058_v7 = vld [vmem:[%s11423_s25] sm:$0xff]  ;;  %v3060_v9 = vld [vmem:[%s11423_s25 + $0x10] sm:$0xff]  ;;  %s9419_s8 = smov 120   ;;  %s11435_s29 = sld [smem:[#allocation95_spill]] }
 0x28a   : > { %2826 = vperm.xlu1 %8660, %v2120_v2   ;;  %2396 = vperm.xlu0 %8658, %v2120_v2   ;;  %v3059_v8 = vld [vmem:[%s11423_s25 + $0x8] sm:$0xff]  ;;  %v3061_v12 = vld [vmem:[%s11423_s25 + $0x18] sm:$0xff]  ;;  %s9420_s13 = smov 56   ;;  %s9421_s14 = smov 80  }
 0x28b   : > { %v8205_v11 = vpack.c.bf16 %v3059_v8, %v3058_v7  ;;  %v8208_v13 = vpack.c.bf16 %v3061_v12, %v3060_v9  ;;  %v9411_v7 = vmov 1326507024   ;;  %p11437_p10 = scmp.eq.s32.totalorder %s9699_s11, 0  ;;  %s11438_s11 = sld [smem:[#allocation66_spill]] }
 0x28d   : > { %8206 = vmatpush3.bf16.msra.mxu0 %v8205_v11 }
 0x28e   : > { %8659 = vset.pattern.permute.xlu0 %v9403_v5  ;;  %8661 = vset.pattern.permute.xlu1 %v9404_v6 }
 0x28f   : > { %2611 = vperm.xlu0 %8659, %v2120_v2   ;;  %2162 = vperm.xlu1 %8661, %v2120_v2  }
 0x290   : > { %8207 = vmatprep.subr.bf16.mxu0 %v9405_v10 }
 0x291   : > { %8209 = vmatpush3.bf16.msra.mxu0 %v8208_v13 }
 0x292   : > { %8210 = vmatprep.subr.bf16.mxu0 %v9405_v10 }
 0x293   : > { %8662 = vset.pattern.permute.xlu0 %v9401_v3 }
 0x309   : > { %v2827_v15 = vpop.permute.xlu1 %2826  ;;  %v2397_v16 = vpop.permute.xlu0 %2396 }
 0x30a   : > { %v10180_v17 = vmul.f32 %v7446_v14, %v2827_v15  ;;  %v10182_v18 = vmul.f32 %v7446_v14, %v2397_v16 }
 0x30c   : > { %v2830_v19 = vand.u32 2147483647, %v10180_v17  ;;  %v2833_v20 = vand.u32 2139095040, %v10180_v17  ;;  %v2400_v21 = vand.u32 2147483647, %v10182_v18  ;;  %v2403_v22 = vand.u32 2139095040, %v10182_v18 }
 0x30d   : > { %vm2402_vm15 = vcmp.lt.s32.totalorder %v10182_v18, 0 }
 0x30e   : > { %v2834_v23 = vshrl.u32 %v2833_v20, 23  ;;  %v2837_v24 = vand.u32 8388607, %v2830_v19  ;;  %v2612_v25 = vpop.permute.xlu0 %2611  ;;  %v2404_v26 = vshrl.u32 %v2403_v22, 23  ;;  %v2407_v27 = vand.u32 8388607, %v2400_v21  ;;  %v2163_v30 = vpop.permute.xlu1 %2162 }
 0x30f   : > { %v10193_v28 = vmul.f32 %v7446_v14, %v2612_v25  ;;  %v10201_v40 = vmul.f32 %v7446_v14, %v2163_v30 }
 0x310   : > { %v7471_v29 = vadd.s32 4294967169, %v2834_v23  ;;  %v2838_v32 = vor.u32 8388608, %v2837_v24  ;;  %v7455_v33 = vadd.s32 4294967169, %v2404_v26  ;;  %v2408_v36 = vor.u32 8388608, %v2407_v27 }
 0x311   : > { %v2615_v34 = vand.u32 2147483647, %v10193_v28  ;;  %v2618_v37 = vand.u32 2139095040, %v10193_v28  ;;  %v2172_v45 = vand.u32 2147483647, %v10201_v40  ;;  %v2175_v53 = vand.u32 2139095040, %v10201_v40 }
 0x312   : > { %v2840_v35 = vadd.s32 1, %v7471_v29  ;;  %v2410_v38 = vadd.s32 1, %v7455_v33  ;;  %v10205_v44 = vshll.u32 %v2838_v32, 8  ;;  %v10208_v49 = vshll.u32 %v2408_v36, 8 }
 0x313   : > { %v10199_v39 = vand.u32 8388607, %v2615_v34  ;;  %v2619_v41 = vshrl.u32 %v2618_v37, 23 }
 0x314   : > { %vm2841_vm2 = vcmp.gt.s32.totalorder %v2840_v35, 0  ;;  %vm2411_vm3 = vcmp.gt.s32.totalorder %v2410_v38, 0 }
 0x315   : > { %v2842_v43 = vsel %vm2841_vm2, %v2840_v35, 0  ;;  %v2412_v48 = vsel %vm2411_vm3, %v2410_v38, 0  ;;  %v10212_v51 = vadd.s32 4294967169, %v2619_v41  ;;  %v2623_v52 = vor.u32 8388608, %v10199_v39 }
 0x316   : > { %v2843_v46 = vshrl.u32 %v2842_v43, 5  ;;  %v2844_v47 = vand.u32 31, %v2842_v43  ;;  %v10210_v50 = vand.u32 31, %v2412_v48  ;;  %v10221_v1 = vshrl.u32 %v2412_v48, 5 }
 0x317   : > { %v10308_v39 = vand.u32 8388607, %v2172_v45  ;;  %vm10330_vm2 = vcmp.le.f32.partialorder %v2400_v21, 0.7853982 }
 0x318   : > { %v2845_v54 = vsub.s32 32, %v2844_v47  ;;  %v2847_v56 = vshll.u32 %v9406_v55, %v2844_v47  ;;  %v2850_v58 = vshll.u32 %v9407_v57, %v2844_v47  ;;  %v2853_v60 = vshll.u32 %v9408_v59, %v2844_v47 }
 0x319   : > { %v2856_v62 = vshll.u32 %v9409_v61, %v2844_v47  ;;  %v2859_v0 = vshll.u32 %v9410_v63, %v2844_v47  ;;  %vm2862_vm4 = vcmp.lt.s32.totalorder %v2843_v46, 1  ;;  %vm2864_vm5 = vcmp.lt.s32.totalorder %v2843_v46, 3 }
 0x31a   : > { %v2846_v2 = vshrl.u32 %v9406_v55, %v2845_v54  ;;  %v2848_v3 = vshrl.u32 %v9407_v57, %v2845_v54  ;;  %v2851_v4 = vshrl.u32 %v9408_v59, %v2845_v54  ;;  %v2854_v5 = vshrl.u32 %v9409_v61, %v2845_v54 }
 0x31b   : > { %v2857_v6 = vshrl.u32 %v9410_v63, %v2845_v54  ;;  %v2860_v8 = vshrl.u32 %v9411_v7, %v2845_v54  ;;  %vm2865_vm6 = vcmp.lt.s32.totalorder %v2843_v46, 4  ;;  %v2415_v13 = vsub.s32 32, %v10210_v50 }
 0x31c   : > { %v2849_v9 = vor.u32 %v2848_v3, %v2847_v56  ;;  %v2852_v11 = vor.u32 %v2851_v4, %v2850_v58  ;;  %v2855_v12 = vor.u32 %v2854_v5, %v2853_v60  ;;  %vm2863_vm7 = vcmp.lt.s32.totalorder %v2843_v46, 2 }
 0x31d   : > { %v2858_v14 = vor.u32 %v2857_v6, %v2856_v62  ;;  %v2861_v15 = vor.u32 %v2860_v8, %v2859_v0  ;;  %v2417_v16 = vshll.u32 %v9406_v55, %v10210_v50  ;;  %v2420_v29 = vshll.u32 %v9407_v57, %v10210_v50 }
 0x31e   : > { %v2866_v20 = vsel %vm2862_vm4, %v2846_v2, %v2849_v9  ;;  %v2867_v22 = vsel %vm2865_vm6, %v2855_v12, 2102212464  ;;  %v2870_v23 = vsel %vm2862_vm4, %v2849_v9, %v2852_v11  ;;  %v2874_v24 = vsel %vm2862_vm4, %v2852_v11, %v2855_v12 }
 0x31f   : > { %v2868_v25 = vsel %vm2864_vm5, %v2852_v11, %v2867_v22  ;;  %v2871_v26 = vsel %vm2865_vm6, %v2858_v14, 920167782  ;;  %v2875_v27 = vsel %vm2865_vm6, %v2861_v15, 1326507024  ;;  %v2416_v32 = vshrl.u32 %v9406_v55, %v2415_v13 }
 0x320   : > { %v2872_v30 = vsel %vm2864_vm5, %v2855_v12, %v2871_v26  ;;  %v2876_v31 = vsel %vm2864_vm5, %v2858_v14, %v2875_v27  ;;  %v2418_v33 = vshrl.u32 %v9407_v57, %v2415_v13  ;;  %v2869_v35 = vsel %vm2863_vm7, %v2866_v20, %v2868_v25 }
 0x321   : > { %v2873_v36 = vsel %vm2863_vm7, %v2870_v23, %v2872_v30  ;;  %v2877_v37 = vsel %vm2863_vm7, %v2874_v24, %v2876_v31  ;;  %v2421_v38 = vshrl.u32 %v9408_v59, %v2415_v13  ;;  %v2423_v58 = vshll.u32 %v9408_v59, %v10210_v50 }
 0x322   : > { %v10247_v41 = vmul.u32.u64.low %v10205_v44, %v2877_v37  ;;  %v10248_v43 = vmul.u32.u64.high %v10205_v44, %v2877_v37, %v10247_v41  ;;  %v10251_v47 = vmul.u32.u64.low %v10205_v44, %v2873_v36  ;;  %v10252_v48 = vmul.u32.u64.high %v10205_v44, %v2873_v36, %v10251_v47 }
 0x323   : > { %v2419_v54 = vor.u32 %v2418_v33, %v2417_v16  ;;  %v2422_v56 = vor.u32 %v2421_v38, %v2420_v29  ;;  %v2424_v60 = vshrl.u32 %v9409_v61, %v2415_v13  ;;  %v2885_v46 = vmul.u32 %v10205_v44, %v2869_v35 }
 0x324   : > { %v2426_v62 = vshll.u32 %v9409_v61, %v10210_v50  ;;  %v2427_v0 = vshrl.u32 %v9410_v63, %v2415_v13  ;;  %v2430_v2 = vshrl.u32 %v9411_v7, %v2415_v13  ;;  %v2429_v4 = vshll.u32 %v9410_v63, %v10210_v50 }
 0x325   : > { %v2425_v3 = vor.u32 %v2424_v60, %v2423_v58  ;;  %vm2432_vm8 = vcmp.lt.s32.totalorder %v10221_v1, 1  ;;  %vm2433_vm9 = vcmp.lt.s32.totalorder %v10221_v1, 2  ;;  %vm2887_vm10 = vc.u32 %v10248_v43, %v10251_v47 }
 0x326   : > { %v2888_v5 = vadd.s32 1, %v10252_v48  ;;  %v2428_v44 = vor.u32 %v2427_v0, %v2426_v62  ;;  %vm2434_vm11 = vcmp.lt.s32.totalorder %v10221_v1, 3  ;;  %v2431_v6 = vor.u32 %v2430_v2, %v2429_v4 }
 0x327   : > { %vm2435_vm12 = vcmp.lt.s32.totalorder %v10221_v1, 4  ;;  %v2436_v8 = vsel %vm2432_vm8, %v2416_v32, %v2419_v54  ;;  %v2440_v9 = vsel %vm2432_vm8, %v2419_v54, %v2422_v56  ;;  %v2444_v13 = vsel %vm2432_vm8, %v2422_v56, %v2425_v3 }
 0x328   : > { %v2889_v11 = vsel %vm2887_vm10, %v2888_v5, %v10252_v48  ;;  %v2437_v12 = vsel %vm2435_vm12, %v2425_v3, 2102212464  ;;  %v2441_v50 = vsel %vm2435_vm12, %v2428_v44, 920167782  ;;  %v2445_v20 = vsel %vm2435_vm12, %v2431_v6, 1326507024 }
 0x329   : > { %v2890_v14 = vadd.s32 %v2889_v11, %v2885_v46  ;;  %v2438_v15 = vsel %vm2434_vm11, %v2422_v56, %v2437_v12  ;;  %v2442_v16 = vsel %vm2434_vm11, %v2425_v3, %v2441_v50  ;;  %v2446_v23 = vsel %vm2434_vm11, %v2428_v44, %v2445_v20 }
 0x32a   : > { %v2443_v22 = vsel %vm2433_vm9, %v2440_v9, %v2442_v16  ;;  %v2625_v24 = vadd.s32 1, %v10212_v51  ;;  %v2176_v25 = vshrl.u32 %v2175_v53, 23  ;;  %v2447_v27 = vsel %vm2433_vm9, %v2444_v13, %v2446_v23 }
 0x32b   : > { %v2891_v26 = vadd.s32 536870912, %v2890_v14  ;;  %v10279_v29 = vmul.u32.u64.low %v10208_v49, %v2443_v22  ;;  %v10280_v30 = vmul.u32.u64.high %v10208_v49, %v2443_v22, %v10279_v29  ;;  %v2439_v31 = vsel %vm2433_vm9, %v2436_v8, %v2438_v15 }
 0x32c   : > { %v10286_v32 = vmul.u32.u64.low %v10208_v49, %v2447_v27  ;;  %v10287_v33 = vmul.u32.u64.high %v10208_v49, %v2447_v27, %v10286_v32  ;;  %vm2626_vm13 = vcmp.gt.s32.totalorder %v2625_v24, 0  ;;  %v10293_v36 = vshll.u32 %v2623_v52, 8 }
 0x32d   : > { %v10289_v51 = vshrl.u32 %v2891_v26, 30  ;;  %v2627_v53 = vsel %vm2626_vm13, %v2625_v24, 0  ;;  %v10296_v37 = vsub.s32 0, %v10203_v42  ;;  %v10299_v38 = vadd.s32 %v10251_v47, %v10248_v43 }
 0x32e   : > { %v2629_v35 = vand.u32 31, %v2627_v53  ;;  %v2455_v41 = vmul.u32 %v10208_v49, %v2439_v31  ;;  %v2458_v48 = vadd.s32 1, %v10280_v30  ;;  %vm2457_vm14 = vc.u32 %v10287_v33, %v10279_v29 }
 0x32f   : > { %v2893_v1 = vshll.u32 %v10289_v51, 30  ;;  %v7447_v56 = vadd.s32 4294967169, %v2176_v25  ;;  %v2628_v47 = vshrl.u32 %v2627_v53, 5  ;;  %v2916_v13 = vsub.s32 4, %v10289_v51 }
 0x330   : > { %v2630_v54 = vsub.s32 32, %v2629_v35  ;;  %v2459_v43 = vsel %vm2457_vm14, %v2458_v48, %v10280_v30  ;;  %v2632_v58 = vshll.u32 %v9406_v55, %v2629_v35  ;;  %v2635_v46 = vshll.u32 %v9407_v57, %v2629_v35 }
 0x331   : > { %v10310_v52 = vsub.s32 %v2890_v14, %v2893_v1  ;;  %v2460_v49 = vadd.s32 %v2459_v43, %v2455_v41  ;;  %v2638_v2 = vshll.u32 %v9408_v59, %v2629_v35  ;;  %v2641_v4 = vshll.u32 %v9409_v61, %v2629_v35 }
 0x332   : > { %v2633_v60 = vshrl.u32 %v9407_v57, %v2630_v54  ;;  %v2636_v62 = vshrl.u32 %v9408_v59, %v2630_v54  ;;  %v2639_v3 = vshrl.u32 %v9409_v61, %v2630_v54  ;;  %v2642_v8 = vshrl.u32 %v9410_v63, %v2630_v54 }
 0x333   : > { %v2896_v0 = vsub.s32 0, %v10310_v52  ;;  %v2461_v5 = vadd.s32 536870912, %v2460_v49  ;;  %v2644_v12 = vshll.u32 %v9410_v63, %v2629_v35  ;;  %v2645_v50 = vshrl.u32 %v9411_v7, %v2630_v54 }
 0x334   : > { %v2634_v44 = vor.u32 %v2633_v60, %v2632_v58  ;;  %v2637_v6 = vor.u32 %v2636_v62, %v2635_v46  ;;  %v2640_v11 = vor.u32 %v2639_v3, %v2638_v2  ;;  %v2631_v15 = vshrl.u32 %v9406_v55, %v2630_v54 }
 0x335   : > { %v7472_v9 = vmin.u32 %v2896_v0, %v10310_v52  ;;  %v2462_v14 = vshrl.u32 %v2461_v5, 30  ;;  %v2643_v16 = vor.u32 %v2642_v8, %v2641_v4  ;;  %v2646_v22 = vor.u32 %v2645_v50, %v2644_v12 }
 0x336   : > { %vm2647_vm0 = vcmp.lt.s32.totalorder %v2628_v47, 1  ;;  %vm2650_vm1 = vcmp.lt.s32.totalorder %v2628_v47, 4  ;;  %vm2648_vm3 = vcmp.lt.s32.totalorder %v2628_v47, 2  ;;  %vm2649_vm4 = vcmp.lt.s32.totalorder %v2628_v47, 3 }
 0x337   : > { %v2898_v20 = vclz %v7472_v9  ;;  %v2463_v24 = vshll.u32 %v2462_v14, 30  ;;  %v2486_v25 = vsub.s32 4, %v2462_v14  ;;  %v2652_v26 = vsel %vm2650_vm1, %v2640_v11, 2102212464 }
 0x338   : > { %v2655_v30 = vsel %vm2647_vm0, %v2634_v44, %v2637_v6  ;;  %v2656_v31 = vsel %vm2650_vm1, %v2643_v16, 920167782  ;;  %v2651_v53 = vsel %vm2647_vm0, %v2631_v15, %v2634_v44  ;;  %v2653_v35 = vsel %vm2649_vm4, %v2637_v6, %v2652_v26 }
 0x339   : > { %v7473_v27 = vadd.s32 4294967294, %v2898_v20  ;;  %v10337_v32 = vsub.s32 %v2460_v49, %v2463_v24  ;;  %v2657_v21 = vsel %vm2649_vm4, %v2640_v11, %v2656_v31  ;;  %v2487_v1 = vsel %vm2402_vm15, %v2486_v25, %v2462_v14 }
 0x33a   : > { %v2659_v41 = vsel %vm2647_vm0, %v2637_v6, %v2640_v11  ;;  %v2660_v48 = vsel %vm2650_vm1, %v2646_v22, 1326507024  ;;  %v2658_v58 = vsel %vm2648_vm3, %v2655_v30, %v2657_v21  ;;  %v2182_v5 = vadd.s32 1, %v7447_v56 }
 0x33b   : > { %vm7474_vm5 = vcmp.lt.s32.totalorder %v7473_v27, 0  ;;  %v2466_v43 = vsub.s32 0, %v10337_v32  ;;  %v2661_v60 = vsel %vm2649_vm4, %v2643_v16, %v2660_v48  ;;  %v2180_v12 = vor.u32 8388608, %v10308_v39 }
 0x33c   : > { %v2901_v54 = vsel %vm7474_vm5, 0, %v7473_v27  ;;  %v2662_v0 = vsel %vm2648_vm3, %v2659_v41, %v2661_v60  ;;  %v10355_v8 = vmul.u32.u64.low %v10293_v36, %v2658_v58  ;;  %v10356_v9 = vmul.u32.u64.high %v10293_v36, %v2658_v58, %v10355_v8 }
 0x33d   : > { %v2902_v49 = vsub.s32 32, %v2901_v54  ;;  %v2903_v46 = vshll.u32 %v10310_v52, %v2901_v54  ;;  %v2906_v62 = vsub.s32 4294967266, %v2901_v54  ;;  %v7456_v2 = vmin.u32 %v2466_v43, %v10337_v32 }
 0x33e   : > { %v10350_v3 = vmul.u32.u64.low %v10293_v36, %v2662_v0  ;;  %v10351_v4 = vmul.u32.u64.high %v10293_v36, %v2662_v0, %v10350_v3  ;;  %v2654_v52 = vsel %vm2648_vm3, %v2651_v53, %v2653_v35  ;;  %vm2183_vm6 = vcmp.gt.s32.totalorder %v2182_v5, 0 }
 0x33f   : > { %v2904_v44 = vshrl.u32 %v10299_v38, %v2902_v49  ;;  %v2907_v6 = vadd.s32 127, %v2906_v62  ;;  %v2468_v11 = vclz %v7456_v2  ;;  %v2184_v15 = vsel %vm2183_vm6, %v2182_v5, 0 }
 0x340   : > { %v10363_v56 = vsel %vm10330_vm2, 0, %v2487_v1  ;;  %vm2832_vm7 = vcmp.lt.s32.totalorder %v10180_v17, 0  ;;  %v2456_v38 = vadd.s32 %v10279_v29, %v10287_v33  ;;  %vm2672_vm8 = vc.u32 %v10351_v4, %v10355_v8 }
 0x341   : > { %v2905_v50 = vor.u32 %v2904_v44, %v2903_v46  ;;  %v2908_v14 = vshll.u32 %v2907_v6, 23  ;;  %v7457_v16 = vadd.s32 4294967294, %v2468_v11  ;;  %v10370_v47 = vshrl.u32 %v2184_v15, 5 }
 0x342   : > { %vm10374_vm9 = vcmp.le.f32.partialorder %v2830_v19, 0.7853982  ;;  %v2670_v22 = vmul.u32 %v10293_v36, %v2654_v52  ;;  %v2673_v24 = vadd.s32 1, %v10356_v9  ;;  %v2186_v25 = vand.u32 31, %v2184_v15 }
 0x343   : > { %v2909_v20 = vor.u32 4788187, %v2908_v14  ;;  %v2912_v26 = vcvt.s32.f32 %v2905_v50  ;;  %vm7458_vm10 = vcmp.lt.s32.totalorder %v7457_v16, 0  ;;  %v10380_v29 = vshll.u32 %v2180_v12, 8 }
 0x344   : > { %v10383_v33 = vadd.s32 3, %v10363_v56  ;;  %v2471_v30 = vsel %vm7458_vm10, 0, %v7457_v16  ;;  %v2674_v19 = vsel %vm2672_vm8, %v2673_v24, %v10356_v9  ;;  %v2187_v31 = vsub.s32 32, %v2186_v25 }
 0x345   : > { %v2910_v27 = vand.u32 2147483647, %v2909_v20  ;;  %vm2204_vm11 = vcmp.lt.s32.totalorder %v10370_v47, 1  ;;  %v2472_v53 = vsub.s32 32, %v2471_v30  ;;  %v2473_v36 = vshll.u32 %v10337_v32, %v2471_v30 }
 0x346   : > { %v2476_v35 = vsub.s32 4294967266, %v2471_v30  ;;  %v2675_v21 = vadd.s32 %v2674_v19, %v2670_v22  ;;  %v2188_v41 = vshrl.u32 %v9406_v55, %v2187_v31  ;;  %v2189_v48 = vshll.u32 %v9406_v55, %v2186_v25  ;;  %v2159_v30 = vld [vmem:[#allocation6] sm:$0x1] }
 0x347   : > { %v2913_v1 = vmul.f32 %v2912_v26, %v2910_v27  ;;  %v2190_v54 = vshrl.u32 %v9407_v57, %v2187_v31  ;;  %v2474_v43 = vshrl.u32 %v2456_v38, %v2472_v53  ;;  %v2192_v49 = vshll.u32 %v9407_v57, %v2186_v25 }
 0x348   : > { %v2477_v58 = vadd.s32 127, %v2476_v35  ;;  %v2676_v60 = vadd.s32 536870912, %v2675_v21  ;;  %v2193_v0 = vshrl.u32 %v9408_v59, %v2187_v31  ;;  %v2195_v32 = vshll.u32 %v9408_v59, %v2186_v25 }
 0x349   : > { %v2914_v46 = vxor.u32 2147483648, %v2913_v1  ;;  %v2191_v62 = vor.u32 %v2190_v54, %v2189_v48  ;;  %v2475_v2 = vor.u32 %v2474_v43, %v2473_v36  ;;  %v2196_v44 = vshrl.u32 %v9409_v61, %v2187_v31 }
 0x34a   : > { %v2478_v3 = vshll.u32 %v2477_v58, 23  ;;  %v10394_v5 = vshrl.u32 %v2676_v60, 30  ;;  %v2194_v6 = vor.u32 %v2193_v0, %v2192_v49  ;;  %v2198_v9 = vshll.u32 %v9409_v61, %v2186_v25 }
 0x34b   : > { %v2915_v55 = vsel %vm2832_vm7, %v2914_v46, %v2913_v1  ;;  %v2199_v57 = vshrl.u32 %v9410_v63, %v2187_v31  ;;  %vm2205_vm12 = vcmp.lt.s32.totalorder %v10370_v47, 2  ;;  %v2482_v12 = vcvt.s32.f32 %v2475_v2 }
 0x34c   : > { %v2918_v11 = vsel %vm10374_vm9, %v10180_v17, %v2915_v55  ;;  %v2479_v52 = vor.u32 4788187, %v2478_v3  ;;  %v2678_v59 = vshll.u32 %v10394_v5, 30  ;;  %v2197_v50 = vor.u32 %v2196_v44, %v2195_v32 }
 0x34d   : > { %v2200_v14 = vor.u32 %v2199_v57, %v2198_v9  ;;  %vm2206_vm13 = vcmp.lt.s32.totalorder %v10370_v47, 3  ;;  %8663 = vsinq.f32 %v2918_v11  ;;  %v2201_v61 = vshll.u32 %v9410_v63, %v2186_v25 }
 0x34e   : > { %v2480_v15 = vand.u32 2147483647, %v2479_v52  ;;  %v10407_v38 = vsub.s32 %v2675_v21, %v2678_v59  ;;  %8665 = vcosq.f32 %v2918_v11  ;;  %v2202_v16 = vshrl.u32 %v9411_v7, %v2187_v31 }
 0x34f   : > { %vm2207_vm14 = vcmp.lt.s32.totalorder %v10370_v47, 4  ;;  %v2208_v20 = vsel %vm2204_vm11, %v2188_v41, %v2191_v62  ;;  %v2212_v27 = vsel %vm2204_vm11, %v2191_v62, %v2194_v6  ;;  %v2216_v25 = vsel %vm2204_vm11, %v2194_v6, %v2197_v50 }
 0x350   : > { %v2483_v22 = vmul.f32 %v2482_v12, %v2480_v15  ;;  %v2681_v24 = vsub.s32 0, %v10407_v38  ;;  %v2209_v26 = vsel %vm2207_vm14, %v2197_v50, 2102212464  ;;  %v2203_v19 = vor.u32 %v2202_v16, %v2201_v61 }
 0x351   : > { %v2210_v63 = vsel %vm2206_vm13, %v2194_v6, %v2209_v26  ;;  %v2213_v7 = vsel %vm2207_vm14, %v2200_v14, 920167782  ;;  %v2917_v21 = vsel %vm2832_vm7, %v2916_v13, %v10289_v51  ;;  %v2283_v48 = vsub.f32 1.0, %v2159_v30 }
 0x352   : > { %v2484_v31 = vxor.u32 2147483648, %v2483_v22  ;;  %v7464_v53 = vmin.u32 %v2681_v24, %v10407_v38  ;;  %v2211_v36 = vsel %vm2205_vm12, %v2208_v20, %v2210_v63  ;;  %v2214_v35 = vsel %vm2206_vm13, %v2197_v50, %v2213_v7 }
 0x353   : > { %v2215_v1 = vsel %vm2205_vm12, %v2212_v27, %v2214_v35  ;;  %v2217_v41 = vsel %vm2207_vm14, %v2203_v19, 1326507024  ;;  %v10444_v60 = vand.u32 3, %v10383_v33  ;;  %v10460_v33 = vrot.slane %v2159_v30, %v10296_v37 }
 0x354   : > { %v2485_v54 = vsel %vm2402_vm15, %v2484_v31, %v2483_v22  ;;  %v2683_v43 = vclz %v7464_v53  ;;  %v2218_v58 = vsel %vm2206_vm13, %v2200_v14, %v2217_v41  ;;  %v10463_v23 = vrot.slane %v2283_v48, %v10296_v37 }
 0x355   : > { %v2488_v51 = vsel %vm10330_vm2, %v10182_v18, %v2485_v54  ;;  %v2219_v13 = vsel %vm2205_vm12, %v2216_v25, %v2218_v58  ;;  %v10452_v49 = vmul.u32.u64.low %v10380_v29, %v2215_v1  ;;  %v10453_v46 = vmul.u32.u64.high %v10380_v29, %v2215_v1, %v10452_v49 }
 0x356   : > { %8667 = vcosq.f32 %v2488_v51  ;;  %v7465_v62 = vadd.s32 4294967294, %v2683_v43  ;;  %v10456_v0 = vmul.u32.u64.low %v10380_v29, %v2219_v13  ;;  %v10457_v32 = vmul.u32.u64.high %v10380_v29, %v2219_v13, %v10456_v0 }
 0x357   : > { %8669 = vsinq.f32 %v2488_v51  ;;  %v8664_v2 = vpop.eup %8663  ;;  %v2671_v47 = vadd.s32 %v10355_v8, %v10351_v4  ;;  %v2701_v3 = vsub.s32 4, %v10394_v5  ;;  %v2227_v44 = vmul.u32 %v10380_v29, %v2211_v36 }
 0x358   : > { %vm7466_vm15 = vcmp.lt.s32.totalorder %v7465_v62, 0  ;;  %v8666_v55 = vpop.eup %8665  ;;  %v2230_v9 = vadd.s32 1, %v10453_v46  ;;  %v2598_v57 = vand.u32 3, %v10363_v56  ;;  %v2919_v11 = vsel %vm10374_vm9, 0, %v2917_v21 }
 0x359   : > { %v2686_v6 = vsel %vm7466_vm15, 0, %v7465_v62  ;;  %v10474_v12 = vadd.s32 %v10452_v49, %v10457_v32  ;;  %vm2499_vm0 = vcmp.eq.s32.totalorder %v10444_v60, 2  ;;  %v2927_v4 = vxor.u32 2147483648, %v8664_v2 }
 0x35a   : > { %v2687_v52 = vsub.s32 32, %v2686_v6  ;;  %v2691_v59 = vsub.s32 4294967266, %v2686_v6  ;;  %v2688_v8 = vshll.u32 %v10407_v38, %v2686_v6  ;;  %vm2229_vm1 = vc.u32 %v10457_v32, %v10452_v49 }
 0x35b   : > { %vm2496_vm2 = vcmp.eq.s32.totalorder %v10444_v60, 0  ;;  %vm2922_vm3 = vweird.f32 %v10180_v17  ;;  %v2923_v56 = vadd.s32 3, %v2919_v11  ;;  %v3028_v29 = vand.u32 3, %v2919_v11  ;;  %v3064_v17 = vld [vmem:[%s11423_s25 + $0x30] sm:$0xff] }
 0x35c   : > { %v2689_v39 = vshrl.u32 %v2671_v47, %v2687_v52  ;;  %v2692_v50 = vadd.s32 127, %v2691_v59  ;;  %v2231_v14 = vsel %vm2229_vm1, %v2230_v9, %v10453_v46  ;;  %vm2495_vm4 = vcmp.lt.s32.totalorder %v10444_v60, 2 }
 0x35d   : > { %v2930_v15 = vxor.u32 2147483648, %v8666_v55  ;;  %v2232_v61 = vadd.s32 %v2231_v14, %v2227_v44  ;;  %vm2492_vm5 = vweird.f32 %v10182_v18  ;;  %vm2599_vm6 = vcmp.lt.s32.totalorder %v2598_v57, 2 }
 0x35e   : > { %vm2600_vm7 = vcmp.eq.s32.totalorder %v2598_v57, 0  ;;  %v2924_v38 = vand.u32 3, %v2923_v56  ;;  %v2690_v16 = vor.u32 %v2689_v39, %v2688_v8  ;;  %v2693_v20 = vshll.u32 %v2692_v50, 23  ;;  %v3063_v8 = vld [vmem:[%s11423_s25 + $0x28] sm:$0xff] }
 0x35f   : > { %vm2603_vm8 = vcmp.eq.s32.totalorder %v2598_v57, 2  ;;  %vm3030_vm9 = vcmp.eq.s32.totalorder %v3028_v29, 0  ;;  %v2233_v22 = vadd.s32 536870912, %v2232_v61  ;;  %vm3033_vm13 = vcmp.eq.s32.totalorder %v3028_v29, 2 }
 0x360   : > { %vm2926_vm10 = vcmp.eq.s32.totalorder %v2924_v38, 0  ;;  %vm2929_vm11 = vcmp.eq.s32.totalorder %v2924_v38, 2  ;;  %v3032_v24 = vsel %vm3030_vm9, %v8666_v55, %v2927_v4  ;;  %v8668_v26 = vpop.eup %8667  ;;  %v2694_v27 = vor.u32 4788187, %v2693_v20 }
 0x361   : > { %vm2925_vm12 = vcmp.lt.s32.totalorder %v2924_v38, 2  ;;  %v2928_v30 = vsel %vm2926_vm10, %v8666_v55, %v2927_v4  ;;  %v2931_v19 = vsel %vm2929_vm11, %v2930_v15, %v8664_v2  ;;  %v8670_v63 = vpop.eup %8669  ;;  %v10484_v7 = vshrl.u32 %v2233_v22, 30  ;;  %v3062_v4 = vld [vmem:[%s11423_s25 + $0x20] sm:$0xff] }
 0x362   : > { %v2500_v25 = vxor.u32 2147483648, %v8668_v26  ;;  %v2932_v31 = vsel %vm2925_vm12, %v2928_v30, %v2931_v19  ;;  %v2695_v53 = vand.u32 2147483647, %v2694_v27  ;;  %v2697_v36 = vcvt.s32.f32 %v2690_v16 }
 0x363   : > { %v2497_v35 = vxor.u32 2147483648, %v8670_v63  ;;  %v3035_v21 = vsel %vm3033_vm13, %v2930_v15, %v8664_v2  ;;  %v2235_v1 = vshll.u32 %v10484_v7, 30  ;;  %vm3029_vm14 = vcmp.lt.s32.totalorder %v3028_v29, 2 }
 0x364   : > { %v2501_v41 = vsel %vm2499_vm0, %v2500_v25, %v8670_v63  ;;  %v2605_v48 = vsel %vm2603_vm8, %v2500_v25, %v8670_v63  ;;  %v2698_v54 = vmul.f32 %v2697_v36, %v2695_v53  ;;  %v2933_v51 = vsel %vm2922_vm3, nan, %v2932_v31  ;;  %v3148_v63 = vld [vmem:[#allocation9] sm:$0xff]  ;;  %v3149_v25 = vld [vmem:[#allocation9 + $0x8] sm:$0xff] }
 0x365   : > { %v2498_v43 = vsel %vm2496_vm2, %v8668_v26, %v2497_v35  ;;  %v2602_v58 = vsel %vm2600_vm7, %v8668_v26, %v2497_v35  ;;  %v2236_v13 = vsub.s32 %v2232_v61, %v2235_v1  ;;  %v3036_v62 = vsel %vm3029_vm14, %v3032_v24, %v3035_v21 }
 0x366   : > { %v2502_v49 = vsel %vm2495_vm4, %v2498_v43, %v2501_v41  ;;  %v2606_v46 = vsel %vm2599_vm6, %v2602_v58, %v2605_v48  ;;  %vm2617_vm15 = vcmp.lt.s32.totalorder %v10193_v28, 0  ;;  %v2699_v0 = vxor.u32 2147483648, %v2698_v54 }
 0x367   : > { %v2503_v32 = vsel %vm2492_vm5, nan, %v2502_v49  ;;  %v2607_v2 = vsel %vm2492_vm5, nan, %v2606_v46  ;;  %vm10505_vm0 = vcmp.le.f32.partialorder %v2615_v34, 0.7853982  ;;  %v2238_v60 = vsub.s32 0, %v2236_v13 }
 0x368   : > { %v2504_v44 = vmul.f32 %v2503_v32, %v10460_v33  ;;  %v2608_v55 = vmul.f32 %v2607_v2, %v10463_v23  ;;  %v2700_v6 = vsel %vm2617_vm15, %v2699_v0, %v2698_v54  ;;  %v2702_v9 = vsel %vm2617_vm15, %v2701_v3, %v10394_v5  ;;  %v3065_v3 = vld [vmem:[%s11423_s25 + $0x38] sm:$0xff] }
 0x369   : > { %v2934_v18 = vmul.f32 %v2933_v51, %v10460_v33  ;;  %v3037_v34 = vsel %vm2922_vm3, nan, %v3036_v62  ;;  %v2703_v57 = vsel %vm10505_vm0, %v10193_v28, %v2700_v6  ;;  %v7448_v11 = vmin.u32 %v2238_v60, %v2236_v13 }
 0x36a   : > { %v2609_v52 = vadd.f32 %v2608_v55, %v2504_v44  ;;  %v3038_v59 = vmul.f32 %v3037_v34, %v10463_v23  ;;  %8671 = vcosq.f32 %v2703_v57  ;;  %v2704_v5 = vsel %vm10505_vm0, 0, %v2702_v9 }
 0x36b   : > { %8673 = vsinq.f32 %v2703_v57  ;;  %v2240_v56 = vclz %v7448_v11  ;;  %v8211_v50 = vpack.c.bf16 %v3063_v8, %v3062_v4  ;;  %v2708_v14 = vadd.s32 3, %v2704_v5 }
 0x36c   : > { %3041 = vrot.lane.b32.xlu1 %v2609_v52, %s9412_s19  ;;  %v3039_v39 = vadd.f32 %v3038_v59, %v2934_v18  ;;  %v8214_v15 = vpack.c.bf16 %v3065_v3, %v3064_v17  ;;  %v2813_v38 = vand.u32 3, %v2704_v5  ;;  %vm9414_vm2 = vmmov 0   ;;  %s9422_s19 = smov 64  }
 0x36d   : > { %v7449_v29 = vadd.s32 4294967294, %v2240_v56  ;;  %8212 = vmatpush3.bf16.msra.mxu0 %v8211_v50  ;;  %v2709_v24 = vand.u32 3, %v2708_v14  ;;  %v9415_v30 = vmov 0.0   ;;  %vm2707_vm3 = vweird.f32 %v10193_v28 }
 0x36e   : > { %8213 = vmatprep.subr.bf16.mxu0 %v9405_v10  ;;  %7829 = vmatprep.mubr.msk.f32.mxu0 %vm9414_vm2, %v9415_v30  ;;  %vm2815_vm4 = vcmp.eq.s32.totalorder %v2813_v38, 0  ;;  %v8217_v35 = vpack.c.bf16 %v3149_v25, %v3148_v63  ;;  %vm2818_vm7 = vcmp.eq.s32.totalorder %v2813_v38, 2  ;;  %vm2814_vm9 = vcmp.lt.s32.totalorder %v2813_v38, 2 }
 0x36f   : > { %vm7450_vm1 = vcmp.lt.s32.totalorder %v7449_v29, 0  ;;  %7840 = vmatprep.mubr.msk.f32.mxu1 %vm9414_vm2, %v9415_v30  ;;  %vm2711_vm5 = vcmp.eq.s32.totalorder %v2709_v24, 0  ;;  %vm2714_vm6 = vcmp.eq.s32.totalorder %v2709_v24, 2  ;;  %vm2710_vm8 = vcmp.lt.s32.totalorder %v2709_v24, 2  ;;  %v7479_v24 = vld [vmem:[#allocation8] ss:$0 sm:$0xff] }
 0x370   : > { %3049 = vrot.lane.b32.xlu1 %v3039_v39, %s9413_s6  ;;  %v2243_v61 = vsel %vm7450_vm1, 0, %v7449_v29  ;;  %8218 = vmatpush3.bf16.msra.mxu1 %v8217_v35  ;;  %vm2174_vm10 = vcmp.lt.s32.totalorder %v10201_v40, 0  ;;  %vm2173_vm11 = vcmp.le.f32.partialorder %v2172_v45, 0.7853982 }
 0x371   : > { %v2244_v16 = vsub.s32 32, %v2243_v61  ;;  %v2245_v20 = vshll.u32 %v2236_v13, %v2243_v61  ;;  %v2248_v22 = vsub.s32 4294967266, %v2243_v61  ;;  %8215 = vmatpush3.bf16.msra.mxu0 %v8214_v15  ;;  %8219 = vmatprep.subr.bf16.mxu1 %v9405_v10  ;;  %v2258_v13 = vsub.s32 4, %v10484_v7 }
 0x372   : > { %8228 = vmatprep.subr.bf16.mxu0 %v9405_v10 }
 0x373   : > { %v2246_v26 = vshrl.u32 %v10474_v12, %v2244_v16  ;;  %v2249_v27 = vadd.s32 127, %v2248_v22  ;;  %v2259_v44 = vsel %vm2174_vm10, %v2258_v13, %v10484_v7  ;;  %v3561_v13 = vld [vmem:[%s10109_s24 + $0x8] sm:$0xff] }
 0x374   : > { %v8672_v19 = vpop.eup %8671  ;;  %v2261_v9 = vsel %vm2173_vm11, 0, %v2259_v44  ;;  %v3319_v44 = vld [vmem:[#allocation15 + $0x10] sm:$0xff] }
 0x375   : > { %v8674_v31 = vpop.eup %8673  ;;  %v2247_v12 = vor.u32 %v2246_v26, %v2245_v20  ;;  %v2250_v53 = vshll.u32 %v2249_v27, 23  ;;  %v2715_v36 = vxor.u32 2147483648, %v8672_v19  ;;  %v2265_v18 = vadd.s32 3, %v2261_v9  ;;  %v3232_v26 = vld [vmem:[#allocation12] sm:$0xff]  ;;  %v3233_v27 = vld [vmem:[#allocation12 + $0x8] sm:$0xff] }
 0x376   : > { %v2712_v21 = vxor.u32 2147483648, %v8674_v31  ;;  %v2377_v57 = vand.u32 3, %v2261_v9 }
 0x377   : > { %v2251_v1 = vor.u32 4788187, %v2250_v53  ;;  %v2254_v41 = vcvt.s32.f32 %v2247_v12  ;;  %v2716_v48 = vsel %vm2714_vm6, %v2715_v36, %v8674_v31  ;;  %v2820_v54 = vsel %vm2818_vm7, %v2715_v36, %v8674_v31  ;;  %v3234_v53 = vld [vmem:[#allocation12 + $0x10] sm:$0xff]  ;;  %v3235_v36 = vld [vmem:[#allocation12 + $0x18] sm:$0xff] }
 0x378   : > { %v2713_v43 = vsel %vm2711_vm5, %v8672_v19, %v2712_v21  ;;  %v2817_v58 = vsel %vm2815_vm4, %v8672_v19, %v2712_v21  ;;  %v2266_v34 = vand.u32 3, %v2265_v18  ;;  %vm2382_vm13 = vcmp.eq.s32.totalorder %v2377_v57, 2  ;;  %v3413_v21 = vld [vmem:[%s11430_s27] sm:$0xff] }
 0x379   : > { %v2252_v51 = vand.u32 2147483647, %v2251_v1  ;;  %v2717_v49 = vsel %vm2710_vm8, %v2713_v43, %v2716_v48  ;;  %v2821_v46 = vsel %vm2814_vm9, %v2817_v58, %v2820_v54  ;;  %vm2379_vm15 = vcmp.eq.s32.totalorder %v2377_v57, 0  ;;  %v3414_v1 = vld [vmem:[%s11430_s27 + $0x8] sm:$0xff]  ;;  %v3415_v54 = vld [vmem:[%s11430_s27 + $0x10] sm:$0xff]  ;;  %v3416_v43 = vld [vmem:[%s11430_s27 + $0x18] sm:$0xff] }
 0x37a   : > { %v2718_v62 = vsel %vm2707_vm3, nan, %v2717_v49  ;;  %v2822_v0 = vsel %vm2707_vm3, nan, %v2821_v46  ;;  %vm2271_vm12 = vcmp.eq.s32.totalorder %v2266_v34, 2  ;;  %vm2268_vm14 = vcmp.eq.s32.totalorder %v2266_v34, 0  ;;  %v10580_v49 = vld [vmem:[%s11431_s1] sm:$0xff]  ;;  %s9424_s27 = smov 72  }
 0x37b   : > { %v2255_v32 = vmul.f32 %v2254_v41, %v2252_v51  ;;  %v2719_v2 = vmul.f32 %v2718_v62, %v10460_v33  ;;  %v2823_v47 = vmul.f32 %v2822_v0, %v10463_v23  ;;  %vm2267_vm0 = vcmp.lt.s32.totalorder %v2266_v34, 2  ;;  %v10567_v41 = vld [vmem:[#allocation2] sm:$0xff]  ;;  %v3562_v62 = vld [vmem:[%s10109_s24 + $0x10] sm:$0xff]  ;;  %v3563_v0 = vld [vmem:[%s10109_s24 + $0x18] sm:$0xff]  ;;  %s9425_s1 = smov 104  }
 0x37c   : > { %vm2378_vm1 = vcmp.lt.s32.totalorder %v2377_v57, 2  ;;  %vm2264_vm3 = vweird.f32 %v10201_v40  ;;  %vm3052_vm4 = vcmask 130048   ;;  %vm3054_vm5 = vcmask 261120   ;;  %v3560_v51 = vld [vmem:[%s10109_s24] sm:$0xff]  ;;  %v7483_v57 = vld [vmem:[#allocation14] ss:$0 sm:$0xff] }
 0x37d   : > { %v2256_v60 = vxor.u32 2147483648, %v2255_v32  ;;  %v2824_v55 = vadd.f32 %v2823_v47, %v2719_v2  ;;  %vm3056_vm6 = vcmask 392192   ;;  %vm3073_vm7 = vcmask 523264   ;;  %v3317_v2 = vld [vmem:[#allocation15] sm:$0xff]  ;;  %v3318_v47 = vld [vmem:[#allocation15 + $0x8] sm:$0xff]  ;;  %s11433_s24 = sld [smem:[#allocation64_spill]] }
 0x37e   : > { %v8223_v31 = vpack.c.bf16 %v3233_v27, %v3232_v26  ;;  %v8226_v35 = vpack.c.bf16 %v3235_v36, %v3234_v53  ;;  %v8235_v48 = vpack.c.bf16 %v3414_v1, %v3413_v21  ;;  %v8238_v58 = vpack.c.bf16 %v3416_v43, %v3415_v54 }
 0x37f   : > { %v2257_v6 = vsel %vm2174_vm10, %v2256_v60, %v2255_v32  ;;  %3045 = vrot.lane.b32.xlu0 %v2824_v55, %s9416_s12  ;;  %v8247_v46 = vpack.c.bf16 %v3561_v13, %v3560_v51  ;;  %v8250_v32 = vpack.c.bf16 %v3563_v0, %v3562_v62  ;;  %v8229_v60 = vpack.c.bf16 %v3318_v47, %v3317_v2  ;;  %v3320_v55 = vld [vmem:[#allocation15 + $0x18] sm:$0xff]  ;;  %s9423_s12 = smov 112  }
 0x380   : > { %v2260_v28 = vsel %vm2173_vm11, %v10201_v40, %v2257_v6  ;;  %v8232_v6 = vpack.c.bf16 %v3320_v55, %v3319_v44  ;;  %vm3654_vm8 = vcmask 64512   ;;  %vm5674_vm9 = vcmask 31744  }
 0x381   : > { %8675 = vcosq.f32 %v2260_v28  ;;  %vm8301_vm10 = vmpackc.low %vm5674_vm9, %vm5674_vm9  ;;  %vm6267_vm11 = vcmask 1041409  }
 0x382   : > { %8677 = vsinq.f32 %v2260_v28  ;;  %v7481_v28 = vld [vmem:[#allocation11] ss:$0 sm:$0xff] }
 0x383   : > { %s11434_s28 = scalar_lea.vmem %s11433_s24, %s10097_s10 }
 0x384   : > { %s3401_s24 = scalar_select %p11437_p10, 1, 0 }
 0x38b   : > { %v8676_v11 = vpop.eup %8675 }
 0x38c   : > { %v8678_v52 = vpop.eup %8677  ;;  %v2272_v45 = vxor.u32 2147483648, %v8676_v11 }
 0x38d   : > { %v2269_v7 = vxor.u32 2147483648, %v8678_v52 }
 0x38e   : > { %v2273_v59 = vsel %vm2271_vm12, %v2272_v45, %v8678_v52  ;;  %v2384_v4 = vsel %vm2382_vm13, %v2272_v45, %v8678_v52  ;;  %v3410_v52 = vld [vmem:[%s11432_s18 + $0x8] sm:$0xff]  ;;  %vm6269_vm12 = vcmask 1042434   ;;  %vm6271_vm13 = vcmask 1043459  }
 0x38f   : > { %v2270_v8 = vsel %vm2268_vm14, %v8676_v11, %v2269_v7  ;;  %v2381_v56 = vsel %vm2379_vm15, %v8676_v11, %v2269_v7  ;;  %v3409_v11 = vld [vmem:[%s11432_s18] sm:$0xff]  ;;  %vm6273_vm14 = vcmask 1044484   ;;  %vm6275_vm15 = vcmask 1045509  }
 0x390   : > { %v2274_v5 = vsel %vm2267_vm0, %v2270_v8, %v2273_v59  ;;  %v2385_v17 = vsel %vm2378_vm1, %v2381_v56, %v2384_v4  ;;  %v8241_v4 = vpack.c.bf16 %v3410_v52, %v3409_v11  ;;  %v3411_v56 = vld [vmem:[%s11432_s18 + $0x10] sm:$0xff]  ;;  %vm6277_vm0 = vcmask 1046534  }
 0x391   : > { %v2275_v3 = vsel %vm2264_vm3, nan, %v2274_v5  ;;  %v2386_v29 = vsel %vm2264_vm3, nan, %v2385_v17  ;;  %v3412_v5 = vld [vmem:[%s11432_s18 + $0x18] sm:$0xff]  ;;  %s11436_s18 = sld [smem:[#allocation97_spill]]  ;;  %vm6279_vm1 = vcmask 1047559  }
 0x392   : > { %v2282_v39 = vmul.f32 %v10460_v33, %v2275_v3  ;;  %v2393_v50 = vmul.f32 %v10463_v23, %v2386_v29  ;;  %v3150_v33 = vld [vmem:[#allocation9 + $0x10] sm:$0xff]  ;;  %v3151_v23 = vld [vmem:[#allocation9 + $0x18] sm:$0xff]  ;;  %v8244_v17 = vpack.c.bf16 %v3412_v5, %v3411_v56 }
 0x393   : > { %v8220_v22 = vpack.c.bf16 %v3151_v23, %v3150_v33 }
 0x394   : > { %v2394_v14 = vadd.f32 %v2393_v50, %v2282_v39 }
 0x395   : > { %8221 = vmatpush3.bf16.msra.mxu1 %v8220_v22 }
 0x396   : > { %8222 = vmatprep.subr.bf16.mxu1 %v9405_v10 }
 0x3de   : > { %v3042_v15 = vpop.permute.xlu1 %3041 }
 0x3df   : > { %v3053_v61 = vsel %vm3052_vm4, %v2394_v14, %v3042_v15 }
 0x3e2   : > { %v3050_v40 = vpop.permute.xlu1 %3049 }
 0x3f1   : > { %v3046_v38 = vpop.permute.xlu0 %3045 }
 0x3f2   : > { %v3055_v16 = vsel %vm3054_vm5, %v3053_v61, %v3046_v38 }
 0x3f3   : > { %v10554_v20 = vsel %vm3056_vm6, %v3055_v16, %v3050_v40  ;;  %v7490_v16 = vld [vmem:[%s11434_s28] ss:$0 sm:$0xff]  ;;  %s3402_s28 = scvt.s32.f32 %s3401_s24  ;;  %s11451_s24 = sld [smem:[#allocation73_spill]] }
 0x3f4   : > { %7830 = vmatmul.mubr.msk.f32.vlgmr.msra.gmra.mrb[0].mxu0 %vm3073_vm7, %v10554_v20 }
 0x3f5   : > { %7862 = vmatprep.mubr.msk.f32.mxu0 %vm9414_vm2, %v9415_v30  ;;  %8230 = vmatpush3.bf16.msra.mxu0 %v8229_v60 }
 0x3f6   : > { %8231 = vmatprep.subr.bf16.mxu0 %v9405_v10 }
 0x3f9   : > { %8233 = vmatpush3.bf16.msra.mxu0 %v8232_v6  ;;  %v3646_v6 = vld [vmem:[%s11435_s29] sm:$0xff] }
 0x3fa   : > { %8240 = vmatprep.subr.bf16.mxu0 %v9405_v10 }
 0x4c7   : > { %v3143_v19 = vpop.f32.mrb[0].mxu0 }
 0x4c8   : > { %v3144_v63 = vadd.f32 %v7479_v24, %v3143_v19  ;;  %v7831_v25 = vpop.f32.mrb[1].mxu0 }
 0x4ca   : > { %v3147_v12 = vmax.f32 %v3144_v63, 0.0 }
 0x4cc   : > { %7841 = vmatmul.mubr.msk.f32.vlgmr.msra.gmra.mrb[0].mxu1 %vm3054_vm5, %v3147_v12 }
 0x4cd   : > { %8224 = vmatpush3.bf16.msra.mxu1 %v8223_v31  ;;  %7851 = vmatprep.mubr.msk.f32.mxu1 %vm9414_vm2, %v9415_v30 }
 0x4ce   : > { %8225 = vmatprep.subr.bf16.mxu1 %v9405_v10 }
 0x4d1   : > { %8227 = vmatpush3.bf16.msra.mxu1 %v8226_v35 }
 0x4d2   : > { %8234 = vmatprep.subr.bf16.mxu1 %v9405_v10 }
 0x4d4   : > { %7852 = vmatmul.mubr.msk.f32.vlgmr.msra.gmra.mrb[2].mxu1 %vm3054_vm5, %v10567_v41 }
 0x4d5   : > { %8236 = vmatpush3.bf16.msra.mxu1 %v8235_v48  ;;  %7873 = vmatprep.mubr.msk.f32.mxu1 %vm9414_vm2, %v9415_v30 }
 0x4d6   : > { %8237 = vmatprep.subr.bf16.mxu1 %v9405_v10 }
 0x4d9   : > { %8239 = vmatpush3.bf16.msra.mxu1 %v8238_v58 }
 0x4da   : > { %8246 = vmatprep.subr.bf16.mxu1 %v9405_v10 }
 0x4dc   : > { %7874 = vmatmul.mubr.msk.f32.vlgmr.msra.gmra.mrb[4].mxu1 %vm3054_vm5, %v10580_v49 }
 0x4dd   : > { %8248 = vmatpush3.bf16.msra.mxu1 %v8247_v46  ;;  %7895 = vmatprep.mubr.msk.f32.mxu1 %vm9414_vm2, %v9415_v30  ;;  %v3647_v46 = vld [vmem:[%s11435_s29 + $0x8] sm:$0xff] }
 0x4de   : > { %8249 = vmatprep.subr.bf16.mxu1 %v9405_v10 }
 0x4e1   : > { %8251 = vmatpush3.bf16.msra.mxu1 %v8250_v32 }
 0x4e2   : > { %7898 = vmatprep.subr.mxu1 %v9415_v30 }
 0x59f   : > { %v3228_v9 = vpop.f32.mrb[0].mxu1 }
 0x5a0   : > { %v10593_v18 = vadd.f32 %v7481_v28, %v3228_v9  ;;  %v7842_v34 = vpop.f32.mrb[1].mxu1 }
 0x5a2   : > { %7896 = vmatmul.mubr.msk.f32.vlgmr.msra.gmra.mrb[6].mxu1 %vm3054_vm5, %v10593_v18 }
 0x5a3   : > { %7900 = vmatprep.mubr.msk.f32.mxu1 %vm9414_vm2, %v9415_v30 }
 0x5a7   : > { %v3312_v45 = vpop.f32.mrb[2].mxu1 }
 0x5a8   : > { %v3313_v7 = vadd.f32 %v7483_v57, %v3312_v45  ;;  %v7853_v59 = vpop.f32.mrb[3].mxu1 }
 0x5aa   : > { %v3316_v8 = vmax.f32 %v3313_v7, 0.0 }
 0x5ac   : > { %7863 = vmatmul.mubr.msk.f32.vlgmr.msra.gmra.mrb[2].mxu0 %vm3054_vm5, %v3316_v8 }
 0x5ad   : > { %8242 = vmatpush3.bf16.msra.mxu0 %v8241_v4  ;;  %7884 = vmatprep.mubr.msk.f32.mxu0 %vm9414_vm2, %v9415_v30 }
 0x5ae   : > { %8243 = vmatprep.subr.bf16.mxu0 %v9405_v10 }
 0x5af   : > { %v3486_v3 = vpop.f32.mrb[4].mxu1 }
 0x5b0   : > { %v7875_v29 = vpop.f32.mrb[5].mxu1 }
 0x5b1   : > { %8245 = vmatpush3.bf16.msra.mxu0 %v8244_v17 }
 0x5b2   : > { %7908 = vmatprep.subr.mxu0 %v9415_v30 }
 0x5b4   : > { %7885 = vmatmul.mubr.msk.f32.vlgmr.msra.gmra.mrb[4].mxu0 %vm3054_vm5, %v10567_v41 }
 0x5b5   : > { %7910 = vmatprep.mubr.msk.f32.mxu0 %vm9414_vm2, %v9415_v30 }
 0x675   : > { %v3633_v39 = vpop.f32.mrb[6].mxu1 }
 0x676   : > { %v7897_v50 = vpop.f32.mrb[7].mxu1 }
 0x67f   : > { %v10612_v14 = vpop.f32.mrb[2].mxu0 }
 0x680   : > { %v7864_v15 = vpop.f32.mrb[3].mxu0 }
 0x687   : > { %v3556_v61 = vpop.f32.mrb[4].mxu0 }
 0x688   : > { %v3557_v38 = vadd.f32 %v3556_v61, %v3486_v3  ;;  %v7886_v40 = vpop.f32.mrb[5].mxu0 }
 0x68a   : > { %v3637_v33 = vadd.f32 %v3633_v39, %v3557_v38 }
 0x68c   : > { %v10617_v23 = vadd.f32 %v7490_v16, %v3637_v33 }
 0x68e   : > { %3819 = vrot.lane.b32.xlu1 %v10617_v23, %s9417_s3  ;;  %3652 = vrot.lane.b32.xlu0 %v10617_v23, %s9418_s2  ;;  %v10623_v22 = vmul.f32 0.35355338, %v10617_v23  ;;  %s3403_s3 = ssub.f32 1.0, %s3402_s28 }
 0x692   : > { %3817 = vrot.lane.b32.xlu0 %v10623_v22, %s9419_s8  ;;  %s11439_s8 = sld [smem:[#allocation98_spill]] }
 0x700   : > { %v3820_v24 = vpop.permute.xlu1 %3819  ;;  %v3653_v26 = vpop.permute.xlu0 %3652 }
 0x701   : > { %7899 = vmatpush3.xpose.msk.msra.mxu1 %vm3654_vm8, %v3653_v26  ;;  %7909 = vmatpush3.xpose.msk.msra.mxu0 %vm3654_vm8, %v3820_v24  ;;  %v3648_v24 = vld [vmem:[%s11435_s29 + $0x10] sm:$0xff] }
 0x702   : > { %7903 = vmatprep.subr.mxu1 %v9415_v30  ;;  %7918 = vmatprep.subr.mxu0 %v9415_v30 }
 0x704   : > { %v3818_v27 = vpop.permute.xlu0 %3817  ;;  %7901 = vmatmul.mubr.msk.f32.vlgmr.msra.gmra.mrb[8].mxu1 %vm3654_vm8, %v10623_v22 }
 0x705   : > { %7911 = vmatmul.mubr.msk.f32.vlgmr.msra.gmra.mrb[6].mxu0 %vm3654_vm8, %v3818_v27  ;;  %7905 = vmatprep.mubr.msk.f32.mxu1 %vm9414_vm2, %v9415_v30 }
 0x706   : > { %7920 = vmatprep.mubr.msk.f32.mxu0 %vm9414_vm2, %v9415_v30  ;;  %7919 = vmatpush3.msra.mxu0 %v3647_v46  ;;  %v4650_v46 = vld [vmem:[%s11436_s18 + $0x8] sm:$0xff] }
 0x707   : > { %7928 = vmatprep.subr.mxu0 %v9415_v30 }
 0x7d7   : > { %v3726_v19 = vpop.f32.mrb[8].mxu1 }
 0x7d8   : > { %v7902_v63 = vpop.f32.mrb[9].mxu1  ;;  %v3891_v25 = vpop.f32.mrb[6].mxu0  ;;  %v3730_v31 = vsel %vm3654_vm8, %v3726_v19, -inf }
 0x7d9   : > { %v7912_v12 = vpop.f32.mrb[7].mxu0  ;;  %3731 = vmax.xlane.f32.xlu1 %v3730_v31  ;;  %v3895_v53 = vsel %vm3654_vm8, %v3891_v25, -inf }
 0x7da   : > { %3896 = vmax.xlane.f32.xlu0 %v3895_v53 }
 0x866   : > { %v3732_v36 = vpop.xlane.xlu1 %3731 }
 0x867   : > { %v3733_v35 = vsub.f32 %v3726_v19, %v3732_v36  ;;  %v3897_v21 = vpop.xlane.xlu0 %3896 }
 0x868   : > { %v3898_v1 = vsub.f32 %v3891_v25, %v3897_v21 }
 0x869   : > { %v3734_v48 = vmul.f32 1.442695, %v3733_v35 }
 0x86a   : > { %v3899_v54 = vmul.f32 1.442695, %v3898_v1  ;;  %v3649_v1 = vld [vmem:[%s11435_s29 + $0x18] sm:$0xff]  ;;  %s11440_s29 = scalar_lea.vmem %s11438_s11, %s10097_s10 }
 0x86b   : > { %8679 = vpow2.f32 %v3734_v48 }
 0x86c   : > { %8681 = vpow2.f32 %v3899_v54 }
 0x875   : > { %v8680_v43 = vpop.eup %8679 }
 0x876   : > { %v8682_v58 = vpop.eup %8681  ;;  %v3736_v51 = vsel %vm3654_vm8, %v8680_v43, 0.0 }
 0x877   : > { %3737 = vadd.xlane.f32.xlu0 %v3736_v51  ;;  %v3901_v13 = vsel %vm3654_vm8, %v8682_v58, 0.0 }
 0x878   : > { %3902 = vadd.xlane.f32.xlu1 %v3901_v13  ;;  %v4649_v13 = vld [vmem:[%s11436_s18] sm:$0xff] }
 0x889   : > { %3906 = vrot.lane.b32.xlu1 %v10617_v23, %s9420_s13  ;;  %s11441_s13 = sld [smem:[#allocation43_spill]] }
 0x88d   : > { %4130 = vrot.lane.b32.xlu1 %v10617_v23, %s9421_s14  ;;  %3741 = vrot.lane.b32.xlu0 %v10617_v23, %s9422_s19  ;;  %s11444_s14 = sld [smem:[#allocation67_spill]] }
 0x88e   : > { %s11445_s19 = sld [smem:[#allocation99_spill]] }
 0x891   : > { %4128 = vrot.lane.b32.xlu0 %v10623_v22, %s9423_s12  ;;  %s11446_s12 = sld [smem:[#allocation68_spill]] }
 0x904   : > { %v3738_v62 = vpop.xlane.xlu0 %3737 }
 0x905   : > { %8683 = vrcp.f32 %v3738_v62  ;;  %v3903_v0 = vpop.xlane.xlu1 %3902  ;;  %v3404_v62 = vstv %s3403_s3 }
 0x906   : > { %8685 = vrcp.f32 %v3903_v0 }
 0x908   : > { %v3742_v32 = vpop.permute.xlu0 %3741 }
 0x909   : > { %7904 = vmatpush3.msra.mxu1 %v3742_v32  ;;  %v3907_v44 = vpop.permute.xlu1 %3906  ;;  %v8253_v32 = vpack.c.bf16 %v4650_v46, %v4649_v13 }
 0x90a   : > { %7913 = vmatprep.subr.mxu1 %v9415_v30 }
 0x90c   : > { %v4129_v52 = vpop.permute.xlu0 %4128 }
 0x90d   : > { %v4131_v57 = vpop.permute.xlu1 %4130 }
 0x90f   : > { %v8684_v2 = vpop.eup %8683 }
 0x910   : > { %v3740_v47 = vmul.f32 %v8684_v2, %v8680_v43  ;;  %v8686_v60 = vpop.eup %8685 }
 0x911   : > { %v3905_v55 = vmul.f32 %v8686_v60, %v8682_v58  ;;  %v7485_v58 = vld [vmem:[#allocation17] ss:$0 sm:$0xff]  ;;  %v4651_v60 = vld [vmem:[%s11436_s18 + $0x10] sm:$0xff] }
 0x912   : > { %7906 = vmatmul.mubr.msk.f32.vlgmr.msra.gmra.mrb[10].mxu1 %vm3654_vm8, %v3740_v47  ;;  %v3398_v51 = vadd.f32 %v7485_v58, %v10612_v14  ;;  %v2153_v58 = vld [vmem:[%s11441_s13 + $0x78] sm:$0xff] }
 0x913   : > { %7914 = vmatpush3.msra.mxu1 %v3907_v44  ;;  %7915 = vmatprep.mubr.msk.f32.mxu1 %vm9414_vm2, %v9415_v30  ;;  %v4652_v44 = vld [vmem:[%s11436_s18 + $0x18] sm:$0xff]  ;;  %s11450_s18 = sld [smem:[#allocation44_spill]] }
 0x914   : > { %7923 = vmatprep.subr.mxu1 %v9415_v30  ;;  %v3405_v2 = vmul.f32 %v3404_v62, %v3398_v51 }
 0x916   : > { %7916 = vmatmul.mubr.msk.f32.vlgmr.msra.gmra.mrb[12].mxu1 %vm3654_vm8, %v3905_v55  ;;  %v3406_v55 = vstv %s3402_s28  ;;  %s11452_s28 = scalar_lea.vmem %s11451_s24, %s10097_s10 }
 0x917   : > { %7925 = vmatprep.mubr.msk.f32.mxu1 %vm9414_vm2, %v9415_v30  ;;  %7924 = vmatpush3.msra.mxu1 %v3646_v6  ;;  %v8256_v6 = vpack.c.bf16 %v4652_v44, %v4651_v60 }
 0x918   : > { %7933 = vmatprep.subr.mxu1 %v9415_v30 }
 0x9e5   : > { %v3813_v28 = vpop.f32.mrb[10].mxu1 }
 0x9e6   : > { %v7907_v9 = vpop.f32.mrb[11].mxu1  ;;  %7926 = vmatmul.mubr.msk.f32.vlgmr.msra.gmra.mrb[14].mxu1 %vm3654_vm8, %v3813_v28  ;;  %v3407_v28 = vadd.f32 %v3406_v55, %v3405_v2 }
 0x9e7   : > { %7935 = vmatprep.mubr.msk.f32.mxu1 %vm9414_vm2, %v9415_v30 }
 0x9e8   : > { %v3408_v14 = vmul.f32 %v3407_v28, %v10554_v20 }
 0x9e9   : > { %v3978_v34 = vpop.f32.mrb[12].mxu1 }
 0x9ea   : > { %v7917_v11 = vpop.f32.mrb[13].mxu1  ;;  %7921 = vmatmul.mubr.msk.f32.vlgmr.msra.gmra.mrb[8].mxu0 %vm3654_vm8, %v3978_v34 }
 0x9eb   : > { %7929 = vmatpush3.xpose.msk.msra.mxu0 %vm3654_vm8, %v4131_v57  ;;  %7930 = vmatprep.mubr.msk.f32.mxu0 %vm9414_vm2, %v9415_v30 }
 0x9ec   : > { %7938 = vmatprep.subr.mxu0 %v9415_v30 }
 0x9ee   : > { %7931 = vmatmul.mubr.msk.f32.vlgmr.msra.gmra.mrb[10].mxu0 %vm3654_vm8, %v4129_v52 }
 0x9ef   : > { %7940 = vmatprep.mubr.msk.f32.mxu0 %vm9414_vm2, %v9415_v30  ;;  %7939 = vmatpush3.msra.mxu0 %v3648_v24 }
 0x9f0   : > { %7948 = vmatprep.subr.mxu0 %v9415_v30 }
 0xab9   : > { %v4124_v45 = vpop.f32.mrb[14].mxu1 }
 0xaba   : > { %v7927_v7 = vpop.f32.mrb[15].mxu1 }
 0xabb   : > { %v7507_v7 = vld [vmem:[%s11440_s29] ss:$0 sm:$0xff] }
 0xabd   : > { %v4051_v59 = vpop.f32.mrb[8].mxu0 }
 0xabe   : > { %v4125_v4 = vadd.f32 %v4124_v45, %v4051_v59  ;;  %v7922_v8 = vpop.f32.mrb[9].mxu0 }
 0xac1   : > { %v4202_v56 = vpop.f32.mrb[10].mxu0 }
 0xac2   : > { %v7932_v5 = vpop.f32.mrb[11].mxu0  ;;  %v4206_v17 = vsel %vm3654_vm8, %v4202_v56, -inf }
 0xac3   : > { %4207 = vmax.xlane.f32.xlu1 %v4206_v17  ;;  %v4800_v5 = vld [vmem:[%s11439_s8 + $0x8] sm:$0xff]  ;;  %v4801_v17 = vld [vmem:[%s11439_s8 + $0x10] sm:$0xff] }
 0xad4   : > { %4369 = vrot.lane.b32.xlu1 %v10617_v23, %s9424_s27  ;;  %s11447_s27 = scalar_lea.vmem %s11444_s14, %s10097_s10 }
 0xad8   : > { %4367 = vrot.lane.b32.xlu1 %v10623_v22, %s9425_s1  ;;  %s11448_s1 = scalar_lea.vmem %s11446_s12, %s10097_s10 }
 0xb50   : > { %v4208_v3 = vpop.xlane.xlu1 %4207 }
 0xb51   : > { %v4209_v29 = vsub.f32 %v4202_v56, %v4208_v3  ;;  %v4799_v56 = vld [vmem:[%s11439_s8] sm:$0xff] }
 0xb52   : > { %v8265_v3 = vpack.c.bf16 %v4800_v5, %v4799_v56 }
 0xb53   : > { %v4210_v39 = vmul.f32 1.442695, %v4209_v29  ;;  %v4802_v29 = vld [vmem:[%s11439_s8 + $0x18] sm:$0xff] }
 0xb54   : > { %v4370_v16 = vpop.permute.xlu1 %4369 }
 0xb55   : > { %8687 = vpow2.f32 %v4210_v39  ;;  %v4961_v39 = vld [vmem:[%s10138_s22] sm:$0xff] }
 0xb58   : > { %v4368_v22 = vpop.permute.xlu1 %4367 }
 0xb5f   : > { %v8688_v50 = vpop.eup %8687 }
 0xb60   : > { %v4212_v15 = vsel %vm3654_vm8, %v8688_v50, 0.0 }
 0xb61   : > { %4213 = vadd.xlane.f32.xlu0 %v4212_v15  ;;  %v8268_v15 = vpack.c.bf16 %v4802_v29, %v4801_v17 }
 0xb77   : > { %4217 = vrot.lane.b32.xlu0 %v10617_v23, %s9413_s6  ;;  %s9426_s6 = smov 40  }
 0xbee   : > { %v4214_v61 = vpop.xlane.xlu0 %4213 }
 0xbef   : > { %8689 = vrcp.f32 %v4214_v61  ;;  %v4963_v61 = vld [vmem:[%s10138_s22 + $0x10] sm:$0xff] }
 0xbf2   : > { %v4218_v38 = vpop.permute.xlu0 %4217 }
 0xbf3   : > { %7934 = vmatpush3.msra.mxu1 %v4218_v38  ;;  %v4964_v38 = vld [vmem:[%s10138_s22 + $0x18] sm:$0xff] }
 0xbf4   : > { %7943 = vmatprep.subr.mxu1 %v9415_v30 }
 0xbf9   : > { %v8690_v40 = vpop.eup %8689 }
 0xbfa   : > { %v4216_v33 = vmul.f32 %v8690_v40, %v8688_v50  ;;  %v4962_v50 = vld [vmem:[%s10138_s22 + $0x8] sm:$0xff]  ;;  %v8280_v40 = vpack.c.bf16 %v4964_v38, %v4963_v61  ;;  %s11443_s22 = sld [smem:[#allocation96_spill]]  ;;  %v7508_v61 = vld [vmem:[%s11447_s27] ss:$0 sm:$0xff] }
 0xbfc   : > { %7936 = vmatmul.mubr.msk.f32.vlgmr.msra.gmra.mrb[16].mxu1 %vm3654_vm8, %v4216_v33  ;;  %v4957_v33 = vld [vmem:[%s10135_s30] sm:$0xff] }
 0xbfd   : > { %7944 = vmatpush3.xpose.msk.msra.mxu1 %vm3654_vm8, %v4370_v16  ;;  %7945 = vmatprep.mubr.msk.f32.mxu1 %vm9414_vm2, %v9415_v30  ;;  %v2138_v16 = vld [vmem:[%s11441_s13] sm:$0xff] }
 0xbfe   : > { %7953 = vmatprep.subr.mxu1 %v9415_v30 }
 0xc00   : > { %7946 = vmatmul.mubr.msk.f32.vlgmr.msra.gmra.mrb[18].mxu1 %vm3654_vm8, %v4368_v22  ;;  %v4958_v22 = vld [vmem:[%s10135_s30 + $0x8] sm:$0xff]  ;;  %v4645_v60 = vld [vmem:[%s11443_s22] sm:$0xff]  ;;  %v4647_v28 = vld [vmem:[%s11443_s22 + $0x10] sm:$0xff] }
 0xc01   : > { %7955 = vmatprep.mubr.msk.f32.mxu1 %vm9414_vm2, %v9415_v30  ;;  %7954 = vmatpush3.msra.mxu1 %v3649_v1  ;;  %v8284_v24 = vpack.c.bf16 %v4958_v22, %v4957_v33  ;;  %v2148_v1 = vld [vmem:[%s11441_s13 + $0x50] sm:$0xff]  ;;  %v4646_v44 = vld [vmem:[%s11443_s22 + $0x8] sm:$0xff]  ;;  %v7509_v33 = vld [vmem:[%s11448_s1] ss:$0 sm:$0xff] }
 0xc02   : > { %8258 = vmatprep.subr.bf16.mxu1 %v9405_v10 }
 0xccf   : > { %v4289_v26 = vpop.f32.mrb[16].mxu1 }
 0xcd0   : > { %v7937_v27 = vpop.f32.mrb[17].mxu1  ;;  %7941 = vmatmul.mubr.msk.f32.vlgmr.msra.gmra.mrb[12].mxu0 %vm3654_vm8, %v4289_v26  ;;  %v4959_v26 = vld [vmem:[%s10135_s30 + $0x10] sm:$0xff] }
 0xcd1   : > { %7950 = vmatprep.mubr.msk.f32.mxu0 %vm9414_vm2, %v9415_v30  ;;  %v4960_v27 = vld [vmem:[%s10135_s30 + $0x18] sm:$0xff]  ;;  %s11442_s30 = sld [smem:[#allocation42_spill]] }
 0xcd3   : > { %v4441_v19 = vpop.f32.mrb[18].mxu1 }
 0xcd4   : > { %v7947_v63 = vpop.f32.mrb[19].mxu1  ;;  %v4445_v25 = vsel %vm3654_vm8, %v4441_v19, -inf }
 0xcd5   : > { %4446 = vmax.xlane.f32.xlu0 %v4445_v25  ;;  %v2140_v63 = vld [vmem:[%s11441_s13 + $0x10] sm:$0xff]  ;;  %v8288_v25 = vpack.c.bf16 %v4960_v27, %v4959_v26 }
 0xcd6   : > { %v4876_v27 = vld [vmem:[%s11445_s19 + $0x10] sm:$0xff] }
 0xcd7   : > { %v2123_v2 = vld [vmem:[%s11442_s30 + $0x8] sm:$0xff]  ;;  %v2125_v55 = vld [vmem:[%s11442_s30 + $0x18] sm:$0xff]  ;;  %v2136_v5 = vld [vmem:[%s11442_s30 + $0x70] sm:$0xff] }
 0xcd8   : > { %v2135_v56 = vld [vmem:[%s11442_s30 + $0x68] sm:$0xff]  ;;  %v2137_v17 = vld [vmem:[%s11442_s30 + $0x78] sm:$0xff] }
 0xceb   : > { %4456 = vrot.lane.b32.xlu0 %v10617_v23, %s9426_s6  ;;  %s11449_s6 = scalar_lea.vmem [#allocation26], %s10087_s15 }
 0xd62   : > { %v4447_v31 = vpop.xlane.xlu0 %4446 }
 0xd63   : > { %v4448_v12 = vsub.f32 %v4441_v19, %v4447_v31  ;;  %v2139_v19 = vld [vmem:[%s11441_s13 + $0x8] sm:$0xff]  ;;  %v2142_v31 = vld [vmem:[%s11441_s13 + $0x20] sm:$0xff] }
 0xd65   : > { %v4449_v53 = vmul.f32 1.442695, %v4448_v12  ;;  %v2143_v12 = vld [vmem:[%s11441_s13 + $0x28] sm:$0xff] }
 0xd66   : > { %v4457_v36 = vpop.permute.xlu0 %4456 }
 0xd67   : > { %8691 = vpow2.f32 %v4449_v53  ;;  %7949 = vmatpush3.msra.mxu0 %v4457_v36  ;;  %v2144_v53 = vld [vmem:[%s11441_s13 + $0x30] sm:$0xff]  ;;  %v2145_v36 = vld [vmem:[%s11441_s13 + $0x38] sm:$0xff] }
 0xd68   : > { %8252 = vmatprep.subr.bf16.mxu0 %v9405_v10 }
 0xd71   : > { %v8692_v35 = vpop.eup %8691 }
 0xd72   : > { %v4451_v21 = vsel %vm3654_vm8, %v8692_v35, 0.0 }
 0xd73   : > { %4452 = vadd.xlane.f32.xlu1 %v4451_v21  ;;  %v2147_v21 = vld [vmem:[%s11441_s13 + $0x48] sm:$0xff] }
 0xda3   : > { %v4362_v23 = vpop.f32.mrb[12].mxu0 }
 0xda4   : > { %v4366_v48 = vadd.f32 %v4362_v23, %v4125_v4  ;;  %v7942_v54 = vpop.f32.mrb[13].mxu0  ;;  %v2149_v23 = vld [vmem:[%s11441_s13 + $0x58] sm:$0xff] }
 0xda5   : > { %v2151_v54 = vld [vmem:[%s11441_s13 + $0x68] sm:$0xff] }
 0xe00   : > { %v4453_v43 = vpop.xlane.xlu1 %4452 }
 0xe01   : > { %8693 = vrcp.f32 %v4453_v43  ;;  %v2152_v43 = vld [vmem:[%s11441_s13 + $0x70] sm:$0xff] }
 0xe0b   : > { %v8694_v0 = vpop.eup %8693 }
 0xe0c   : > { %v4455_v47 = vmul.f32 %v8694_v0, %v8692_v35  ;;  %v2146_v35 = vld [vmem:[%s11441_s13 + $0x40] sm:$0xff] }
 0xe0e   : > { %7951 = vmatmul.mubr.msk.f32.vlgmr.msra.gmra.mrb[14].mxu0 %vm3654_vm8, %v4455_v47  ;;  %v2124_v47 = vld [vmem:[%s11442_s30 + $0x10] sm:$0xff] }
 0xe0f   : > { %8254 = vmatpush3.bf16.msra.mxu0 %v8253_v32  ;;  %7966 = vmatprep.mubr.msk.f32.mxu0 %vm9414_vm2, %v9415_v30  ;;  %v2122_v32 = vld [vmem:[%s11442_s30] sm:$0xff] }
 0xe10   : > { %8255 = vmatprep.subr.bf16.mxu0 %v9405_v10 }
 0xe13   : > { %8257 = vmatpush3.bf16.msra.mxu0 %v8256_v6  ;;  %v8259_v6 = vpack.c.bf16 %v4646_v44, %v4645_v60 }
 0xe14   : > { %8264 = vmatprep.subr.bf16.mxu0 %v9405_v10 }
 0xe16   : > { %7967 = vmatmul.mubr.msk.f32.vlgmr.msra.gmra.mrb[16].mxu0 %vm3054_vm5, %v3408_v14  ;;  %v4648_v14 = vld [vmem:[%s11443_s22 + $0x18] sm:$0xff] }
 0xe17   : > { %7988 = vmatprep.mubr.msk.f32.mxu0 %vm9414_vm2, %v9415_v30  ;;  %8266 = vmatpush3.bf16.msra.mxu0 %v8265_v3 }
 0xe18   : > { %8267 = vmatprep.subr.bf16.mxu0 %v9405_v10 }
 0xe1b   : > { %8269 = vmatpush3.bf16.msra.mxu0 %v8268_v15 }
 0xe1e   : > { %7989 = vmatmul.mubr.msk.f32.vlgmr.msra.gmra.mrb[18].mxu0 %vm3054_vm5, %v10580_v49  ;;  %v2141_v49 = vld [vmem:[%s11441_s13 + $0x18] sm:$0xff] }
 0xe1f   : > { %8010 = vmatprep.mubr.msk.f32.mxu0 %vm3054_vm5, %v2138_v16  ;;  %v4875_v16 = vld [vmem:[%s11445_s19 + $0x8] sm:$0xff] }
 0xee1   : > { %v4528_v9 = vpop.f32.mrb[14].mxu0 }
 0xee2   : > { %v7952_v34 = vpop.f32.mrb[15].mxu0  ;;  %7956 = vmatmul.mubr.msk.f32.vlgmr.msra.gmra.mrb[20].mxu1 %vm3654_vm8, %v4528_v9  ;;  %v2126_v9 = vld [vmem:[%s11442_s30 + $0x20] sm:$0xff] }
 0xee3   : > { %7977 = vmatprep.mubr.msk.f32.mxu1 %vm9414_vm2, %v9415_v30  ;;  %8260 = vmatpush3.bf16.msra.mxu1 %v8259_v6  ;;  %v8262_v34 = vpack.c.bf16 %v4648_v14, %v4647_v28 }
 0xee4   : > { %8261 = vmatprep.subr.bf16.mxu1 %v9405_v10 }
 0xee7   : > { %8263 = vmatpush3.bf16.msra.mxu1 %v8262_v34  ;;  %v2154_v34 = vld [vmem:[%s11450_s18] sm:$0xff] }
 0xee8   : > { %8270 = vmatprep.subr.bf16.mxu1 %v9405_v10 }
 0xee9   : > { %v10713_v20 = vpop.f32.mrb[16].mxu0 }
 0xeea   : > { %v7968_v57 = vpop.f32.mrb[17].mxu0 }
 0xeeb   : > { %v2127_v57 = vld [vmem:[%s11442_s30 + $0x28] sm:$0xff] }
 0xef1   : > { %v10813_v3 = vpop.f32.mrb[18].mxu0 }
 0xef2   : > { %v7990_v29 = vpop.f32.mrb[19].mxu0 }
 0xfb5   : > { %v4601_v11 = vpop.f32.mrb[20].mxu1 }
 0xfb6   : > { %v4605_v52 = vadd.f32 %v4601_v11, %v4366_v48  ;;  %v7957_v45 = vpop.f32.mrb[21].mxu1  ;;  %v2150_v48 = vld [vmem:[%s11441_s13 + $0x60] sm:$0xff]  ;;  %v2128_v11 = vld [vmem:[%s11442_s30 + $0x30] sm:$0xff] }
 0xfb7   : > { %v2130_v45 = vld [vmem:[%s11442_s30 + $0x40] sm:$0xff] }
 0xfb8   : > { %v4606_v59 = vadd.f32 %v4605_v52, %v10567_v41  ;;  %v8276_v41 = vpack.c.bf16 %v4962_v50, %v4961_v39  ;;  %v2129_v52 = vld [vmem:[%s11442_s30 + $0x38] sm:$0xff] }
 0xfba   : > { %v10719_v4 = vadd.f32 %v7507_v7, %v4606_v59  ;;  %8277 = vmatprep.subr.bf16.mxu0 %v8276_v41  ;;  %v2131_v7 = vld [vmem:[%s11442_s30 + $0x48] sm:$0xff]  ;;  %v2132_v59 = vld [vmem:[%s11442_s30 + $0x50] sm:$0xff] }
 0xfbb   : > { %8279 = vmatpush3.bf16.msra.mxu0 %v8276_v41 }
 0xfbc   : > { %v4615_v8 = vsel %vm3054_vm5, %v10719_v4, 0.0  ;;  %8281 = vmatprep.subr.bf16.mxu0 %v8280_v40 }
 0xfbd   : > { %4616 = vadd.xlane.f32.xlu1 %v4615_v8  ;;  %v2134_v8 = vld [vmem:[%s11442_s30 + $0x60] sm:$0xff] }
 0xfbf   : > { %8283 = vmatpush3.bf16.msra.mxu0 %v8280_v40  ;;  %v4874_v40 = vld [vmem:[%s11445_s19] sm:$0xff] }
 0xfc0   : > { %8285 = vmatprep.subr.bf16.mxu0 %v8284_v24 }
 0xfc2   : > { %8011 = vmatmul.mubr.msk.f32.vlgmr.msra.gmra.mrb[20].mxu0 %vm3054_vm5, %v2139_v19  ;;  %v4877_v19 = vld [vmem:[%s11445_s19 + $0x18] sm:$0xff] }
 0xfc3   : > { %8013 = vmatprep.mubr.msk.f32.mxu0 %vm3054_vm5, %v2140_v63  ;;  %8287 = vmatpush3.bf16.msra.mxu0 %v8284_v24  ;;  %v8271_v24 = vpack.c.bf16 %v4875_v16, %v4874_v40  ;;  %v8274_v63 = vpack.c.bf16 %v4877_v19, %v4876_v27 }
 0xfc4   : > { %8289 = vmatprep.subr.bf16.mxu0 %v8288_v25 }
 0xfc6   : > { %8014 = vmatmul.mubr.msk.f32.gmra.mrb[22].mxu0 %vm3054_vm5, %v2141_v49 }
 0xfc7   : > { %8016 = vmatprep.mubr.msk.f32.mxu0 %vm3054_vm5, %v2142_v31  ;;  %8291 = vmatpush3.bf16.msra.mxu0 %v8288_v25  ;;  %v7547_v25 = vld [vmem:[%s11449_s6] ss:$0 sm:$0xff] }
 0xfc8   : > { %8312 = vmatprep.subr.bf16.mxu0 %v9405_v10 }
 0xfca   : > { %8017 = vmatmul.mubr.msk.f32.gmra.mrb[24].mxu0 %vm3054_vm5, %v2143_v12 }
 0xfcb   : > { %8019 = vmatprep.mubr.msk.f32.mxu0 %vm3054_vm5, %v2144_v53 }
 0xfce   : > { %8020 = vmatmul.mubr.msk.f32.gmra.mrb[26].mxu0 %vm3054_vm5, %v2145_v36 }
 0xfcf   : > { %8022 = vmatprep.mubr.msk.f32.mxu0 %vm3054_vm5, %v2146_v35 }
 0xfd2   : > { %8023 = vmatmul.mubr.msk.f32.gmra.mrb[28].mxu0 %vm3054_vm5, %v2147_v21 }
 0xfd3   : > { %8025 = vmatprep.mubr.msk.f32.mxu0 %vm3054_vm5, %v2148_v1 }
 0xfd6   : > { %8026 = vmatmul.mubr.msk.f32.gmra.mrb[30].mxu0 %vm3054_vm5, %v2149_v23 }
 0xfd7   : > { %8028 = vmatprep.mubr.msk.f32.mxu0 %vm3054_vm5, %v2150_v48 }
 0xfda   : > { %8029 = vmatmul.mubr.msk.f32.gmra.mrb[32].mxu0 %vm3054_vm5, %v2151_v54 }
 0xfdb   : > { %8031 = vmatprep.mubr.msk.f32.mxu0 %vm3054_vm5, %v2152_v43 }
 0xfde   : > { %8032 = vmatmul.mubr.msk.f32.gmra.mrb[34].mxu0 %vm3054_vm5, %v2153_v58 }
 0xfdf   : > { %8042 = vmatprep.mubr.msk.f32.mxu0 %vm3054_vm5, %v2122_v32 }
 0xfe2   : > { %8043 = vmatmul.mubr.msk.f32.vlgmr.msra.gmra.mrb[20].mxu0 %vm3054_vm5, %v2123_v2 }
 0xfe3   : > { %8045 = vmatprep.mubr.msk.f32.mxu0 %vm3054_vm5, %v2124_v47 }
 0xfe6   : > { %8046 = vmatmul.mubr.msk.f32.gmra.mrb[22].mxu0 %vm3054_vm5, %v2125_v55 }
 0xfe7   : > { %8048 = vmatprep.mubr.msk.f32.mxu0 %vm3054_vm5, %v2126_v9 }
 0xfea   : > { %8049 = vmatmul.mubr.msk.f32.gmra.mrb[24].mxu0 %vm3054_vm5, %v2127_v57  ;;  %v2155_v57 = vld [vmem:[%s11450_s18 + $0x8] sm:$0xff] }
 0xfeb   : > { %8051 = vmatprep.mubr.msk.f32.mxu0 %vm3054_vm5, %v2128_v11  ;;  %v2156_v11 = vld [vmem:[%s11450_s18 + $0x10] sm:$0xff] }
 0xfee   : > { %8052 = vmatmul.mubr.msk.f32.gmra.mrb[26].mxu0 %vm3054_vm5, %v2129_v52 }
 0xfef   : > { %8054 = vmatprep.mubr.msk.f32.mxu0 %vm3054_vm5, %v2130_v45 }
 0xff2   : > { %8055 = vmatmul.mubr.msk.f32.gmra.mrb[28].mxu0 %vm3054_vm5, %v2131_v7  ;;  %v10895_v7 = vpack.c.bf16 %v2155_v57, %v2154_v34 }
 0xff3   : > { %8057 = vmatprep.mubr.msk.f32.mxu0 %vm3054_vm5, %v2132_v59  ;;  %v2157_v59 = vld [vmem:[%s11450_s18 + $0x18] sm:$0xff] }
0x104a   : > { %v4617_v51 = vpop.xlane.xlu1 %4616 }
0x104b   : > { %v4619_v13 = vmul.f32 0.03125, %v4617_v51 }
0x104d   : > { %v4620_v46 = vsub.f32 %v10719_v4, %v4619_v13  ;;  %v2133_v4 = vld [vmem:[%s11442_s30 + $0x58] sm:$0xff] }
0x104e   : > { %8058 = vmatmul.mubr.msk.f32.gmra.mrb[30].mxu0 %vm3054_vm5, %v2133_v4 }
0x104f   : > { %v4621_v62 = vmul.f32 %v4620_v46, %v4620_v46  ;;  %8060 = vmatprep.mubr.msk.f32.mxu0 %vm3054_vm5, %v2134_v8  ;;  %v10902_v8 = vpack.c.bf16 %v2157_v59, %v2156_v11 }
0x1051   : > { %v4622_v0 = vsel %vm3054_vm5, %v4621_v62, 0.0 }
0x1052   : > { %4623 = vadd.xlane.f32.xlu1 %v4622_v0  ;;  %8061 = vmatmul.mubr.msk.f32.gmra.mrb[32].mxu0 %vm3054_vm5, %v2135_v56 }
0x1053   : > { %8063 = vmatprep.mubr.msk.f32.mxu0 %vm3054_vm5, %v2136_v5 }
0x1056   : > { %8064 = vmatmul.mubr.msk.f32.gmra.mrb[34].mxu0 %vm3054_vm5, %v2137_v17 }
0x1057   : > { %8138 = vmatprep.mubr.msk.f32.mxu0 %vm9414_vm2, %v9415_v30 }
0x10b5   : > { %v8044_v49 = vpop.f32.mrb[20].mxu0 }
0x10b6   : > { %v10836_v31 = vadd.f32 %v8044_v49, %v7547_v25  ;;  %v5272_v12 = vpop.f32.mrb[21].mxu0 }
0x10b7   : > { %v10838_v53 = vadd.f32 %v7547_v25, %v5272_v12 }
0x10b8   : > { %6114 = vrot.lane.b32.xlu0 %v10836_v31, %s9418_s2 }
0x10b9   : > { %v8047_v36 = vpop.f32.mrb[22].mxu0  ;;  %6112 = vrot.lane.b32.xlu1 %v10838_v53, %s9418_s2 }
0x10ba   : > { %v5282_v35 = vpop.f32.mrb[23].mxu0  ;;  %v10846_v1 = vadd.f32 %v8047_v36, %v7547_v25 }
0x10bb   : > { %v10844_v21 = vadd.f32 %v7547_v25, %v5282_v35 }
0x10bd   : > { %6116 = vrot.lane.b32.xlu0 %v10844_v21, %s9418_s2 }
0x10c1   : > { %6118 = vrot.lane.b32.xlu0 %v10846_v1, %s9418_s2 }
0x10df   : > { %v4624_v39 = vpop.xlane.xlu1 %4623 }
0x10e0   : > { %v4625_v50 = vmul.f32 0.03125, %v4624_v39  ;;  %v9427_v39 = vmov 1966171168  }
0x10e2   : > { %v4626_v15 = vadd.f32 1e-05, %v4625_v50  ;;  %v5378_v50 = vunpack.c.l.s4 %v9427_v39 }
0x10e4   : > { %8695 = vrsqrt.f32 %v4626_v15  ;;  %v5379_v15 = vunpack.c.0.s8 %v5378_v50 }
0x10ee   : > { %v8696_v41 = vpop.eup %8695 }
0x10ef   : > { %v4628_v38 = vmul.f32 %v8696_v41, %v4620_v46 }
0x10f1   : > { %v4636_v22 = vmul.f32 %v7508_v61, %v4628_v38  ;;  %v7514_v61 = vld [vmem:[%s11452_s28] ss:$0 sm:$0xff] }
0x10f3   : > { %v10823_v26 = vadd.f32 %v7509_v33, %v4636_v22  ;;  %v5382_v33 = vsub.s32 %v5379_v15, %v10203_v42 }
0x10f5   : > { %7978 = vmatmul.mubr.msk.f32.vlgmr.msra.gmra.mrb[22].mxu1 %vm3054_vm5, %v10823_v26 }
0x10f6   : > { %8272 = vmatpush3.bf16.msra.mxu1 %v8271_v24  ;;  %7999 = vmatprep.mubr.msk.f32.mxu1 %vm9414_vm2, %v9415_v30 }
0x10f7   : > { %8273 = vmatprep.subr.bf16.mxu1 %v9405_v10 }
0x10fa   : > { %8275 = vmatpush3.bf16.msra.mxu1 %v8274_v63 }
0x10fb   : > { %8293 = vmatprep.subr.bf16.mxu1 %v10895_v7 }
0x10fd   : > { %8000 = vmatmul.mubr.msk.f32.vlgmr.msra.gmra.mrb[24].mxu1 %vm3054_vm5, %v10593_v18  ;;  %v8050_v18 = vpop.f32.mrb[24].mxu0 }
0x10fe   : > { %v5292_v23 = vpop.f32.mrb[25].mxu0  ;;  %v10854_v54 = vadd.f32 %v8050_v18, %v7547_v25  ;;  %8295 = vmatpush3.bf16.msra.mxu1 %v10895_v7 }
0x10ff   : > { %v10850_v48 = vadd.f32 %v7547_v25, %v5292_v23  ;;  %v8053_v43 = vpop.f32.mrb[26].mxu0  ;;  %8297 = vmatprep.subr.bf16.mxu1 %v10902_v8 }
0x1100   : > { %v5302_v58 = vpop.f32.mrb[27].mxu0  ;;  %6122 = vrot.lane.b32.xlu0 %v10854_v54, %s9418_s2  ;;  %v10862_v13 = vadd.f32 %v8053_v43, %v7547_v25 }
0x1101   : > { %6120 = vrot.lane.b32.xlu1 %v10850_v48, %s9418_s2  ;;  %v10858_v51 = vadd.f32 %v7547_v25, %v5302_v58  ;;  %v8056_v46 = vpop.f32.mrb[28].mxu0 }
0x1102   : > { %v5312_v62 = vpop.f32.mrb[29].mxu0  ;;  %v10870_v32 = vadd.f32 %v8056_v46, %v7547_v25  ;;  %8299 = vmatpush3.bf16.msra.mxu1 %v10902_v8 }
0x1103   : > { %v10866_v0 = vadd.f32 %v7547_v25, %v5312_v62  ;;  %8302 = vmatprep.subr.msk.bf16.mxu1 %vm8301_vm10, %v10895_v7 }
0x1104   : > { %6126 = vrot.lane.b32.xlu0 %v10862_v13, %s9418_s2 }
0x1105   : > { %6124 = vrot.lane.b32.xlu1 %v10858_v51, %s9418_s2 }
0x1108   : > { %6130 = vrot.lane.b32.xlu0 %v10870_v32, %s9418_s2 }
0x1109   : > { %6128 = vrot.lane.b32.xlu1 %v10866_v0, %s9418_s2 }
0x1121   : > { %v8059_v2 = vpop.f32.mrb[30].mxu0 }
0x1122   : > { %v5322_v47 = vpop.f32.mrb[31].mxu0  ;;  %v10878_v44 = vadd.f32 %v8059_v2, %v7547_v25 }
0x1123   : > { %v10874_v60 = vadd.f32 %v7547_v25, %v5322_v47 }
0x1124   : > { %6134 = vrot.lane.b32.xlu0 %v10878_v44, %s9418_s2 }
0x1125   : > { %6132 = vrot.lane.b32.xlu1 %v10874_v60, %s9418_s2  ;;  %v8062_v55 = vpop.f32.mrb[32].mxu0 }
0x1126   : > { %v10884_v6 = vadd.f32 %v8062_v55, %v7547_v25  ;;  %v5332_v28 = vpop.f32.mrb[33].mxu0 }
0x1127   : > { %v10886_v14 = vadd.f32 %v7547_v25, %v5332_v28 }
0x1128   : > { %6138 = vrot.lane.b32.xlu0 %v10884_v6, %s9418_s2 }
0x1129   : > { %v8065_v9 = vpop.f32.mrb[34].mxu0  ;;  %6136 = vrot.lane.b32.xlu1 %v10886_v14, %s9418_s2 }
0x112a   : > { %v10893_v52 = vadd.f32 %v8065_v9, %v7547_v25  ;;  %v5342_v45 = vpop.f32.mrb[35].mxu0 }
0x112b   : > { %v10900_v4 = vadd.f32 %v7547_v25, %v5342_v45 }
0x112c   : > { %6142 = vrot.lane.b32.xlu0 %v10893_v52, %s9418_s2 }
0x112d   : > { %6140 = vrot.lane.b32.xlu1 %v10900_v4, %s9418_s2 }
0x11c8   : > { %v4795_v56 = vpop.f32.mrb[22].mxu1 }
0x11c9   : > { %v4796_v5 = vadd.f32 %v4795_v56, %v10713_v20  ;;  %v7979_v17 = vpop.f32.mrb[23].mxu1 }
0x11cb   : > { %v4873_v29 = vadd.f32 %v10813_v3, %v4796_v5 }
0x11d0   : > { %v4944_v41 = vpop.f32.mrb[24].mxu1 }
0x11d1   : > { %v4948_v38 = vadd.f32 %v4944_v41, %v4873_v29  ;;  %v8001_v40 = vpop.f32.mrb[25].mxu1 }
0x11d3   : > { %v4956_v16 = vadd.f32 %v7514_v61, %v4948_v38 }
0x11d5   : > { %v5374_v22 = vmul.f32 0.35355338, %v4956_v16 }
0x11d7   : > { %v5383_v24 = vrot.slane %v5374_v22, %v5382_v33  ;;  %v5376_v63 = vcombine.high %v5374_v22, %v5374_v22 }
0x11d9   : > { %v5391_v27 = vcombine.high %v5383_v24, %v5383_v24  ;;  %v5399_v19 = vrot.slane %v5383_v24, %v5382_v33  ;;  %v5390_v35 = vrot.slane %v5376_v63, %v5382_v33 }
0x11db   : > { %v5413_v20 = vrot.slane %v5391_v27, %v5382_v33  ;;  %v5421_v25 = vcombine.high %v5399_v19, %v5399_v19  ;;  %v5428_v3 = vrot.slane %v5399_v19, %v10296_v37  ;;  %v5392_v58 = vcombine.high %v5390_v35, %v5390_v35 }
0x11dd   : > { %v5466_v49 = vmul.f32 %v5428_v3, %v10836_v31  ;;  %v5465_v12 = vmul.f32 %v5428_v3, %v10838_v53  ;;  %v5432_v36 = vrot.slane %v5413_v20, %v10296_v37  ;;  %v5423_v18 = vcombine.high %v5413_v20, %v5413_v20 }
0x11de   : > { %v5436_v42 = vrot.slane %v5421_v25, %v10296_v37  ;;  %v5406_v31 = vrot.slane %v5390_v35, %v5382_v33  ;;  %v5420_v2 = vrot.slane %v5392_v58, %v5382_v33 }
0x11df   : > { %8074 = vmatprep.mubr.msk.f32.mxu1 %vm3054_vm5, %v5465_v12  ;;  %v5467_v23 = vmul.f32 %v5432_v36, %v10844_v21  ;;  %v5468_v43 = vmul.f32 %v5432_v36, %v10846_v1  ;;  %v5440_v46 = vrot.slane %v5423_v18, %v10296_v37 }
0x11e0   : > { %8075 = vmatmul.mubr.msk.f32.vlgmr.msra.gmra.mrb[26].mxu1 %vm3054_vm5, %v5466_v49  ;;  %v5469_v53 = vmul.f32 %v5436_v42, %v10850_v48  ;;  %v5470_v62 = vmul.f32 %v5436_v42, %v10854_v54  ;;  %v5444_v21 = vrot.slane %v5406_v31, %v10296_v37  ;;  %v5422_v48 = vcombine.high %v5406_v31, %v5406_v31 }
0x11e1   : > { %8077 = vmatprep.mubr.msk.f32.mxu1 %vm3054_vm5, %v5467_v23  ;;  %v5471_v47 = vmul.f32 %v5440_v46, %v10858_v51  ;;  %v5472_v1 = vmul.f32 %v5440_v46, %v10862_v13  ;;  %v5448_v28 = vrot.slane %v5420_v2, %v10296_v37  ;;  %v5424_v9 = vcombine.high %v5420_v2, %v5420_v2 }
0x11e2   : > { %v5473_v55 = vmul.f32 %v5444_v21, %v10866_v0  ;;  %v5474_v54 = vmul.f32 %v5444_v21, %v10870_v32  ;;  %v5452_v51 = vrot.slane %v5422_v48, %v10296_v37  ;;  %8305 = vmatpush3.bf16.xpose.msk.msra.mxu1 %vm8301_vm10, %v10895_v7 }
0x11e3   : > { %v5475_v34 = vmul.f32 %v5448_v28, %v10874_v60  ;;  %v5476_v13 = vmul.f32 %v5448_v28, %v10878_v44  ;;  %v5456_v57 = vrot.slane %v5424_v9, %v10296_v37  ;;  %8308 = vmatprep.subr.msk.bf16.mxu1 %vm8301_vm10, %v10902_v8 }
0x11e4   : > { %8078 = vmatmul.mubr.msk.f32.gmra.mrb[28].mxu1 %vm3054_vm5, %v5468_v43  ;;  %v5477_v0 = vmul.f32 %v5452_v51, %v10886_v14  ;;  %v5478_v32 = vmul.f32 %v5452_v51, %v10884_v6 }
0x11e5   : > { %8080 = vmatprep.mubr.msk.f32.mxu1 %vm3054_vm5, %v5469_v53  ;;  %v5479_v11 = vmul.f32 %v5456_v57, %v10900_v4  ;;  %v5480_v60 = vmul.f32 %v5456_v57, %v10893_v52 }
0x11e8   : > { %8081 = vmatmul.mubr.msk.f32.gmra.mrb[30].mxu1 %vm3054_vm5, %v5470_v62 }
0x11e9   : > { %8083 = vmatprep.mubr.msk.f32.mxu1 %vm3054_vm5, %v5471_v47 }
0x11ea   : > { %8311 = vmatpush3.bf16.xpose.msk.msra.mxu1 %vm8301_vm10, %v10902_v8 }
0x11eb   : > { %8318 = vmatprep.subr.bf16.mxu1 %v9405_v10 }
0x11ec   : > { %8084 = vmatmul.mubr.msk.f32.gmra.mrb[32].mxu1 %vm3054_vm5, %v5472_v1 }
0x11ed   : > { %8086 = vmatprep.mubr.msk.f32.mxu1 %vm3054_vm5, %v5473_v55 }
0x11f0   : > { %8087 = vmatmul.mubr.msk.f32.gmra.mrb[34].mxu1 %vm3054_vm5, %v5474_v54 }
0x11f1   : > { %8089 = vmatprep.mubr.msk.f32.mxu1 %vm3054_vm5, %v5475_v34 }
0x11f4   : > { %8090 = vmatmul.mubr.msk.f32.gmra.mrb[36].mxu1 %vm3054_vm5, %v5476_v13 }
0x11f5   : > { %8092 = vmatprep.mubr.msk.f32.mxu1 %vm3054_vm5, %v5477_v0 }
0x11f8   : > { %8093 = vmatmul.mubr.msk.f32.gmra.mrb[38].mxu1 %vm3054_vm5, %v5478_v32 }
0x11f9   : > { %8095 = vmatprep.mubr.msk.f32.mxu1 %vm3054_vm5, %v5479_v11 }
0x11fc   : > { %8096 = vmatmul.mubr.msk.f32.gmra.mrb[40].mxu1 %vm3054_vm5, %v5480_v60 }
0x12b3   : > { %v8076_v37 = vpop.f32.mrb[26].mxu1 }
0x12b4   : > { %v5676_v44 = vsel %vm5674_vm9, %v8076_v37, -inf  ;;  %v5595_v6 = vpop.f32.mrb[27].mxu1 }
0x12b5   : > { %v5675_v14 = vsel %vm5674_vm9, %v5595_v6, -inf }
0x12b6   : > { %v5677_v52 = vmax.f32 %v5675_v14, %v5676_v44 }
0x12b7   : > { %v8079_v45 = vpop.f32.mrb[28].mxu1 }
0x12b8   : > { %v5678_v59 = vrot.slane %v5677_v52, 4  ;;  %v5685_v4 = vsel %vm5674_vm9, %v8079_v45, -inf  ;;  %v5605_v56 = vpop.f32.mrb[29].mxu1 }
0x12b9   : > { %v5684_v7 = vsel %vm5674_vm9, %v5605_v56, -inf }
0x12ba   : > { %v5679_v5 = vmax.f32 %v5677_v52, %v5678_v59  ;;  %v5686_v17 = vmax.f32 %v5684_v7, %v5685_v4 }
0x12bb   : > { %v10969_v29 = vpop.f32.mrb[30].mxu1 }
0x12bc   : > { %v5680_v8 = vrot.slane %v5679_v5, 2  ;;  %v5687_v39 = vrot.slane %v5686_v17, 4  ;;  %v5694_v50 = vsel %vm5674_vm9, %v10969_v29, -inf  ;;  %v5615_v15 = vpop.f32.mrb[31].mxu1 }
0x12bd   : > { %v5693_v41 = vsel %vm5674_vm9, %v5615_v15, -inf }
0x12be   : > { %v5681_v61 = vmax.f32 %v5679_v5, %v5680_v8  ;;  %v5688_v38 = vmax.f32 %v5686_v17, %v5687_v39  ;;  %v5695_v40 = vmax.f32 %v5693_v41, %v5694_v50 }
0x12bf   : > { %v10974_v16 = vpop.f32.mrb[32].mxu1 }
0x12c0   : > { %v5682_v33 = vrot.slane %v5681_v61, 1  ;;  %v5689_v22 = vrot.slane %v5688_v38, 2  ;;  %v5696_v24 = vrot.slane %v5695_v40, 4  ;;  %v5703_v27 = vsel %vm5674_vm9, %v10974_v16, -inf  ;;  %v10978_v19 = vpop.f32.mrb[33].mxu1 }
0x12c1   : > { %v5702_v63 = vsel %vm5674_vm9, %v10978_v19, -inf }
0x12c2   : > { %v5683_v20 = vmax.f32 %v5681_v61, %v5682_v33  ;;  %v5690_v25 = vmax.f32 %v5688_v38, %v5689_v22  ;;  %v5697_v3 = vmax.f32 %v5695_v40, %v5696_v24  ;;  %v5704_v49 = vmax.f32 %v5702_v63, %v5703_v27 }
0x12c3   : > { %v10982_v12 = vpop.f32.mrb[34].mxu1 }
0x12c4   : > { %v5747_v36 = vsub.f32 %v5595_v6, %v5683_v20  ;;  %v5748_v35 = vsub.f32 %v8076_v37, %v5683_v20  ;;  %v5691_v18 = vrot.slane %v5690_v25, 1  ;;  %v5698_v42 = vrot.slane %v5697_v3, 2  ;;  %v10984_v23 = vpop.f32.mrb[35].mxu1 }
0x12c5   : > { %v5705_v43 = vrot.slane %v5704_v49, 4  ;;  %v5712_v58 = vsel %vm5674_vm9, %v10982_v12, -inf  ;;  %v5711_v31 = vsel %vm5674_vm9, %v10984_v23, -inf }
0x12c6   : > { %v5763_v53 = vmul.f32 1.442695, %v5747_v36  ;;  %v5765_v46 = vmul.f32 1.442695, %v5748_v35  ;;  %v5692_v62 = vmax.f32 %v5690_v25, %v5691_v18  ;;  %v5699_v2 = vmax.f32 %v5697_v3, %v5698_v42 }
0x12c7   : > { %v5706_v47 = vmax.f32 %v5704_v49, %v5705_v43  ;;  %v5713_v21 = vmax.f32 %v5711_v31, %v5712_v58  ;;  %v10990_v1 = vpop.f32.mrb[36].mxu1 }
0x12c8   : > { %8697 = vpow2.f32 %v5763_v53  ;;  %v5749_v48 = vsub.f32 %v5605_v56, %v5692_v62  ;;  %v5750_v55 = vsub.f32 %v8079_v45, %v5692_v62  ;;  %v5700_v28 = vrot.slane %v5699_v2, 1  ;;  %v10992_v54 = vpop.f32.mrb[37].mxu1 }
0x12c9   : > { %8699 = vpow2.f32 %v5765_v46  ;;  %v5707_v51 = vrot.slane %v5706_v47, 2  ;;  %v5714_v9 = vrot.slane %v5713_v21, 4  ;;  %v5721_v34 = vsel %vm5674_vm9, %v10990_v1, -inf }
0x12ca   : > { %v5767_v13 = vmul.f32 1.442695, %v5749_v48  ;;  %v5769_v0 = vmul.f32 1.442695, %v5750_v55  ;;  %v5701_v57 = vmax.f32 %v5699_v2, %v5700_v28  ;;  %v5720_v32 = vsel %vm5674_vm9, %v10992_v54, -inf }
0x12cb   : > { %v5708_v11 = vmax.f32 %v5706_v47, %v5707_v51  ;;  %v5715_v60 = vmax.f32 %v5713_v21, %v5714_v9  ;;  %v5722_v37 = vmax.f32 %v5720_v32, %v5721_v34  ;;  %v10998_v44 = vpop.f32.mrb[38].mxu1 }
0x12cc   : > { %8701 = vpow2.f32 %v5767_v13  ;;  %v5751_v6 = vsub.f32 %v5615_v15, %v5701_v57  ;;  %v5752_v14 = vsub.f32 %v10969_v29, %v5701_v57  ;;  %v5730_v52 = vsel %vm5674_vm9, %v10998_v44, -inf  ;;  %v11003_v45 = vpop.f32.mrb[39].mxu1 }
0x12cd   : > { %8703 = vpow2.f32 %v5769_v0  ;;  %v5709_v59 = vrot.slane %v5708_v11, 1  ;;  %v5716_v4 = vrot.slane %v5715_v60, 2  ;;  %v5723_v56 = vrot.slane %v5722_v37, 4 }
0x12ce   : > { %v5771_v7 = vmul.f32 1.442695, %v5751_v6  ;;  %v5773_v5 = vmul.f32 1.442695, %v5752_v14  ;;  %v5729_v17 = vsel %vm5674_vm9, %v11003_v45, -inf }
0x12cf   : > { %v5710_v8 = vmax.f32 %v5708_v11, %v5709_v59  ;;  %v5717_v39 = vmax.f32 %v5715_v60, %v5716_v4  ;;  %v5724_v50 = vmax.f32 %v5722_v37, %v5723_v56  ;;  %v5731_v15 = vmax.f32 %v5729_v17, %v5730_v52  ;;  %v11007_v41 = vpop.f32.mrb[40].mxu1 }
0x12d0   : > { %8705 = vpow2.f32 %v5771_v7  ;;  %v5739_v29 = vsel %vm5674_vm9, %v11007_v41, -inf  ;;  %v11011_v61 = vpop.f32.mrb[41].mxu1 }
0x12d1   : > { %8707 = vpow2.f32 %v5773_v5  ;;  %v5753_v38 = vsub.f32 %v10978_v19, %v5710_v8  ;;  %v5754_v40 = vsub.f32 %v10974_v16, %v5710_v8  ;;  %v5718_v33 = vrot.slane %v5717_v39, 1 }
0x12d2   : > { %v11015_v22 = vpop.eup %8697  ;;  %v5725_v24 = vrot.slane %v5724_v50, 2  ;;  %v5732_v27 = vrot.slane %v5731_v15, 4  ;;  %v5738_v63 = vsel %vm5674_vm9, %v11011_v61, -inf }
0x12d3   : > { %v11019_v20 = vpop.eup %8699  ;;  %v5795_v25 = vsel %vm5674_vm9, %v11015_v22, 0.0  ;;  %v5775_v3 = vmul.f32 1.442695, %v5753_v38  ;;  %v5777_v49 = vmul.f32 1.442695, %v5754_v40  ;;  %v5719_v36 = vmax.f32 %v5717_v39, %v5718_v33 }
0x12d4   : > { %v5796_v19 = vsel %vm5674_vm9, %v11019_v20, 0.0  ;;  %v5726_v16 = vmax.f32 %v5724_v50, %v5725_v24  ;;  %v5733_v35 = vmax.f32 %v5731_v15, %v5732_v27  ;;  %v5740_v18 = vmax.f32 %v5738_v63, %v5739_v29 }
0x12d5   : > { %v5797_v42 = vadd.f32 %v5796_v19, %v5795_v25  ;;  %8709 = vpow2.f32 %v5775_v3  ;;  %v5755_v43 = vsub.f32 %v10984_v23, %v5719_v36  ;;  %v5756_v58 = vsub.f32 %v10982_v12, %v5719_v36 }
0x12d6   : > { %v11027_v31 = vpop.eup %8701  ;;  %8711 = vpow2.f32 %v5777_v49  ;;  %v5727_v53 = vrot.slane %v5726_v16, 1  ;;  %v5734_v46 = vrot.slane %v5733_v35, 2  ;;  %v5741_v62 = vrot.slane %v5740_v18, 4 }
0x12d7   : > { %v11029_v2 = vpop.eup %8703  ;;  %v5798_v47 = vrot.slane %v5797_v42, 4  ;;  %v5804_v21 = vsel %vm5674_vm9, %v11027_v31, 0.0  ;;  %v5779_v48 = vmul.f32 1.442695, %v5755_v43  ;;  %v5781_v55 = vmul.f32 1.442695, %v5756_v58 }
0x12d8   : > { %v5805_v28 = vsel %vm5674_vm9, %v11029_v2, 0.0  ;;  %v5728_v23 = vmax.f32 %v5726_v16, %v5727_v53  ;;  %v5735_v51 = vmax.f32 %v5733_v35, %v5734_v46  ;;  %v5742_v12 = vmax.f32 %v5740_v18, %v5741_v62 }
0x12d9   : > { %v5799_v9 = vadd.f32 %v5798_v47, %v5797_v42  ;;  %v5806_v34 = vadd.f32 %v5805_v28, %v5804_v21  ;;  %8713 = vpow2.f32 %v5779_v48 }
0x12da   : > { %v11035_v13 = vpop.eup %8705  ;;  %8715 = vpow2.f32 %v5781_v55  ;;  %v5757_v0 = vsub.f32 %v10992_v54, %v5728_v23  ;;  %v5758_v57 = vsub.f32 %v10990_v1, %v5728_v23  ;;  %v5736_v32 = vrot.slane %v5735_v51, 1 }
0x12db   : > { %v11039_v11 = vpop.eup %8707  ;;  %v5800_v60 = vrot.slane %v5799_v9, 2  ;;  %v5807_v37 = vrot.slane %v5806_v34, 4  ;;  %v5813_v6 = vsel %vm5674_vm9, %v11035_v13, 0.0  ;;  %v5743_v14 = vrot.slane %v5742_v12, 2 }
0x12dc   : > { %v5814_v52 = vsel %vm5674_vm9, %v11039_v11, 0.0  ;;  %v5783_v59 = vmul.f32 1.442695, %v5757_v0  ;;  %v5785_v4 = vmul.f32 1.442695, %v5758_v57  ;;  %v5737_v56 = vmax.f32 %v5735_v51, %v5736_v32 }
0x12dd   : > { %v5801_v7 = vadd.f32 %v5800_v60, %v5799_v9  ;;  %v5808_v5 = vadd.f32 %v5807_v37, %v5806_v34  ;;  %v5815_v54 = vadd.f32 %v5814_v52, %v5813_v6  ;;  %v5744_v17 = vmax.f32 %v5742_v12, %v5743_v14 }
0x12de   : > { %8717 = vpow2.f32 %v5783_v59  ;;  %v5759_v1 = vsub.f32 %v11003_v45, %v5737_v56  ;;  %v5760_v8 = vsub.f32 %v10998_v44, %v5737_v56 }
0x12df   : > { %v11047_v39 = vpop.eup %8709  ;;  %v5802_v50 = vrot.slane %v5801_v7, 1  ;;  %v5809_v15 = vrot.slane %v5808_v5, 2  ;;  %v5816_v29 = vrot.slane %v5815_v54, 4  ;;  %8719 = vpow2.f32 %v5785_v4 }
0x12e0   : > { %v11049_v38 = vpop.eup %8711  ;;  %v5822_v40 = vsel %vm5674_vm9, %v11047_v39, 0.0  ;;  %v5787_v33 = vmul.f32 1.442695, %v5759_v1  ;;  %v5789_v24 = vmul.f32 1.442695, %v5760_v8  ;;  %v5745_v27 = vrot.slane %v5744_v17, 1 }
0x12e1   : > { %v5810_v63 = vadd.f32 %v5809_v15, %v5808_v5  ;;  %v5817_v25 = vadd.f32 %v5816_v29, %v5815_v54  ;;  %v5823_v45 = vsel %vm5674_vm9, %v11049_v38, 0.0  ;;  %v5803_v44 = vadd.f32 %v5802_v50, %v5801_v7 }
0x12e2   : > { %v5824_v3 = vadd.f32 %v5823_v45, %v5822_v40  ;;  %8721 = vpow2.f32 %v5787_v33  ;;  %v5746_v49 = vmax.f32 %v5744_v17, %v5745_v27 }
0x12e3   : > { %v11055_v36 = vpop.eup %8713  ;;  %v5811_v19 = vrot.slane %v5810_v63, 1  ;;  %v5818_v16 = vrot.slane %v5817_v25, 2  ;;  %8723 = vpow2.f32 %v5789_v24 }
0x12e4   : > { %v11057_v35 = vpop.eup %8715  ;;  %v5825_v18 = vrot.slane %v5824_v3, 4  ;;  %v5831_v42 = vsel %vm5674_vm9, %v11055_v36, 0.0  ;;  %v5761_v43 = vsub.f32 %v11011_v61, %v5746_v49  ;;  %v5762_v58 = vsub.f32 %v11007_v41, %v5746_v49 }
0x12e5   : > { %v5819_v53 = vadd.f32 %v5818_v16, %v5817_v25  ;;  %v5832_v46 = vsel %vm5674_vm9, %v11057_v35, 0.0  ;;  %8725 = vrcp.f32 %v5803_v44  ;;  %v5812_v62 = vadd.f32 %v5811_v19, %v5810_v63 }
0x12e6   : > { %v5826_v47 = vadd.f32 %v5825_v18, %v5824_v3  ;;  %v5833_v21 = vadd.f32 %v5832_v46, %v5831_v42  ;;  %v5791_v48 = vmul.f32 1.442695, %v5761_v43  ;;  %v5793_v55 = vmul.f32 1.442695, %v5762_v58 }
0x12e7   : > { %v5820_v28 = vrot.slane %v5819_v53, 1  ;;  %8727 = vrcp.f32 %v5812_v62 }
0x12e8   : > { %v11065_v23 = vpop.eup %8717  ;;  %v5827_v51 = vrot.slane %v5826_v47, 2  ;;  %v5834_v12 = vrot.slane %v5833_v21, 4  ;;  %8729 = vpow2.f32 %v5791_v48 }
0x12e9   : > { %v11067_v61 = vpop.eup %8719  ;;  %v5840_v41 = vsel %vm5674_vm9, %v11065_v23, 0.0  ;;  %8731 = vpow2.f32 %v5793_v55  ;;  %v5821_v9 = vadd.f32 %v5820_v28, %v5819_v53 }
0x12ea   : > { %v5828_v34 = vadd.f32 %v5827_v51, %v5826_v47  ;;  %v5835_v0 = vadd.f32 %v5834_v12, %v5833_v21  ;;  %v5841_v57 = vsel %vm5674_vm9, %v11067_v61, 0.0 }
0x12eb   : > { %v5842_v32 = vadd.f32 %v5841_v57, %v5840_v41  ;;  %8733 = vrcp.f32 %v5821_v9  ;;  %v6249_v57 = vld [vmem:[%s10162_s4 + $0x8] sm:$0xff] }
0x12ec   : > { %v11073_v60 = vpop.eup %8721  ;;  %v5829_v37 = vrot.slane %v5828_v34, 1  ;;  %v5836_v6 = vrot.slane %v5835_v0, 2 }
0x12ed   : > { %v11075_v14 = vpop.eup %8723  ;;  %v5843_v52 = vrot.slane %v5842_v32, 4  ;;  %v5849_v59 = vsel %vm5674_vm9, %v11073_v60, 0.0 }
0x12ee   : > { %v5837_v4 = vadd.f32 %v5836_v6, %v5835_v0  ;;  %v5850_v56 = vsel %vm5674_vm9, %v11075_v14, 0.0  ;;  %v5830_v7 = vadd.f32 %v5829_v37, %v5828_v34  ;;  %v6251_v37 = vld [vmem:[%s10162_s4 + $0x18] sm:$0xff] }
0x12ef   : > { %v8726_v5 = vpop.eup %8725  ;;  %v5844_v54 = vadd.f32 %v5843_v52, %v5842_v32  ;;  %v5851_v17 = vadd.f32 %v5850_v56, %v5849_v59 }
0x12f0   : > { %v5838_v1 = vrot.slane %v5837_v4, 1  ;;  %v5875_v8 = vmul.f32 %v8726_v5, %v11015_v22  ;;  %v5876_v50 = vmul.f32 %v8726_v5, %v11019_v20  ;;  %8735 = vrcp.f32 %v5830_v7 }
0x12f1   : > { %v8728_v15 = vpop.eup %8727  ;;  %v5845_v29 = vrot.slane %v5844_v54, 2  ;;  %v5852_v40 = vrot.slane %v5851_v17, 4 }
0x12f2   : > { %v8730_v33 = vpop.eup %8729  ;;  %8106 = vmatprep.mubr.msk.f32.mxu1 %vm5674_vm9, %v5875_v8  ;;  %v5877_v24 = vmul.f32 %v8728_v15, %v11027_v31  ;;  %v5878_v27 = vmul.f32 %v8728_v15, %v11029_v2  ;;  %v5839_v63 = vadd.f32 %v5838_v1, %v5837_v4  ;;  %v6113_v4 = vpop.permute.xlu1 %6112 }
0x12f3   : > { %v8732_v25 = vpop.eup %8731  ;;  %v5846_v45 = vadd.f32 %v5845_v29, %v5844_v54  ;;  %v5853_v44 = vadd.f32 %v5852_v40, %v5851_v17  ;;  %v5858_v3 = vsel %vm5674_vm9, %v8730_v33, 0.0  ;;  %8107 = vmatmul.mubr.msk.f32.vlgmr.msra.gmra.mrb[42].mxu1 %vm5674_vm9, %v5876_v50 }
0x12f4   : > { %v5859_v22 = vsel %vm5674_vm9, %v8732_v25, 0.0  ;;  %8109 = vmatprep.mubr.msk.f32.mxu1 %vm5674_vm9, %v5877_v24  ;;  %8737 = vrcp.f32 %v5839_v63 }
0x12f5   : > { %v8734_v20 = vpop.eup %8733  ;;  %v5847_v49 = vrot.slane %v5846_v45, 1  ;;  %v5854_v19 = vrot.slane %v5853_v44, 2  ;;  %v5860_v16 = vadd.f32 %v5859_v22, %v5858_v3 }
0x12f6   : > { %v5879_v31 = vmul.f32 %v8734_v20, %v11035_v13  ;;  %v5880_v2 = vmul.f32 %v8734_v20, %v11039_v11  ;;  %v6121_v5 = vpop.permute.xlu1 %6120 }
0x12f7   : > { %v5855_v18 = vadd.f32 %v5854_v19, %v5853_v44  ;;  %v5861_v42 = vrot.slane %v5860_v16, 4  ;;  %8110 = vmatmul.mubr.msk.f32.gmra.mrb[44].mxu1 %vm5674_vm9, %v5878_v27  ;;  %v5848_v43 = vadd.f32 %v5847_v49, %v5846_v45 }
0x12f8   : > { %8112 = vmatprep.mubr.msk.f32.mxu1 %vm5674_vm9, %v5879_v31 }
0x12f9   : > { %v5856_v58 = vrot.slane %v5855_v18, 1  ;;  %v5862_v53 = vadd.f32 %v5861_v42, %v5860_v16  ;;  %8739 = vrcp.f32 %v5848_v43 }
0x12fa   : > { %v8736_v46 = vpop.eup %8735  ;;  %v6125_v63 = vpop.permute.xlu1 %6124 }
0x12fb   : > { %v5863_v62 = vrot.slane %v5862_v53, 2  ;;  %8113 = vmatmul.mubr.msk.f32.gmra.mrb[46].mxu1 %vm5674_vm9, %v5880_v2  ;;  %v5881_v47 = vmul.f32 %v8736_v46, %v11047_v39  ;;  %v5882_v13 = vmul.f32 %v8736_v46, %v11049_v38  ;;  %v5857_v21 = vadd.f32 %v5856_v58, %v5855_v18 }
0x12fd   : > { %v5864_v11 = vadd.f32 %v5863_v62, %v5862_v53  ;;  %8115 = vmatprep.mubr.msk.f32.mxu1 %vm5674_vm9, %v5881_v47  ;;  %8741 = vrcp.f32 %v5857_v21 }
0x12fe   : > { %v8738_v48 = vpop.eup %8737  ;;  %v6129_v53 = vpop.permute.xlu1 %6128 }
0x12ff   : > { %v5865_v55 = vrot.slane %v5864_v11, 1  ;;  %8116 = vmatmul.mubr.msk.f32.gmra.mrb[48].mxu1 %vm5674_vm9, %v5882_v13  ;;  %v5883_v28 = vmul.f32 %v8738_v48, %v11055_v36  ;;  %v5884_v51 = vmul.f32 %v8738_v48, %v11057_v35 }
0x1301   : > { %8118 = vmatprep.mubr.msk.f32.mxu1 %vm5674_vm9, %v5883_v28  ;;  %v5866_v12 = vadd.f32 %v5865_v55, %v5864_v11 }
0x1303   : > { %v8740_v41 = vpop.eup %8739  ;;  %8119 = vmatmul.mubr.msk.f32.gmra.mrb[50].mxu1 %vm5674_vm9, %v5884_v51  ;;  %8743 = vrcp.f32 %v5866_v12 }
0x1304   : > { %v5885_v39 = vmul.f32 %v8740_v41, %v11065_v23  ;;  %v5886_v38 = vmul.f32 %v8740_v41, %v11067_v61  ;;  %v6248_v61 = vld [vmem:[%s10162_s4] sm:$0xff] }
0x1305   : > { %v8313_v32 = vpack.c.bf16 %v6249_v57, %v6248_v61 }
0x1306   : > { %8121 = vmatprep.mubr.msk.f32.mxu1 %vm5674_vm9, %v5885_v39 }
0x1307   : > { %v8742_v9 = vpop.eup %8741  ;;  %8122 = vmatmul.mubr.msk.f32.gmra.mrb[52].mxu1 %vm5674_vm9, %v5886_v38  ;;  %8314 = vmatpush3.bf16.msra.mxu0 %v8313_v32 }
0x1308   : > { %v5887_v36 = vmul.f32 %v8742_v9, %v11073_v60  ;;  %v5888_v35 = vmul.f32 %v8742_v9, %v11075_v14  ;;  %8315 = vmatprep.subr.bf16.mxu0 %v9405_v10  ;;  %v6250_v60 = vld [vmem:[%s10162_s4 + $0x10] sm:$0xff]  ;;  %v6115_v14 = vpop.permute.xlu0 %6114 }
0x1309   : > { %v8316_v6 = vpack.c.bf16 %v6251_v37, %v6250_v60 }
0x130a   : > { %8124 = vmatprep.mubr.msk.f32.mxu1 %vm5674_vm9, %v5887_v36 }
0x130b   : > { %8125 = vmatmul.mubr.msk.f32.gmra.mrb[54].mxu1 %vm5674_vm9, %v5888_v35  ;;  %8317 = vmatpush3.bf16.msra.mxu0 %v8316_v6 }
0x130c   : > { %8324 = vmatprep.subr.bf16.mxu0 %v9405_v10  ;;  %v6117_v52 = vpop.permute.xlu0 %6116 }
0x130d   : > { %v8744_v34 = vpop.eup %8743 }
0x130e   : > { %v5889_v23 = vmul.f32 %v8744_v34, %v8730_v33  ;;  %v5890_v0 = vmul.f32 %v8744_v34, %v8732_v25 }
0x1310   : > { %8127 = vmatprep.mubr.msk.f32.mxu1 %vm5674_vm9, %v5889_v23  ;;  %v6119_v59 = vpop.permute.xlu0 %6118 }
0x1311   : > { %8128 = vmatmul.mubr.msk.f32.gmra.mrb[56].mxu1 %vm5674_vm9, %v5890_v0  ;;  %v6133_v0 = vpop.permute.xlu1 %6132 }
0x1312   : > { %8149 = vmatprep.mubr.msk.f32.mxu1 %vm9414_vm2, %v9415_v30 }
0x1314   : > { %v6123_v56 = vpop.permute.xlu0 %6122 }
0x1318   : > { %v6127_v24 = vpop.permute.xlu0 %6126 }
0x131c   : > { %v6131_v42 = vpop.permute.xlu0 %6130 }
0x1320   : > { %v6135_v35 = vpop.permute.xlu0 %6134 }
0x13c6   : > { %v8108_v7 = vpop.f32.mrb[42].mxu1 }
0x13c7   : > { %v6161_v54 = vmul.f32 %v8108_v7, %v6115_v14  ;;  %v6017_v17 = vpop.f32.mrb[43].mxu1 }
0x13c8   : > { %v6160_v1 = vmul.f32 %v6113_v4, %v6017_v17 }
0x13c9   : > { %v6177_v8 = vsel %vm3054_vm5, %v6161_v54, 0.0 }
0x13ca   : > { %v6176_v50 = vsel %vm3054_vm5, %v6160_v1, 0.0  ;;  %v8111_v15 = vpop.f32.mrb[44].mxu1 }
0x13cb   : > { %v6178_v29 = vadd.f32 %v6177_v8, %v6176_v50  ;;  %v6163_v40 = vmul.f32 %v8111_v15, %v6119_v59  ;;  %v6027_v33 = vpop.f32.mrb[45].mxu1  ;;  %v6139_v15 = vpop.permute.xlu0 %6138 }
0x13cc   : > { %v6162_v27 = vmul.f32 %v6117_v52, %v6027_v33 }
0x13cd   : > { %v6179_v25 = vrot.slane %v6178_v29, 4  ;;  %v6186_v45 = vsel %vm3054_vm5, %v6163_v40, 0.0 }
0x13ce   : > { %v6185_v44 = vsel %vm3054_vm5, %v6162_v27, 0.0  ;;  %v8114_v3 = vpop.f32.mrb[46].mxu1 }
0x13cf   : > { %v6180_v22 = vadd.f32 %v6179_v25, %v6178_v29  ;;  %v6187_v20 = vadd.f32 %v6186_v45, %v6185_v44  ;;  %v6165_v49 = vmul.f32 %v8114_v3, %v6123_v56  ;;  %v6037_v19 = vpop.f32.mrb[47].mxu1 }
0x13d0   : > { %v6164_v16 = vmul.f32 %v6121_v5, %v6037_v19 }
0x13d1   : > { %v6181_v31 = vrot.slane %v6180_v22, 2  ;;  %v6188_v2 = vrot.slane %v6187_v20, 4  ;;  %v6195_v18 = vsel %vm3054_vm5, %v6165_v49, 0.0 }
0x13d2   : > { %v6194_v43 = vsel %vm3054_vm5, %v6164_v16, 0.0  ;;  %v8117_v58 = vpop.f32.mrb[48].mxu1 }
0x13d3   : > { %v6182_v46 = vadd.f32 %v6181_v31, %v6180_v22  ;;  %v6189_v62 = vadd.f32 %v6188_v2, %v6187_v20  ;;  %v6196_v47 = vadd.f32 %v6195_v18, %v6194_v43  ;;  %v6167_v13 = vmul.f32 %v8117_v58, %v6127_v24  ;;  %v6047_v21 = vpop.f32.mrb[49].mxu1  ;;  %v6137_v24 = vpop.permute.xlu1 %6136 }
0x13d4   : > { %v6166_v11 = vmul.f32 %v6125_v63, %v6047_v21 }
0x13d5   : > { %v6190_v48 = vrot.slane %v6189_v62, 2  ;;  %v6197_v55 = vrot.slane %v6196_v47, 4  ;;  %v6204_v28 = vsel %vm3054_vm5, %v6167_v13, 0.0  ;;  %v6183_v51 = vrot.slane %v6182_v46, 1 }
0x13d6   : > { %v6203_v12 = vsel %vm3054_vm5, %v6166_v11, 0.0  ;;  %v8120_v41 = vpop.f32.mrb[50].mxu1 }
0x13d7   : > { %v6191_v39 = vadd.f32 %v6190_v48, %v6189_v62  ;;  %v6198_v38 = vadd.f32 %v6197_v55, %v6196_v47  ;;  %v6205_v9 = vadd.f32 %v6204_v28, %v6203_v12  ;;  %v6057_v36 = vpop.f32.mrb[51].mxu1  ;;  %v6169_v34 = vmul.f32 %v8120_v41, %v6131_v42  ;;  %v6141_v62 = vpop.permute.xlu1 %6140 }
0x13d8   : > { %v6168_v23 = vmul.f32 %v6129_v53, %v6057_v36  ;;  %v6184_v60 = vadd.f32 %v6183_v51, %v6182_v46  ;;  %v6143_v53 = vpop.permute.xlu0 %6142 }
0x13d9   : > { %v6192_v61 = vrot.slane %v6191_v39, 1  ;;  %v6199_v57 = vrot.slane %v6198_v38, 2  ;;  %v6206_v32 = vrot.slane %v6205_v9, 4  ;;  %v6213_v37 = vsel %vm3054_vm5, %v6169_v34, 0.0 }
0x13da   : > { %v6212_v6 = vsel %vm3054_vm5, %v6168_v23, 0.0  ;;  %v8123_v14 = vpop.f32.mrb[52].mxu1 }
0x13db   : > { %v6193_v52 = vadd.f32 %v6192_v61, %v6191_v39  ;;  %v6200_v59 = vadd.f32 %v6199_v57, %v6198_v38  ;;  %v6207_v4 = vadd.f32 %v6206_v32, %v6205_v9  ;;  %v6214_v56 = vadd.f32 %v6213_v37, %v6212_v6  ;;  %v6067_v7 = vpop.f32.mrb[53].mxu1 }
0x13dc   : > { %v6171_v5 = vmul.f32 %v8123_v14, %v6135_v35  ;;  %v6170_v54 = vmul.f32 %v6133_v0, %v6067_v7  ;;  %v7584_v7 = vld [vmem:[%s1795_s9] ss:$0 sm:$0xff] }
0x13dd   : > { %v6268_v17 = vsel %vm6267_vm11, %v6193_v52, %v6184_v60  ;;  %v6201_v1 = vrot.slane %v6200_v59, 1  ;;  %v6208_v8 = vrot.slane %v6207_v4, 2  ;;  %v6215_v50 = vrot.slane %v6214_v56, 4 }
0x13de   : > { %v6222_v29 = vsel %vm3054_vm5, %v6171_v5, 0.0  ;;  %v6221_v40 = vsel %vm3054_vm5, %v6170_v54, 0.0  ;;  %v8126_v33 = vpop.f32.mrb[54].mxu1 }
0x13df   : > { %v6202_v27 = vadd.f32 %v6201_v1, %v6200_v59  ;;  %v6209_v63 = vadd.f32 %v6208_v8, %v6207_v4  ;;  %v6216_v25 = vadd.f32 %v6215_v50, %v6214_v56  ;;  %v6223_v45 = vadd.f32 %v6222_v29, %v6221_v40  ;;  %v6077_v44 = vpop.f32.mrb[55].mxu1  ;;  %v6383_v50 = vld [vmem:[%s10167_s5] sm:$0xff] }
0x13e0   : > { %v6173_v3 = vmul.f32 %v8126_v33, %v6139_v15  ;;  %v6172_v22 = vmul.f32 %v6137_v24, %v6077_v44  ;;  %v6384_v15 = vld [vmem:[%s10167_s5 + $0x8] sm:$0xff]  ;;  %v6468_v44 = vld [vmem:[%s10148_s20] sm:$0xff] }
0x13e1   : > { %v6270_v20 = vsel %vm6269_vm12, %v6202_v27, %v6268_v17  ;;  %v6210_v49 = vrot.slane %v6209_v63, 1  ;;  %v6217_v19 = vrot.slane %v6216_v25, 2  ;;  %v6224_v16 = vrot.slane %v6223_v45, 4 }
0x13e2   : > { %v6231_v31 = vsel %vm3054_vm5, %v6173_v3, 0.0  ;;  %v6230_v2 = vsel %vm3054_vm5, %v6172_v22, 0.0  ;;  %v8319_v29 = vpack.c.bf16 %v6384_v15, %v6383_v50  ;;  %v6469_v3 = vld [vmem:[%s10148_s20 + $0x8] sm:$0xff]  ;;  %v6470_v22 = vld [vmem:[%s10148_s20 + $0x10] sm:$0xff]  ;;  %v7593_v50 = vld [vmem:[%s2104_s26] ss:$0 sm:$0xff] }
0x13e3   : > { %v6211_v18 = vadd.f32 %v6210_v49, %v6209_v63  ;;  %v6218_v42 = vadd.f32 %v6217_v19, %v6216_v25  ;;  %v6225_v43 = vadd.f32 %v6224_v16, %v6223_v45  ;;  %v6232_v58 = vadd.f32 %v6231_v31, %v6230_v2  ;;  %v6385_v63 = vld [vmem:[%s10167_s5 + $0x10] sm:$0xff]  ;;  %v6386_v25 = vld [vmem:[%s10167_s5 + $0x18] sm:$0xff]  ;;  %v6472_v16 = vld [vmem:[%s10148_s20 + $0x20] sm:$0xff] }
0x13e4   : > { %v8129_v46 = vpop.f32.mrb[56].mxu1  ;;  %8320 = vmatpush3.bf16.msra.mxu1 %v8319_v29  ;;  %v8322_v45 = vpack.c.bf16 %v6386_v25, %v6385_v63  ;;  %v6471_v49 = vld [vmem:[%s10148_s20 + $0x18] sm:$0xff]  ;;  %v6473_v31 = vld [vmem:[%s10148_s20 + $0x28] sm:$0xff] }
0x13e5   : > { %v6272_v47 = vsel %vm6271_vm13, %v6211_v18, %v6270_v20  ;;  %v6219_v13 = vrot.slane %v6218_v42, 1  ;;  %v6226_v21 = vrot.slane %v6225_v43, 2  ;;  %v6233_v11 = vrot.slane %v6232_v58, 4  ;;  %v6087_v48 = vpop.f32.mrb[57].mxu1  ;;  %8321 = vmatprep.subr.bf16.mxu1 %v9405_v10 }
0x13e6   : > { %v6175_v55 = vmul.f32 %v8129_v46, %v6143_v53  ;;  %v6174_v28 = vmul.f32 %v6141_v62, %v6087_v48  ;;  %v8325_v20 = vpack.c.bf16 %v6469_v3, %v6468_v44  ;;  %v8328_v19 = vpack.c.bf16 %v6471_v49, %v6470_v22  ;;  %v7586_v53 = vld [vmem:[%s2084_s0] ss:$0 sm:$0xff] }
0x13e7   : > { %v6220_v51 = vadd.f32 %v6219_v13, %v6218_v42  ;;  %v6227_v12 = vadd.f32 %v6226_v21, %v6225_v43  ;;  %v6234_v41 = vadd.f32 %v6233_v11, %v6232_v58  ;;  %v8331_v2 = vpack.c.bf16 %v6473_v31, %v6472_v16  ;;  %v7587_v62 = vld [vmem:[%s2087_s17] ss:$0 sm:$0xff]  ;;  %v6474_v21 = vld [vmem:[%s10148_s20 + $0x30] sm:$0xff]  ;;  %v6475_v11 = vld [vmem:[%s10148_s20 + $0x38] sm:$0xff] }
0x13e8   : > { %v6240_v39 = vsel %vm3054_vm5, %v6175_v55, 0.0  ;;  %v6239_v38 = vsel %vm3054_vm5, %v6174_v28, 0.0  ;;  %8323 = vmatpush3.bf16.msra.mxu1 %v8322_v45  ;;  %v8334_v48 = vpack.c.bf16 %v6475_v11, %v6474_v21  ;;  %v7588_v55 = vld [vmem:[%s2090_s23] ss:$0 sm:$0xff]  ;;  %s11459_s23 = sld [smem:[#allocation59_spill]] }
0x13e9   : > { %v6274_v9 = vsel %vm6273_vm14, %v6220_v51, %v6272_v47  ;;  %v6228_v36 = vrot.slane %v6227_v12, 1  ;;  %v6235_v35 = vrot.slane %v6234_v41, 2  ;;  %v6241_v34 = vadd.f32 %v6240_v39, %v6239_v38  ;;  %8336 = vmatprep.subr.bf16.mxu1 %v9405_v10  ;;  %v7590_v39 = vld [vmem:[%s2098_s7] ss:$0 sm:$0xff]  ;;  %v7594_v45 = vld [vmem:[#allocation20] ss:$0 sm:$0xff] }
0x13ea   : > { %v7596_v16 = vld [vmem:[#allocation23] ss:$0 sm:$0xff] }
0x13eb   : > { %v6229_v23 = vadd.f32 %v6228_v36, %v6227_v12  ;;  %v6236_v0 = vadd.f32 %v6235_v35, %v6234_v41  ;;  %v6242_v61 = vrot.slane %v6241_v34, 4 }
0x13ed   : > { %v6237_v57 = vrot.slane %v6236_v0, 1  ;;  %v6243_v32 = vadd.f32 %v6242_v61, %v6241_v34  ;;  %v6276_v60 = vsel %vm6275_vm15, %v6229_v23, %v6274_v9 }
0x13ee   : > { %v6758_v63 = vld [vmem:[%s11459_s23 + $0x8] sm:$0xff]  ;;  %v6760_v49 = vld [vmem:[%s11459_s23 + $0x18] sm:$0xff] }
0x13ef   : > { %v6238_v37 = vadd.f32 %v6237_v57, %v6236_v0  ;;  %v6244_v6 = vrot.slane %v6243_v32, 2 }
0x13f1   : > { %v6245_v14 = vadd.f32 %v6244_v6, %v6243_v32  ;;  %v6278_v52 = vsel %vm6277_vm0, %v6238_v37, %v6276_v60  ;;  %v6587_v60 = vld [vmem:[#allocation18] sm:$0xff]  ;;  %v6588_v37 = vld [vmem:[#allocation18 + $0x8] sm:$0xff]  ;;  %v6589_v6 = vld [vmem:[#allocation18 + $0x10] sm:$0xff] }
0x13f3   : > { %v6246_v59 = vrot.slane %v6245_v14, 1 }
0x13f5   : > { %v6247_v4 = vadd.f32 %v6246_v59, %v6245_v14  ;;  %v8337_v14 = vpack.c.bf16 %v6588_v37, %v6587_v60 }
0x13f7   : > { %v6280_v56 = vsel %vm6279_vm1, %v6247_v4, %v6278_v52  ;;  %v6590_v52 = vld [vmem:[#allocation18 + $0x18] sm:$0xff] }
0x13f8   : > { %8139 = vmatmul.mubr.msk.f32.vlgmr.msra.gmra.mrb[36].mxu0 %vm3054_vm5, %v6280_v56  ;;  %v8340_v59 = vpack.c.bf16 %v6590_v52, %v6589_v6 }
0x13f9   : > { %8168 = vmatprep.mubr.msk.f32.mxu0 %vm9414_vm2, %v9415_v30  ;;  %8326 = vmatpush3.bf16.msra.mxu0 %v8325_v20 }
0x13fa   : > { %8327 = vmatprep.subr.bf16.mxu0 %v9405_v10 }
0x13fd   : > { %8329 = vmatpush3.bf16.msra.mxu0 %v8328_v19 }
0x13fe   : > { %8330 = vmatprep.subr.bf16.mxu0 %v9405_v10 }
0x1401   : > { %8332 = vmatpush3.bf16.msra.mxu0 %v8331_v2 }
0x1402   : > { %8333 = vmatprep.subr.bf16.mxu0 %v9405_v10 }
0x1405   : > { %8335 = vmatpush3.bf16.msra.mxu0 %v8334_v48 }
0x1406   : > { %8348 = vmatprep.subr.bf16.mxu0 %v9405_v10 }
0x14cb   : > { %v6349_v5 = vpop.f32.mrb[36].mxu0 }
0x14cc   : > { %v6350_v54 = vadd.f32 %v7584_v7, %v6349_v5  ;;  %v8140_v17 = vpop.f32.mrb[37].mxu0 }
0x14ce   : > { %v6353_v1 = vadd.f32 %v6350_v54, %v10823_v26  ;;  %v7592_v54 = vld [vmem:[%s2101_s21] ss:$0 sm:$0xff] }
0x14d0   : > { %v6354_v8 = vsel %vm3054_vm5, %v6353_v1, 0.0 }
0x14d1   : > { %6355 = vadd.xlane.f32.xlu1 %v6354_v8  ;;  %v6673_v8 = vld [vmem:[#allocation21 + $0x8] sm:$0xff] }
0x155e   : > { %v6356_v40 = vpop.xlane.xlu1 %6355 }
0x155f   : > { %v6357_v33 = vmul.f32 0.03125, %v6356_v40 }
0x1561   : > { %v6358_v24 = vsub.f32 %v6353_v1, %v6357_v33  ;;  %v6672_v1 = vld [vmem:[#allocation21] sm:$0xff]  ;;  %v6674_v33 = vld [vmem:[#allocation21 + $0x10] sm:$0xff] }
0x1562   : > { %v8343_v29 = vpack.c.bf16 %v6673_v8, %v6672_v1 }
0x1563   : > { %v6359_v27 = vmul.f32 %v6358_v24, %v6358_v24 }
0x1565   : > { %v6360_v26 = vsel %vm3054_vm5, %v6359_v27, 0.0 }
0x1566   : > { %6361 = vadd.xlane.f32.xlu0 %v6360_v26  ;;  %v6757_v26 = vld [vmem:[%s11459_s23] sm:$0xff] }
0x1567   : > { %v8349_v25 = vpack.c.bf16 %v6758_v63, %v6757_v26 }
0x15f3   : > { %v6362_v18 = vpop.xlane.xlu0 %6361 }
0x15f4   : > { %v6363_v42 = vmul.f32 0.03125, %v6362_v18 }
0x15f6   : > { %v6364_v43 = vadd.f32 1e-05, %v6363_v42 }
0x15f8   : > { %8745 = vrsqrt.f32 %v6364_v43 }
0x1602   : > { %v8746_v58 = vpop.eup %8745 }
0x1603   : > { %v6366_v46 = vmul.f32 %v8746_v58, %v6358_v24  ;;  %v6675_v24 = vld [vmem:[#allocation21 + $0x18] sm:$0xff] }
0x1604   : > { %v8346_v27 = vpack.c.bf16 %v6675_v24, %v6674_v33 }
0x1605   : > { %v6374_v47 = vmul.f32 %v7586_v53, %v6366_v46 }
0x1607   : > { %v6382_v13 = vadd.f32 %v7587_v62, %v6374_v47 }
0x1609   : > { %8150 = vmatmul.mubr.msk.f32.vlgmr.msra.gmra.mrb[58].mxu1 %vm3054_vm5, %v6382_v13 }
0x160a   : > { %8179 = vmatprep.mubr.msk.f32.mxu1 %vm9414_vm2, %v9415_v30  ;;  %8338 = vmatpush3.bf16.msra.mxu1 %v8337_v14 }
0x160b   : > { %8339 = vmatprep.subr.bf16.mxu1 %v9405_v10 }
0x160e   : > { %8341 = vmatpush3.bf16.msra.mxu1 %v8340_v59 }
0x160f   : > { %8342 = vmatprep.subr.bf16.mxu1 %v9405_v10 }
0x16dc   : > { %v6463_v28 = vpop.f32.mrb[58].mxu1 }
0x16dd   : > { %v6464_v51 = vadd.f32 %v7588_v55, %v6463_v28  ;;  %v8151_v12 = vpop.f32.mrb[59].mxu1 }
0x16df   : > { %v6467_v41 = vmax.f32 %v6464_v51, 0.0 }
0x16e1   : > { %8169 = vmatmul.mubr.msk.f32.vlgmr.msra.gmra.mrb[38].mxu0 %vm3073_vm7, %v6467_v41 }
0x16e2   : > { %8201 = vmatprep.mubr.msk.f32.mxu0 %vm9414_vm2, %v9415_v30  ;;  %8350 = vmatpush3.bf16.msra.mxu0 %v8349_v25 }
0x16e3   : > { %8351 = vmatprep.subr.bf16.mxu0 %v9405_v10 }
0x17b4   : > { %v6552_v38 = vpop.f32.mrb[38].mxu0 }
0x17b5   : > { %v6553_v9 = vadd.f32 %v7590_v39, %v6552_v38  ;;  %v8170_v36 = vpop.f32.mrb[39].mxu0 }
0x17b7   : > { %v6556_v35 = vadd.f32 %v6553_v9, %v6382_v13 }
0x17b9   : > { %v6557_v34 = vsel %vm3054_vm5, %v6556_v35, 0.0 }
0x17ba   : > { %6558 = vadd.xlane.f32.xlu0 %v6557_v34 }
0x1847   : > { %v6559_v23 = vpop.xlane.xlu0 %6558 }
0x1848   : > { %v6560_v0 = vmul.f32 0.03125, %v6559_v23 }
0x184a   : > { %v6561_v61 = vsub.f32 %v6556_v35, %v6560_v0 }
0x184c   : > { %v6562_v57 = vmul.f32 %v6561_v61, %v6561_v61 }
0x184e   : > { %v6563_v32 = vsel %vm3054_vm5, %v6562_v57, 0.0 }
0x184f   : > { %6564 = vadd.xlane.f32.xlu1 %v6563_v32 }
0x18dc   : > { %v6565_v4 = vpop.xlane.xlu1 %6564 }
0x18dd   : > { %v6566_v56 = vmul.f32 0.03125, %v6565_v4 }
0x18df   : > { %v6567_v7 = vadd.f32 1e-05, %v6566_v56 }
0x18e1   : > { %8747 = vrsqrt.f32 %v6567_v7 }
0x18eb   : > { %v8748_v5 = vpop.eup %8747 }
0x18ec   : > { %v6569_v17 = vmul.f32 %v8748_v5, %v6561_v61 }
0x18ee   : > { %v6577_v15 = vmul.f32 %v7592_v54, %v6569_v17 }
0x18f0   : > { %v6585_v40 = vadd.f32 %v7593_v50, %v6577_v15 }
0x18f2   : > { %6586 = vst.msk [vmem:[#allocation2] sm:$0xff] %vm3054_vm5, %v6585_v40  ;;  %8180 = vmatmul.mubr.msk.f32.vlgmr.msra.gmra.mrb[60].mxu1 %vm3054_vm5, %v6585_v40 }
0x18f3   : > { %8344 = vmatpush3.bf16.msra.mxu1 %v8343_v29  ;;  %8190 = vmatprep.mubr.msk.f32.mxu1 %vm9414_vm2, %v9415_v30  ;;  %v6759_v30 = vld [vmem:[%s11459_s23 + $0x10] sm:$0xff] }
0x18f4   : > { %8345 = vmatprep.subr.bf16.mxu1 %v9405_v10  ;;  %v8352_v19 = vpack.c.bf16 %v6760_v49, %v6759_v30  ;;  %v7598_v10 = vld [vmem:[#allocation24] ss:$0 sm:$0xff] }
0x18f6   : > { %8353 = vmatpush3.bf16.msra.mxu0 %v8352_v19 }
0x18f7   : > { %8347 = vmatpush3.bf16.msra.mxu1 %v8346_v27 }
0x19c5   : > { %v6667_v44 = vpop.f32.mrb[60].mxu1 }
0x19c6   : > { %v6668_v3 = vadd.f32 %v7594_v45, %v6667_v44  ;;  %v8181_v22 = vpop.f32.mrb[61].mxu1 }
0x19c8   : > { %v6671_v20 = vmax.f32 %v6668_v3, 0.0 }
0x19ca   : > { %8191 = vmatmul.mubr.msk.f32.vlgmr.msra.gmra.mrb[62].mxu1 %vm3054_vm5, %v6671_v20 }
0x1a9d   : > { %v6752_v31 = vpop.f32.mrb[62].mxu1 }
0x1a9e   : > { %v6753_v2 = vadd.f32 %v7596_v16, %v6752_v31  ;;  %v8192_v18 = vpop.f32.mrb[63].mxu1 }
0x1aa0   : > { %v6756_v42 = vmax.f32 %v6753_v2, 0.0 }
0x1aa2   : > { %8202 = vmatmul.mubr.msk.f32.vlgmr.msra.gmra.mrb[40].mxu0 %vm3054_vm5, %v6756_v42 }
0x1b75   : > { %v6837_v43 = vpop.f32.mrb[40].mxu0 }
0x1b76   : > { %v6838_v58 = vadd.f32 %v7598_v10, %v6837_v43  ;;  %v8203_v53 = vpop.f32.mrb[41].mxu0 }
0x1b78   : > { %v7600_v46 = vmul.f32 -1.442695, %v6838_v58 }
0x1b7a   : > { %8749 = vpow2.f32 %v7600_v46 }
0x1b84   : > { %v8750_v62 = vpop.eup %8749 }
0x1b85   : > { %v6844_v47 = vadd.f32 1.0, %v8750_v62 }
0x1b87   : > { %8751 = vrcp.f32 %v6844_v47 }
0x1b91   : > { %v8752_v13 = vpop.eup %8751 }
0x1b92   : > { %6847 = vst.msk [vmem:[#allocation3] sm:$0xff] %vm5674_vm9, %v8752_v13  ;;  %6848 = vst.msk [vmem:[%s10158_s16] sm:$0xff] %vm5674_vm9, %v8752_v13 }
0x1b93 PF: > { %s11460_s7 = sld [smem:[#allocation90_spill]]  ;;  %s11461_s28 = sld [smem:[#allocation88_spill]] }
0x1b94   : > { %s11462_s1 = sld [smem:[#allocation89_spill]]  ;;  %s11463_s2 = sld [smem:[#allocation91_spill]] }
0x1b99   : > { %p112_p12 = scmp.ge.s32.totalorder %s11460_s7, 4  }
0x1b9b   :  { %114 = sbr.rel (!%p112_p12) target bundleno = 119 (0x77), region = 458 }
0x1ba2   :  { %6868 = vsyncpa [#allocation5], 1 }
0x1ba3   :  { %6870 = vsyncpa [#allocation5 + $0x1], 1 }
0x1ba4   :  { %6871 = vsyncpa [#allocation7], 1 }
0x1ba5   :  { %6872 = vsyncpa [#allocation10], 1 }
0x1ba6   :  { %6873 = vsyncpa [#allocation13], 1 }
0x1ba7   :  { %6874 = vsyncpa [#allocation16], 1 }
0x1ba8   :  { %6875 = vsyncpa [#allocation19], 1 }
0x1ba9   :  { %6876 = vsyncpa [#allocation22], 1 }
0x1baa   :  { %6877 = vsyncpa [#allocation25], 1 }

</bundles_post_ra>
